<compile_context>
chip_gen: v7x
topology: tpu7x:2x2x1
jax: 0.10.0
libtpu: 0.0.40
codegen_flags: <defaults>
</compile_context>

<pallas_src>
import functools

import jax
import jax.numpy as jnp
from jax import lax
from jax.scipy.linalg import block_diag
from jax.experimental import pallas as pl
from jax.experimental.pallas import tpu as pltpu


HEAD_NAMES = ('L2', 'L1', 'R1', 'R2')


# ----------------------------------------------------------------------------
# Fully fused per-batch tail kernel.
# ----------------------------------------------------------------------------
def _fused_tail_kernel(gf_ref, le_w1_ref, le_w2_ref, head_w_ref,
                       g_oh_ref, g_oh_t_ref, fus_w_ref,
                       hm_w1_ref, hm_w2_ref, coord_ref,
                       lin1_w_ref, lin2_w_ref, bias_ref,
                       hm_ref, aux_ref,
                       gpad, fpad,
                       *, H, W, pn, pfc, n_heads, gn_eps):
    Cg = gf_ref.shape[3]
    HW = H * W
    C = pn * pfc                  # per-head channels
    CH = n_heads * C              # merged head channels (lane-dense, demo: 128)
    GF = n_heads * pfc            # stacked group-max channels
    NHM = n_heads * pn            # total heatmap channels
    H2, W2 = H // 2, W // 2

    # ---- packed biases (one row each, zero-padded to the lane width) ----------
    bias = bias_ref[...]
    le_b1 = bias[0:1, :32]
    le_b2 = bias[1:2, :5]
    head_b = bias[2:3, :CH]
    gn_g = bias[3:4, :CH]
    gn_b = bias[4:5, :CH]
    fus_b = bias[5:6, :GF]
    hm_b = bias[6:7, :NHM]
    lin1_b = bias[7:8, :128]
    lin2_b = bias[8:9, :4]

    # ---- 'same' padding of the global feature in VMEM: rewrite only the
    #      zero borders each step (interior is fully overwritten below). --------
    zg_tb = jnp.zeros((4, W + 8, Cg), jnp.float32)
    gpad[0:4, :, :] = zg_tb
    gpad[H + 4:H + 8, :, :] = zg_tb
    zg_lr = jnp.zeros((H, 4, Cg), jnp.float32)
    gpad[4:4 + H, 0:4, :] = zg_lr
    gpad[4:4 + H, W + 4:W + 8, :] = zg_lr
    gpad[4:4 + H, 4:4 + W, :] = gf_ref[0]

    # =================== Lane_exist branch (done first so col_le is dead
    #                     before col_head is materialized) =====================
    taps_le = []
    for kh in range(3):
        for kw in range(3):
            taps_le.append(
                gpad[4 * kh:4 * kh + H, 4 * kw:4 * kw + W, :].reshape(HW, Cg))
    col_le = jnp.concatenate(taps_le, axis=1)                        # [HW, 9*Cg]
    x1 = jnp.maximum(
        jnp.dot(col_le, le_w1_ref[...], preferred_element_type=jnp.float32)
        + le_b1, 0.0)                                                # [HW, 32]
    # TODO(synk): Dropout2d(0.1) is identity in eval mode (no RNG applied).
    x2 = jnp.dot(x1, le_w2_ref[...],
                 preferred_element_type=jnp.float32) + le_b2         # [HW, 5]
    m5 = jnp.max(x2, axis=-1, keepdims=True)
    e5 = jnp.exp(x2 - m5)
    s5 = jnp.sum(e5, axis=-1, keepdims=True)
    inv5 = pl.reciprocal(s5, approx=True)
    inv5 = inv5 * (2.0 - s5 * inv5)                                  # Newton step
    p5 = e5 * inv5                                                   # [HW, 5]

    # 2x2 max-pool + NCHW-equivalent flatten (lin1 weights are row-permuted on
    # the host so the in-kernel (h, w, c) flatten order matches torch's view()).
    # TODO(synk): unrolled slice-tree pooling is sized for small feature maps;
    #             use strided ref reads for production-size encoder outputs.
    flat_parts = []
    for h2 in range(H2):
        top = p5[(2 * h2) * W:(2 * h2) * W + W, :]                   # [W, 5]
        bot = p5[(2 * h2 + 1) * W:(2 * h2 + 1) * W + W, :]
        vrow = jnp.maximum(top, bot)
        for w2 in range(W2):
            flat_parts.append(jnp.maximum(vrow[2 * w2:2 * w2 + 1, :],
                                          vrow[2 * w2 + 1:2 * w2 + 2, :]))
    flat = jnp.concatenate(flat_parts, axis=1)                       # [1, 5*H2*W2]
    h1 = jnp.maximum(
        jnp.dot(flat, lin1_w_ref[...], preferred_element_type=jnp.float32)
        + lin1_b, 0.0)                                               # [1, 128]
    pe = jax.nn.sigmoid(
        jnp.dot(h1, lin2_w_ref[...], preferred_element_type=jnp.float32)
        + lin2_b)                                                    # [1, 4]

    # =================== merged 4-head 3x3 conv, (point, head, c) layout =======
    taps_head = []
    for kh in range(3):
        for kw in range(3):
            taps_head.append(
                gpad[3 + kh:3 + kh + H, 3 + kw:3 + kw + W, :].reshape(HW, Cg))
    col_head = jnp.concatenate(taps_head, axis=1)                    # [HW, 9*Cg]
    hf = jnp.dot(col_head, head_w_ref[...],
                 preferred_element_type=jnp.float32) + head_b        # [HW, CH]

    # ---- GroupNorm (groups of pfc consecutive channels) via one-hot matmuls ---
    inv_n = 1.0 / float(HW * pfc)
    colsum = jnp.sum(hf, axis=0, keepdims=True)                      # [1, CH]
    gsum = jnp.dot(colsum, g_oh_ref[...], preferred_element_type=jnp.float32)
    mean_bc = jnp.dot(gsum * inv_n, g_oh_t_ref[...],
                      preferred_element_type=jnp.float32)            # [1, CH]
    d = hf - mean_bc
    colsq = jnp.sum(d * d, axis=0, keepdims=True)
    gvar = jnp.dot(colsq, g_oh_ref[...],
                   preferred_element_type=jnp.float32) * inv_n
    var_bc = jnp.dot(gvar, g_oh_t_ref[...], preferred_element_type=jnp.float32)
    y = jnp.maximum((d * lax.rsqrt(var_bc + gn_eps)) * gn_g + gn_b, 0.0)

    # ---- per-head max over the point axis: lane-halving tree ------------------
    gm = y                                                           # [HW, pn*GF]
    if (pn & (pn - 1)) == 0:
        length = pn
        while length > 1:
            half = length // 2
            gm = jnp.maximum(gm[:, :half * GF], gm[:, half * GF:length * GF])
            length = half
    else:
        acc = gm[:, :GF]
        for j in range(1, pn):
            acc = jnp.maximum(acc, gm[:, j * GF:(j + 1) * GF])
        gm = acc
    gmax = gm                                                        # [HW, GF] (head, c)

    # ---- lane fusion: ONE block 5x5 conv over the stacked group-max features --
    zf_tb = jnp.zeros((2, W + 4, GF), jnp.float32)
    fpad[0:2, :, :] = zf_tb
    fpad[H + 2:H + 4, :, :] = zf_tb
    zf_lr = jnp.zeros((H, 2, GF), jnp.float32)
    fpad[2:2 + H, 0:2, :] = zf_lr
    fpad[2:2 + H, W + 2:W + 4, :] = zf_lr
    fpad[2:2 + H, 2:2 + W, :] = gmax.reshape(H, W, GF)
    taps_f = []
    for kh in range(5):
        for kw in range(5):
            taps_f.append(fpad[kh:kh + H, kw:kw + W, :].reshape(HW, GF))
    col_f = jnp.concatenate(taps_f, axis=1)                          # [HW, 25*GF]
    fused = jnp.dot(col_f, fus_w_ref[...],
                    preferred_element_type=jnp.float32) + fus_b
    fused = fused + gmax                                             # identity residual

    # ---- grouped 1x1 heatmap convs as two block-structured matmuls ------------
    u = (jnp.dot(y, hm_w1_ref[...], preferred_element_type=jnp.float32)
         + jnp.dot(fused, hm_w2_ref[...], preferred_element_type=jnp.float32)
         + hm_b)                                                     # [HW, NHM]

    # ---- flat softmax (per channel over H*W) + dsnt via one coordinate matmul -
    mx = jnp.max(u, axis=0, keepdims=True)
    e = jnp.exp(u - mx)                                              # [HW, NHM]
    r = jnp.dot(coord_ref[...], e, preferred_element_type=jnp.float32)  # [3, NHM]
    s = r[0:1, :]
    inv = pl.reciprocal(s, approx=True)
    inv = inv * (2.0 - s * inv)
    hm_ref[0] = (e * inv).reshape(H, W, NHM)
    ex = r[1:2, :] * inv
    ey = r[2:3, :] * inv
    if NHM > 4:
        pe_row = jnp.concatenate([pe, jnp.zeros((1, NHM - 4), jnp.float32)], axis=1)
    else:
        pe_row = pe
    aux_ref[0] = jnp.concatenate([ex, ey, pe_row], axis=0)           # [3, NHM]


# ----------------------------------------------------------------------------
# Forward pass wrapper: weight folding / repacking + one pallas_call.
# ----------------------------------------------------------------------------
def fushion_lane_detection_forward(params, global_feature_nchw, *, pn, pfc):
    n_heads = 4
    gf = jnp.transpose(global_feature_nchw, (0, 2, 3, 1)).astype(jnp.float32)
    B, H, W, Cg = gf.shape
    C = pn * pfc
    CH = n_heads * C
    GF = n_heads * pfc
    NHM = n_heads * pn
    HW = H * W
    H2, W2 = H // 2, W // 2
    channel = 5 * H2 * W2

    # ----- Lane_exist: fold eval-mode BN (eps=1e-3 per the module) into conv ----
    lp = params['lane_exist']
    bn_scale = lp['bn_gamma'] / jnp.sqrt(lp['bn_var'] + 1e-3)
    bn_bias = lp['bn_beta'] - lp['bn_mean'] * bn_scale
    le_w1 = (lp['conv1_w'] * bn_scale[None, None, None, :]).reshape(9 * Cg, 32)
    le_w2 = lp['conv2_w'].reshape(32, 5)

    # lin1 rows permuted from torch CHW flatten order to the kernel's HWC order.
    c_i, h_i, w_i = jnp.arange(5), jnp.arange(H2), jnp.arange(W2)
    perm_lin = (c_i[None, None, :] * (H2 * W2) + h_i[:, None, None] * W2
                + w_i[None, :, None]).reshape(-1)
    lin1_w = lp['lin1_w'][perm_lin]                                  # [channel, 128]
    lin2_w = lp['lin2_w']                                            # [128, 4]

    # ----- merge the four per-lane head convs; permute to (point, head, c) ------
    head_w_hm = jnp.concatenate([params[n]['conv_w'] for n in HEAD_NAMES],
                                axis=-1).reshape(9 * Cg, CH)
    head_b_hm = jnp.concatenate([params[n]['conv_b'] for n in HEAD_NAMES])
    gn_g_hm = jnp.concatenate([params[n]['gn_gamma'] for n in HEAD_NAMES])
    gn_b_hm = jnp.concatenate([params[n]['gn_beta'] for n in HEAD_NAMES])
    hh, jj, cc = jnp.arange(n_heads), jnp.arange(pn), jnp.arange(pfc)
    perm_ch = (hh[None, :, None] * C + jj[:, None, None] * pfc
               + cc[None, None, :]).reshape(-1)       # new (j,h,c) <- old (h,j,c)
    head_w = head_w_hm[:, perm_ch]
    head_b = head_b_hm[perm_ch]
    gn_g = gn_g_hm[perm_ch]
    gn_b = gn_b_hm[perm_ch]

    # one-hot group matrices for GroupNorm (consecutive groups of pfc channels)
    G = CH // pfc
    g_oh = (jnp.arange(CH)[:, None] // pfc ==
            jnp.arange(G)[None, :]).astype(jnp.float32)              # [CH, G]
    g_oh_t = g_oh.T

    # ----- fold the four 5x5 lane-fusion convs into ONE block conv -------------
    fw = jnp.zeros((5, 5, GF, GF), jnp.float32)

    def _set(fw, w, hin, hout):
        return fw.at[:, :, hin * pfc:(hin + 1) * pfc,
                     hout * pfc:(hout + 1) * pfc].set(w)

    fw = _set(fw, params['fus_L2']['w'], 1, 0)   # l2f += fus_L2(L1g)
    fw = _set(fw, params['fus_L1']['w'], 0, 1)   # l1f += fus_L1(L2g)
    fw = _set(fw, params['fus_L1']['w'], 2, 1)   # l1f += fus_L1(R1g)
    fw = _set(fw, params['fus_R1']['w'], 3, 2)   # r1f += fus_R1(R2g)
    fw = _set(fw, params['fus_R1']['w'], 1, 2)   # r1f += fus_R1(L1g)
    fw = _set(fw, params['fus_R2']['w'], 2, 3)   # r2f += fus_R2(R1g)
    fus_w = fw.reshape(25 * GF, GF)
    fus_b = jnp.concatenate([params['fus_L2']['b'],
                             2.0 * params['fus_L1']['b'],   # conv applied twice
                             2.0 * params['fus_R1']['b'],
                             params['fus_R2']['b']])

    # ----- grouped 1x1 heatmap convs as block-structured matrices --------------
    w1_all = jnp.stack([params['hm_' + n]['w1'] for n in HEAD_NAMES], axis=0)
    eye_h = jnp.eye(n_heads, dtype=jnp.float32)
    eye_p = jnp.eye(pn, dtype=jnp.float32)
    hm_w1 = jnp.einsum('hjc,hg,ji->jhcgi', w1_all, eye_h, eye_p).reshape(CH, NHM)
    hm_w2 = block_diag(*[params['hm_' + n]['w2'].T for n in HEAD_NAMES])  # [GF, NHM]
    hm_b = jnp.concatenate([params['hm_' + n]['b'] for n in HEAD_NAMES])

    # ----- dsnt coordinate matrix [ones; xs; ys] (dsntnn normalized_linspace) ---
    xs = (2.0 * jnp.arange(W, dtype=jnp.float32) - (W - 1)) / W
    ys = (2.0 * jnp.arange(H, dtype=jnp.float32) - (H - 1)) / H
    coord = jnp.stack([jnp.ones((HW,), jnp.float32),
                       jnp.tile(xs, H),
                       jnp.repeat(ys, W)], axis=0)                   # [3, HW]

    # ----- pack all small bias vectors into one resident array -----------------
    PW = max(128, CH)

    def _row(v):
        v = jnp.asarray(v, jnp.float32).reshape(-1)
        return jnp.pad(v, (0, PW - v.shape[0]))

    biases = jnp.stack([_row(bn_bias), _row(lp['conv2_b']), _row(head_b),
                        _row(gn_g), _row(gn_b), _row(fus_b), _row(hm_b),
                        _row(lp['lin1_b']), _row(lp['lin2_b'])], axis=0)  # [9, PW]

    kern = functools.partial(_fused_tail_kernel, H=H, W=W, pn=pn, pfc=pfc,
                             n_heads=n_heads, gn_eps=1e-5)
    hm_all, aux = pl.pallas_call(
        kern,
        out_shape=(jax.ShapeDtypeStruct((B, H, W, NHM), jnp.float32),
                   jax.ShapeDtypeStruct((B, 3, NHM), jnp.float32)),
        grid=(B,),
        in_specs=[
            pl.BlockSpec((1, H, W, Cg), lambda i: (i, 0, 0, 0)),
            pl.BlockSpec((9 * Cg, 32), lambda i: (0, 0)),
            pl.BlockSpec((32, 5), lambda i: (0, 0)),
            pl.BlockSpec((9 * Cg, CH), lambda i: (0, 0)),
            pl.BlockSpec((CH, G), lambda i: (0, 0)),
            pl.BlockSpec((G, CH), lambda i: (0, 0)),
            pl.BlockSpec((25 * GF, GF), lambda i: (0, 0)),
            pl.BlockSpec((CH, NHM), lambda i: (0, 0)),
            pl.BlockSpec((GF, NHM), lambda i: (0, 0)),
            pl.BlockSpec((3, HW), lambda i: (0, 0)),
            pl.BlockSpec((channel, 128), lambda i: (0, 0)),
            pl.BlockSpec((128, 4), lambda i: (0, 0)),
            pl.BlockSpec((9, PW), lambda i: (0, 0)),
        ],
        out_specs=(pl.BlockSpec((1, H, W, NHM), lambda i: (i, 0, 0, 0)),
                   pl.BlockSpec((1, 3, NHM), lambda i: (i, 0, 0))),
        scratch_shapes=[pltpu.VMEM((H + 8, W + 8, Cg), jnp.float32),
                        pltpu.VMEM((H + 4, W + 4, GF), jnp.float32)],
        compiler_params=pltpu.CompilerParams(
            dimension_semantics=("parallel",),
            vmem_limit_bytes=48 * 1024 * 1024),
    )(gf, le_w1, le_w2, head_w, g_oh, g_oh_t, fus_w, hm_w1, hm_w2, coord,
      lin1_w, lin2_w, biases)

    # ----- unpack fused outputs back into per-head module outputs --------------
    pred_exist = aux[:, 2, :4]                                       # [B, 4]
    ex_all = aux[:, 0, :]
    ey_all = aux[:, 1, :]

    def head_out(h):
        co = jnp.stack([ex_all[:, h * pn:(h + 1) * pn],
                        ey_all[:, h * pn:(h + 1) * pn]], axis=-1)    # [B, pn, 2]
        hm = jnp.transpose(hm_all[..., h * pn:(h + 1) * pn], (0, 3, 1, 2))  # NCHW
        return co, hm

    coors_l2, hm_l2 = head_out(0)
    coors_l1, hm_l1 = head_out(1)
    coors_r1, hm_r1 = head_out(2)
    coors_r2, hm_r2 = head_out(3)

    return (pred_exist,
            coors_r2, hm_r2,
            coors_r1, hm_r1,
            coors_l1, hm_l1,
            coors_l2, hm_l2)


# ----------------------------------------------------------------------------
# Deterministic synthetic parameters (shapes from the module's __init__).
# ----------------------------------------------------------------------------
def init_params(key, Cg, pn, pfc, H, W):
    keys = iter(jax.random.split(key, 64))

    def nrm(shape, scale=0.1):
        return (scale * jax.random.normal(next(keys), shape)).astype(jnp.float32)

    C = pn * pfc
    channel = 5 * (H // 2) * (W // 2)   # Lane_exist Linear input dim at this size
    params = {
        'lane_exist': dict(
            conv1_w=nrm((3, 3, Cg, 32)),                # Conv2d(Cg,32,3,dil=4,no bias)
            bn_gamma=(1.0 + nrm((32,))),
            bn_beta=nrm((32,)),
            bn_mean=nrm((32,)),
            bn_var=(1.0 + jnp.abs(nrm((32,)))),
            conv2_w=nrm((1, 1, 32, 5)),                 # Conv2d(32,5,1)
            conv2_b=nrm((5,)),
            lin1_w=nrm((channel, 128)),                 # Linear(channel,128)
            lin1_b=nrm((128,)),
            lin2_w=nrm((128, 4)),                       # Linear(128,4)
            lin2_b=nrm((4,)),
        ),
    }
    for name in HEAD_NAMES:
        params[name] = dict(
            conv_w=nrm((3, 3, Cg, C)),                  # Conv2d(Cg, pn*pfc, 3, pad 1)
            conv_b=nrm((C,)),
            gn_gamma=(1.0 + nrm((C,))),
            gn_beta=nrm((C,)),
        )
        params['fus_' + name] = dict(w=nrm((5, 5, pfc, pfc)), b=nrm((pfc,)))
        params['hm_' + name] = dict(w1=nrm((pn, pfc)),        # grouped 1x1: point half
                                    w2=nrm((pn, pfc)),        # fused-global half
                                    b=nrm((pn,)))
    return params


if __name__ == "__main__":
    B, Cg, H, W = 2, 16, 8, 8       # global_feature: [B, Cg, H, W] (NCHW)
    pn, pfc = 8, 4                  # point_number, point_feature_channels

    x = jax.random.normal(jax.random.PRNGKey(0), (B, Cg, H, W), dtype=jnp.float32)
    params = init_params(jax.random.PRNGKey(1), Cg, pn, pfc, H, W)

    fwd = jax.jit(functools.partial(fushion_lane_detection_forward, pn=pn, pfc=pfc))
    outs = fwd(params, x)
    jax.block_until_ready(outs)

    # sanity on shapes
    assert outs[0].shape == (B, 4)
    assert outs[1].shape == (B, pn, 2) and outs[2].shape == (B, pn, H, W)
    assert outs[3].shape == (B, pn, 2) and outs[4].shape == (B, pn, H, W)
    assert outs[5].shape == (B, pn, 2) and outs[6].shape == (B, pn, H, W)
    assert outs[7].shape == (B, pn, 2) and outs[8].shape == (B, pn, H, W)
    print("KERNEL_OK")
</pallas_src>

<mosaic_0001>
module attributes {stable_mosaic.version = 11 : i64} {
  func.func @_fused_tail_kernel(%arg0: i32, %arg1: memref<1x8x8x16xf32, #tpu.memory_space<vmem>>, %arg2: memref<144x32xf32, #tpu.memory_space<vmem>>, %arg3: memref<32x5xf32, #tpu.memory_space<vmem>>, %arg4: memref<144x128xf32, #tpu.memory_space<vmem>>, %arg5: memref<128x32xf32, #tpu.memory_space<vmem>>, %arg6: memref<32x128xf32, #tpu.memory_space<vmem>>, %arg7: memref<400x16xf32, #tpu.memory_space<vmem>>, %arg8: memref<128x32xf32, #tpu.memory_space<vmem>>, %arg9: memref<16x32xf32, #tpu.memory_space<vmem>>, %arg10: memref<3x64xf32, #tpu.memory_space<vmem>>, %arg11: memref<80x128xf32, #tpu.memory_space<vmem>>, %arg12: memref<128x4xf32, #tpu.memory_space<vmem>>, %arg13: memref<9x128xf32, #tpu.memory_space<vmem>>, %arg14: memref<1x8x8x32xf32, #tpu.memory_space<vmem>>, %arg15: memref<1x3x32xf32, #tpu.memory_space<vmem>>, %arg16: memref<16x16x16xf32, #tpu.memory_space<vmem>>, %arg17: memref<12x12x16xf32, #tpu.memory_space<vmem>>) attributes {dimension_semantics = [#tpu.dimension_semantics<parallel>], iteration_bounds = array<i64: 2>, scalar_prefetch = 0 : i64, scratch_operands = 2 : i64, tpu.core_type = #tpu.core_type<tc>, window_params = [{transform_indices = @transform_0, window_bounds = array<i64: 1, 8, 8, 16>}, {pipeline_mode = #tpu.pipeline_mode<synchronous>, transform_indices = @transform_1, window_bounds = array<i64: 144, 32>}, {pipeline_mode = #tpu.pipeline_mode<synchronous>, transform_indices = @transform_2, window_bounds = array<i64: 32, 5>}, {pipeline_mode = #tpu.pipeline_mode<synchronous>, transform_indices = @transform_3, window_bounds = array<i64: 144, 128>}, {pipeline_mode = #tpu.pipeline_mode<synchronous>, transform_indices = @transform_4, window_bounds = array<i64: 128, 32>}, {pipeline_mode = #tpu.pipeline_mode<synchronous>, transform_indices = @transform_5, window_bounds = array<i64: 32, 128>}, {pipeline_mode = #tpu.pipeline_mode<synchronous>, transform_indices = @transform_6, window_bounds = array<i64: 400, 16>}, {pipeline_mode = #tpu.pipeline_mode<synchronous>, transform_indices = @transform_7, window_bounds = array<i64: 128, 32>}, {pipeline_mode = #tpu.pipeline_mode<synchronous>, transform_indices = @transform_8, window_bounds = array<i64: 16, 32>}, {pipeline_mode = #tpu.pipeline_mode<synchronous>, transform_indices = @transform_9, window_bounds = array<i64: 3, 64>}, {pipeline_mode = #tpu.pipeline_mode<synchronous>, transform_indices = @transform_10, window_bounds = array<i64: 80, 128>}, {pipeline_mode = #tpu.pipeline_mode<synchronous>, transform_indices = @transform_11, window_bounds = array<i64: 128, 4>}, {pipeline_mode = #tpu.pipeline_mode<synchronous>, transform_indices = @transform_12, window_bounds = array<i64: 9, 128>}, {transform_indices = @transform_13, window_bounds = array<i64: 1, 8, 8, 32>}, {transform_indices = @transform_14, window_bounds = array<i64: 1, 3, 32>}]} {
    %c0 = arith.constant 0 : index
    %c0_0 = arith.constant 0 : index
    %0 = vector.load %arg13[%c0, %c0_0] : memref<9x128xf32, #tpu.memory_space<vmem>>, vector<9x128xf32>
    %1 = vector.extract_strided_slice %0 {offsets = [0, 0], sizes = [1, 32], strides = [1, 1]} : vector<9x128xf32> to vector<1x32xf32>
    %2 = vector.extract_strided_slice %0 {offsets = [1, 0], sizes = [1, 5], strides = [1, 1]} : vector<9x128xf32> to vector<1x5xf32>
    %3 = vector.extract_strided_slice %0 {offsets = [2, 0], sizes = [1, 128], strides = [1, 1]} : vector<9x128xf32> to vector<1x128xf32>
    %4 = vector.extract_strided_slice %0 {offsets = [3, 0], sizes = [1, 128], strides = [1, 1]} : vector<9x128xf32> to vector<1x128xf32>
    %5 = vector.extract_strided_slice %0 {offsets = [4, 0], sizes = [1, 128], strides = [1, 1]} : vector<9x128xf32> to vector<1x128xf32>
    %6 = vector.extract_strided_slice %0 {offsets = [5, 0], sizes = [1, 16], strides = [1, 1]} : vector<9x128xf32> to vector<1x16xf32>
    %7 = vector.extract_strided_slice %0 {offsets = [6, 0], sizes = [1, 32], strides = [1, 1]} : vector<9x128xf32> to vector<1x32xf32>
    %8 = vector.extract_strided_slice %0 {offsets = [7, 0], sizes = [1, 128], strides = [1, 1]} : vector<9x128xf32> to vector<1x128xf32>
    %9 = vector.extract_strided_slice %0 {offsets = [8, 0], sizes = [1, 4], strides = [1, 1]} : vector<9x128xf32> to vector<1x4xf32>
    %cst = arith.constant 0.000000e+00 : f32
    %10 = vector.broadcast %cst : f32 to vector<4x16x16xf32>
    %c0_1 = arith.constant 0 : index
    %c0_2 = arith.constant 0 : index
    %c0_3 = arith.constant 0 : index
    %11 = vector.load %arg16[%c0_1, %c0_2, %c0_3] : memref<16x16x16xf32, #tpu.memory_space<vmem>>, vector<4x16x16xf32>
    tpu.vector_store %arg16[%c0_1, %c0_2, %c0_3], %10 {strides = array<i32>} : memref<16x16x16xf32, #tpu.memory_space<vmem>>, vector<4x16x16xf32>,
    %c12 = arith.constant 12 : index
    %c0_4 = arith.constant 0 : index
    %c0_5 = arith.constant 0 : index
    %12 = vector.load %arg16[%c12, %c0_4, %c0_5] : memref<16x16x16xf32, #tpu.memory_space<vmem>>, vector<4x16x16xf32>
    tpu.vector_store %arg16[%c12, %c0_4, %c0_5], %10 {strides = array<i32>} : memref<16x16x16xf32, #tpu.memory_space<vmem>>, vector<4x16x16xf32>,
    %cst_6 = arith.constant 0.000000e+00 : f32
    %13 = vector.broadcast %cst_6 : f32 to vector<8x4x16xf32>
    %c4 = arith.constant 4 : index
    %c0_7 = arith.constant 0 : index
    %c0_8 = arith.constant 0 : index
    %14 = vector.load %arg16[%c4, %c0_7, %c0_8] : memref<16x16x16xf32, #tpu.memory_space<vmem>>, vector<8x4x16xf32>
    tpu.vector_store %arg16[%c4, %c0_7, %c0_8], %13 {strides = array<i32>} : memref<16x16x16xf32, #tpu.memory_space<vmem>>, vector<8x4x16xf32>,
    %c4_9 = arith.constant 4 : index
    %c12_10 = arith.constant 12 : index
    %c0_11 = arith.constant 0 : index
    %15 = vector.load %arg16[%c4_9, %c12_10, %c0_11] : memref<16x16x16xf32, #tpu.memory_space<vmem>>, vector<8x4x16xf32>
    tpu.vector_store %arg16[%c4_9, %c12_10, %c0_11], %13 {strides = array<i32>} : memref<16x16x16xf32, #tpu.memory_space<vmem>>, vector<8x4x16xf32>,
    %c0_12 = arith.constant 0 : index
    %c0_13 = arith.constant 0 : index
    %c0_14 = arith.constant 0 : index
    %c0_15 = arith.constant 0 : index
    %16 = vector.load %arg1[%c0_12, %c0_13, %c0_14, %c0_15] : memref<1x8x8x16xf32, #tpu.memory_space<vmem>>, vector<1x8x8x16xf32>
    %17 = vector.shape_cast %16 : vector<1x8x8x16xf32> to vector<8x8x16xf32>
    %c4_16 = arith.constant 4 : index
    %c4_17 = arith.constant 4 : index
    %c0_18 = arith.constant 0 : index
    %18 = vector.load %arg16[%c4_16, %c4_17, %c0_18] : memref<16x16x16xf32, #tpu.memory_space<vmem>>, vector<8x8x16xf32>
    tpu.vector_store %arg16[%c4_16, %c4_17, %c0_18], %17 {strides = array<i32>} : memref<16x16x16xf32, #tpu.memory_space<vmem>>, vector<8x8x16xf32>,
    %c0_19 = arith.constant 0 : index
    %c0_20 = arith.constant 0 : index
    %c0_21 = arith.constant 0 : index
    %19 = vector.load %arg16[%c0_19, %c0_20, %c0_21] : memref<16x16x16xf32, #tpu.memory_space<vmem>>, vector<8x8x16xf32>
    %20 = vector.shape_cast %19 : vector<8x8x16xf32> to vector<64x16xf32>
    %c0_22 = arith.constant 0 : index
    %c4_23 = arith.constant 4 : index
    %c0_24 = arith.constant 0 : index
    %21 = vector.load %arg16[%c0_22, %c4_23, %c0_24] : memref<16x16x16xf32, #tpu.memory_space<vmem>>, vector<8x8x16xf32>
    %22 = vector.shape_cast %21 : vector<8x8x16xf32> to vector<64x16xf32>
    %c0_25 = arith.constant 0 : index
    %c8 = arith.constant 8 : index
    %c0_26 = arith.constant 0 : index
    %23 = vector.load %arg16[%c0_25, %c8, %c0_26] : memref<16x16x16xf32, #tpu.memory_space<vmem>>, vector<8x8x16xf32>
    %24 = vector.shape_cast %23 : vector<8x8x16xf32> to vector<64x16xf32>
    %c4_27 = arith.constant 4 : index
    %c0_28 = arith.constant 0 : index
    %c0_29 = arith.constant 0 : index
    %25 = vector.load %arg16[%c4_27, %c0_28, %c0_29] : memref<16x16x16xf32, #tpu.memory_space<vmem>>, vector<8x8x16xf32>
    %26 = vector.shape_cast %25 : vector<8x8x16xf32> to vector<64x16xf32>
    %c4_30 = arith.constant 4 : index
    %c4_31 = arith.constant 4 : index
    %c0_32 = arith.constant 0 : index
    %27 = vector.load %arg16[%c4_30, %c4_31, %c0_32] : memref<16x16x16xf32, #tpu.memory_space<vmem>>, vector<8x8x16xf32>
    %28 = vector.shape_cast %27 : vector<8x8x16xf32> to vector<64x16xf32>
    %c4_33 = arith.constant 4 : index
    %c8_34 = arith.constant 8 : index
    %c0_35 = arith.constant 0 : index
    %29 = vector.load %arg16[%c4_33, %c8_34, %c0_35] : memref<16x16x16xf32, #tpu.memory_space<vmem>>, vector<8x8x16xf32>
    %30 = vector.shape_cast %29 : vector<8x8x16xf32> to vector<64x16xf32>
    %c8_36 = arith.constant 8 : index
    %c0_37 = arith.constant 0 : index
    %c0_38 = arith.constant 0 : index
    %31 = vector.load %arg16[%c8_36, %c0_37, %c0_38] : memref<16x16x16xf32, #tpu.memory_space<vmem>>, vector<8x8x16xf32>
    %32 = vector.shape_cast %31 : vector<8x8x16xf32> to vector<64x16xf32>
    %c8_39 = arith.constant 8 : index
    %c4_40 = arith.constant 4 : index
    %c0_41 = arith.constant 0 : index
    %33 = vector.load %arg16[%c8_39, %c4_40, %c0_41] : memref<16x16x16xf32, #tpu.memory_space<vmem>>, vector<8x8x16xf32>
    %34 = vector.shape_cast %33 : vector<8x8x16xf32> to vector<64x16xf32>
    %c8_42 = arith.constant 8 : index
    %c8_43 = arith.constant 8 : index
    %c0_44 = arith.constant 0 : index
    %35 = vector.load %arg16[%c8_42, %c8_43, %c0_44] : memref<16x16x16xf32, #tpu.memory_space<vmem>>, vector<8x8x16xf32>
    %36 = vector.shape_cast %35 : vector<8x8x16xf32> to vector<64x16xf32>
    %37 = tpu.concatenate %20, %22, %24, %26, %28, %30, %32, %34, %36 in 1 : vector<64x16xf32>, vector<64x16xf32>, vector<64x16xf32>, vector<64x16xf32>, vector<64x16xf32>, vector<64x16xf32>, vector<64x16xf32>, vector<64x16xf32>, vector<64x16xf32> -> vector<64x144xf32>
    %c0_45 = arith.constant 0 : index
    %c0_46 = arith.constant 0 : index
    %38 = vector.load %arg2[%c0_45, %c0_46] : memref<144x32xf32, #tpu.memory_space<vmem>>, vector<144x32xf32>
    %cst_47 = arith.constant dense<0.000000e+00> : vector<64x32xf32>
    %39 = tpu.matmul %37, %38, %cst_47 {dimension_numbers = #tpu.dot_dimension_numbers<[1], [0], [0], [1], [0, 0, 1, 1], [], []>} : vector<64x144xf32>, vector<144x32xf32>, vector<64x32xf32> -> vector<64x32xf32>
    %40 = vector.broadcast %1 : vector<1x32xf32> to vector<64x32xf32>
    %41 = arith.addf %39, %40 : vector<64x32xf32>
    %cst_48 = arith.constant 0.000000e+00 : f32
    %42 = vector.broadcast %cst_48 : f32 to vector<64x32xf32>
    %43 = arith.maximumf %41, %42 : vector<64x32xf32>
    %c0_49 = arith.constant 0 : index
    %c0_50 = arith.constant 0 : index
    %44 = vector.load %arg3[%c0_49, %c0_50] : memref<32x5xf32, #tpu.memory_space<vmem>>, vector<32x5xf32>
    %cst_51 = arith.constant dense<0.000000e+00> : vector<64x5xf32>
    %45 = tpu.matmul %43, %44, %cst_51 {dimension_numbers = #tpu.dot_dimension_numbers<[1], [0], [0], [1], [0, 0, 1, 1], [], []>} : vector<64x32xf32>, vector<32x5xf32>, vector<64x5xf32> -> vector<64x5xf32>
    %46 = vector.broadcast %2 : vector<1x5xf32> to vector<64x5xf32>
    %47 = arith.addf %45, %46 : vector<64x5xf32>
    %cst_52 = arith.constant dense<0xFF800000> : vector<64xf32>
    %48 = vector.multi_reduction <maximumf>, %47, %cst_52 [1] : vector<64x5xf32> to vector<64xf32>
    %49 = vector.shape_cast %48 : vector<64xf32> to vector<64x1xf32>
    %50 = vector.broadcast %49 : vector<64x1xf32> to vector<64x5xf32>
    %51 = arith.subf %47, %50 : vector<64x5xf32>
    %52 = math.exp %51 : vector<64x5xf32>
    %cst_53 = arith.constant dense<0.000000e+00> : vector<64xf32>
    %53 = vector.multi_reduction <add>, %52, %cst_53 [1] : vector<64x5xf32> to vector<64xf32>
    %54 = vector.shape_cast %53 : vector<64xf32> to vector<64x1xf32>
    %55 = tpu.reciprocal %54 {approx = true} : vector<64x1xf32> -> vector<64x1xf32>
    %56 = arith.mulf %54, %55 : vector<64x1xf32>
    %cst_54 = arith.constant 2.000000e+00 : f32
    %57 = vector.broadcast %cst_54 : f32 to vector<64x1xf32>
    %58 = arith.subf %57, %56 : vector<64x1xf32>
    %59 = arith.mulf %55, %58 : vector<64x1xf32>
    %60 = vector.broadcast %59 : vector<64x1xf32> to vector<64x5xf32>
    %61 = arith.mulf %52, %60 : vector<64x5xf32>
    %62 = vector.extract_strided_slice %61 {offsets = [0, 0], sizes = [8, 5], strides = [1, 1]} : vector<64x5xf32> to vector<8x5xf32>
    %63 = vector.extract_strided_slice %61 {offsets = [8, 0], sizes = [8, 5], strides = [1, 1]} : vector<64x5xf32> to vector<8x5xf32>
    %64 = arith.maximumf %62, %63 : vector<8x5xf32>
    %65 = vector.extract_strided_slice %64 {offsets = [0, 0], sizes = [1, 5], strides = [1, 1]} : vector<8x5xf32> to vector<1x5xf32>
    %66 = vector.extract_strided_slice %64 {offsets = [1, 0], sizes = [1, 5], strides = [1, 1]} : vector<8x5xf32> to vector<1x5xf32>
    %67 = arith.maximumf %65, %66 : vector<1x5xf32>
    %68 = vector.extract_strided_slice %64 {offsets = [2, 0], sizes = [1, 5], strides = [1, 1]} : vector<8x5xf32> to vector<1x5xf32>
    %69 = vector.extract_strided_slice %64 {offsets = [3, 0], sizes = [1, 5], strides = [1, 1]} : vector<8x5xf32> to vector<1x5xf32>
    %70 = arith.maximumf %68, %69 : vector<1x5xf32>
    %71 = vector.extract_strided_slice %64 {offsets = [4, 0], sizes = [1, 5], strides = [1, 1]} : vector<8x5xf32> to vector<1x5xf32>
    %72 = vector.extract_strided_slice %64 {offsets = [5, 0], sizes = [1, 5], strides = [1, 1]} : vector<8x5xf32> to vector<1x5xf32>
    %73 = arith.maximumf %71, %72 : vector<1x5xf32>
    %74 = vector.extract_strided_slice %64 {offsets = [6, 0], sizes = [1, 5], strides = [1, 1]} : vector<8x5xf32> to vector<1x5xf32>
    %75 = vector.extract_strided_slice %64 {offsets = [7, 0], sizes = [1, 5], strides = [1, 1]} : vector<8x5xf32> to vector<1x5xf32>
    %76 = arith.maximumf %74, %75 : vector<1x5xf32>
    %77 = vector.extract_strided_slice %61 {offsets = [16, 0], sizes = [8, 5], strides = [1, 1]} : vector<64x5xf32> to vector<8x5xf32>
    %78 = vector.extract_strided_slice %61 {offsets = [24, 0], sizes = [8, 5], strides = [1, 1]} : vector<64x5xf32> to vector<8x5xf32>
    %79 = arith.maximumf %77, %78 : vector<8x5xf32>
    %80 = vector.extract_strided_slice %79 {offsets = [0, 0], sizes = [1, 5], strides = [1, 1]} : vector<8x5xf32> to vector<1x5xf32>
    %81 = vector.extract_strided_slice %79 {offsets = [1, 0], sizes = [1, 5], strides = [1, 1]} : vector<8x5xf32> to vector<1x5xf32>
    %82 = arith.maximumf %80, %81 : vector<1x5xf32>
    %83 = vector.extract_strided_slice %79 {offsets = [2, 0], sizes = [1, 5], strides = [1, 1]} : vector<8x5xf32> to vector<1x5xf32>
    %84 = vector.extract_strided_slice %79 {offsets = [3, 0], sizes = [1, 5], strides = [1, 1]} : vector<8x5xf32> to vector<1x5xf32>
    %85 = arith.maximumf %83, %84 : vector<1x5xf32>
    %86 = vector.extract_strided_slice %79 {offsets = [4, 0], sizes = [1, 5], strides = [1, 1]} : vector<8x5xf32> to vector<1x5xf32>
    %87 = vector.extract_strided_slice %79 {offsets = [5, 0], sizes = [1, 5], strides = [1, 1]} : vector<8x5xf32> to vector<1x5xf32>
    %88 = arith.maximumf %86, %87 : vector<1x5xf32>
    %89 = vector.extract_strided_slice %79 {offsets = [6, 0], sizes = [1, 5], strides = [1, 1]} : vector<8x5xf32> to vector<1x5xf32>
    %90 = vector.extract_strided_slice %79 {offsets = [7, 0], sizes = [1, 5], strides = [1, 1]} : vector<8x5xf32> to vector<1x5xf32>
    %91 = arith.maximumf %89, %90 : vector<1x5xf32>
    %92 = vector.extract_strided_slice %61 {offsets = [32, 0], sizes = [8, 5], strides = [1, 1]} : vector<64x5xf32> to vector<8x5xf32>
    %93 = vector.extract_strided_slice %61 {offsets = [40, 0], sizes = [8, 5], strides = [1, 1]} : vector<64x5xf32> to vector<8x5xf32>
    %94 = arith.maximumf %92, %93 : vector<8x5xf32>
    %95 = vector.extract_strided_slice %94 {offsets = [0, 0], sizes = [1, 5], strides = [1, 1]} : vector<8x5xf32> to vector<1x5xf32>
    %96 = vector.extract_strided_slice %94 {offsets = [1, 0], sizes = [1, 5], strides = [1, 1]} : vector<8x5xf32> to vector<1x5xf32>
    %97 = arith.maximumf %95, %96 : vector<1x5xf32>
    %98 = vector.extract_strided_slice %94 {offsets = [2, 0], sizes = [1, 5], strides = [1, 1]} : vector<8x5xf32> to vector<1x5xf32>
    %99 = vector.extract_strided_slice %94 {offsets = [3, 0], sizes = [1, 5], strides = [1, 1]} : vector<8x5xf32> to vector<1x5xf32>
    %100 = arith.maximumf %98, %99 : vector<1x5xf32>
    %101 = vector.extract_strided_slice %94 {offsets = [4, 0], sizes = [1, 5], strides = [1, 1]} : vector<8x5xf32> to vector<1x5xf32>
    %102 = vector.extract_strided_slice %94 {offsets = [5, 0], sizes = [1, 5], strides = [1, 1]} : vector<8x5xf32> to vector<1x5xf32>
    %103 = arith.maximumf %101, %102 : vector<1x5xf32>
    %104 = vector.extract_strided_slice %94 {offsets = [6, 0], sizes = [1, 5], strides = [1, 1]} : vector<8x5xf32> to vector<1x5xf32>
    %105 = vector.extract_strided_slice %94 {offsets = [7, 0], sizes = [1, 5], strides = [1, 1]} : vector<8x5xf32> to vector<1x5xf32>
    %106 = arith.maximumf %104, %105 : vector<1x5xf32>
    %107 = vector.extract_strided_slice %61 {offsets = [48, 0], sizes = [8, 5], strides = [1, 1]} : vector<64x5xf32> to vector<8x5xf32>
    %108 = vector.extract_strided_slice %61 {offsets = [56, 0], sizes = [8, 5], strides = [1, 1]} : vector<64x5xf32> to vector<8x5xf32>
    %109 = arith.maximumf %107, %108 : vector<8x5xf32>
    %110 = vector.extract_strided_slice %109 {offsets = [0, 0], sizes = [1, 5], strides = [1, 1]} : vector<8x5xf32> to vector<1x5xf32>
    %111 = vector.extract_strided_slice %109 {offsets = [1, 0], sizes = [1, 5], strides = [1, 1]} : vector<8x5xf32> to vector<1x5xf32>
    %112 = arith.maximumf %110, %111 : vector<1x5xf32>
    %113 = vector.extract_strided_slice %109 {offsets = [2, 0], sizes = [1, 5], strides = [1, 1]} : vector<8x5xf32> to vector<1x5xf32>
    %114 = vector.extract_strided_slice %109 {offsets = [3, 0], sizes = [1, 5], strides = [1, 1]} : vector<8x5xf32> to vector<1x5xf32>
    %115 = arith.maximumf %113, %114 : vector<1x5xf32>
    %116 = vector.extract_strided_slice %109 {offsets = [4, 0], sizes = [1, 5], strides = [1, 1]} : vector<8x5xf32> to vector<1x5xf32>
    %117 = vector.extract_strided_slice %109 {offsets = [5, 0], sizes = [1, 5], strides = [1, 1]} : vector<8x5xf32> to vector<1x5xf32>
    %118 = arith.maximumf %116, %117 : vector<1x5xf32>
    %119 = vector.extract_strided_slice %109 {offsets = [6, 0], sizes = [1, 5], strides = [1, 1]} : vector<8x5xf32> to vector<1x5xf32>
    %120 = vector.extract_strided_slice %109 {offsets = [7, 0], sizes = [1, 5], strides = [1, 1]} : vector<8x5xf32> to vector<1x5xf32>
    %121 = arith.maximumf %119, %120 : vector<1x5xf32>
    %122 = tpu.concatenate %67, %70, %73, %76, %82, %85, %88, %91, %97, %100, %103, %106, %112, %115, %118, %121 in 1 : vector<1x5xf32>, vector<1x5xf32>, vector<1x5xf32>, vector<1x5xf32>, vector<1x5xf32>, vector<1x5xf32>, vector<1x5xf32>, vector<1x5xf32>, vector<1x5xf32>, vector<1x5xf32>, vector<1x5xf32>, vector<1x5xf32>, vector<1x5xf32>, vector<1x5xf32>, vector<1x5xf32>, vector<1x5xf32> -> vector<1x80xf32>
    %c0_55 = arith.constant 0 : index
    %c0_56 = arith.constant 0 : index
    %123 = vector.load %arg11[%c0_55, %c0_56] : memref<80x128xf32, #tpu.memory_space<vmem>>, vector<80x128xf32>
    %cst_57 = arith.constant dense<0.000000e+00> : vector<1x128xf32>
    %124 = tpu.matmul %122, %123, %cst_57 {dimension_numbers = #tpu.dot_dimension_numbers<[1], [0], [0], [1], [0, 0, 1, 1], [], []>} : vector<1x80xf32>, vector<80x128xf32>, vector<1x128xf32> -> vector<1x128xf32>
    %125 = arith.addf %124, %8 : vector<1x128xf32>
    %cst_58 = arith.constant 0.000000e+00 : f32
    %126 = vector.broadcast %cst_58 : f32 to vector<1x128xf32>
    %127 = arith.maximumf %125, %126 : vector<1x128xf32>
    %c0_59 = arith.constant 0 : index
    %c0_60 = arith.constant 0 : index
    %128 = vector.load %arg12[%c0_59, %c0_60] : memref<128x4xf32, #tpu.memory_space<vmem>>, vector<128x4xf32>
    %cst_61 = arith.constant dense<0.000000e+00> : vector<1x4xf32>
    %129 = tpu.matmul %127, %128, %cst_61 {dimension_numbers = #tpu.dot_dimension_numbers<[1], [0], [0], [1], [0, 0, 1, 1], [], []>} : vector<1x128xf32>, vector<128x4xf32>, vector<1x4xf32> -> vector<1x4xf32>
    %130 = arith.addf %129, %9 : vector<1x4xf32>
    %131 = arith.negf %130 : vector<1x4xf32>
    %132 = math.exp %131 : vector<1x4xf32>
    %cst_62 = arith.constant 1.000000e+00 : f32
    %133 = vector.broadcast %cst_62 : f32 to vector<1x4xf32>
    %134 = arith.addf %133, %132 : vector<1x4xf32>
    %135 = arith.divf %133, %134 : vector<1x4xf32>
    %c3 = arith.constant 3 : index
    %c3_63 = arith.constant 3 : index
    %c0_64 = arith.constant 0 : index
    %136 = vector.load %arg16[%c3, %c3_63, %c0_64] : memref<16x16x16xf32, #tpu.memory_space<vmem>>, vector<8x8x16xf32>
    %137 = vector.shape_cast %136 : vector<8x8x16xf32> to vector<64x16xf32>
    %c3_65 = arith.constant 3 : index
    %c4_66 = arith.constant 4 : index
    %c0_67 = arith.constant 0 : index
    %138 = vector.load %arg16[%c3_65, %c4_66, %c0_67] : memref<16x16x16xf32, #tpu.memory_space<vmem>>, vector<8x8x16xf32>
    %139 = vector.shape_cast %138 : vector<8x8x16xf32> to vector<64x16xf32>
    %c3_68 = arith.constant 3 : index
    %c5 = arith.constant 5 : index
    %c0_69 = arith.constant 0 : index
    %140 = vector.load %arg16[%c3_68, %c5, %c0_69] : memref<16x16x16xf32, #tpu.memory_space<vmem>>, vector<8x8x16xf32>
    %141 = vector.shape_cast %140 : vector<8x8x16xf32> to vector<64x16xf32>
    %c4_70 = arith.constant 4 : index
    %c3_71 = arith.constant 3 : index
    %c0_72 = arith.constant 0 : index
    %142 = vector.load %arg16[%c4_70, %c3_71, %c0_72] : memref<16x16x16xf32, #tpu.memory_space<vmem>>, vector<8x8x16xf32>
    %143 = vector.shape_cast %142 : vector<8x8x16xf32> to vector<64x16xf32>
    %c4_73 = arith.constant 4 : index
    %c4_74 = arith.constant 4 : index
    %c0_75 = arith.constant 0 : index
    %144 = vector.load %arg16[%c4_73, %c4_74, %c0_75] : memref<16x16x16xf32, #tpu.memory_space<vmem>>, vector<8x8x16xf32>
    %145 = vector.shape_cast %144 : vector<8x8x16xf32> to vector<64x16xf32>
    %c4_76 = arith.constant 4 : index
    %c5_77 = arith.constant 5 : index
    %c0_78 = arith.constant 0 : index
    %146 = vector.load %arg16[%c4_76, %c5_77, %c0_78] : memref<16x16x16xf32, #tpu.memory_space<vmem>>, vector<8x8x16xf32>
    %147 = vector.shape_cast %146 : vector<8x8x16xf32> to vector<64x16xf32>
    %c5_79 = arith.constant 5 : index
    %c3_80 = arith.constant 3 : index
    %c0_81 = arith.constant 0 : index
    %148 = vector.load %arg16[%c5_79, %c3_80, %c0_81] : memref<16x16x16xf32, #tpu.memory_space<vmem>>, vector<8x8x16xf32>
    %149 = vector.shape_cast %148 : vector<8x8x16xf32> to vector<64x16xf32>
    %c5_82 = arith.constant 5 : index
    %c4_83 = arith.constant 4 : index
    %c0_84 = arith.constant 0 : index
    %150 = vector.load %arg16[%c5_82, %c4_83, %c0_84] : memref<16x16x16xf32, #tpu.memory_space<vmem>>, vector<8x8x16xf32>
    %151 = vector.shape_cast %150 : vector<8x8x16xf32> to vector<64x16xf32>
    %c5_85 = arith.constant 5 : index
    %c5_86 = arith.constant 5 : index
    %c0_87 = arith.constant 0 : index
    %152 = vector.load %arg16[%c5_85, %c5_86, %c0_87] : memref<16x16x16xf32, #tpu.memory_space<vmem>>, vector<8x8x16xf32>
    %153 = vector.shape_cast %152 : vector<8x8x16xf32> to vector<64x16xf32>
    %154 = tpu.concatenate %137, %139, %141, %143, %145, %147, %149, %151, %153 in 1 : vector<64x16xf32>, vector<64x16xf32>, vector<64x16xf32>, vector<64x16xf32>, vector<64x16xf32>, vector<64x16xf32>, vector<64x16xf32>, vector<64x16xf32>, vector<64x16xf32> -> vector<64x144xf32>
    %c0_88 = arith.constant 0 : index
    %c0_89 = arith.constant 0 : index
    %155 = vector.load %arg4[%c0_88, %c0_89] : memref<144x128xf32, #tpu.memory_space<vmem>>, vector<144x128xf32>
    %cst_90 = arith.constant dense<0.000000e+00> : vector<64x128xf32>
    %156 = tpu.matmul %154, %155, %cst_90 {dimension_numbers = #tpu.dot_dimension_numbers<[1], [0], [0], [1], [0, 0, 1, 1], [], []>} : vector<64x144xf32>, vector<144x128xf32>, vector<64x128xf32> -> vector<64x128xf32>
    %157 = vector.broadcast %3 : vector<1x128xf32> to vector<64x128xf32>
    %158 = arith.addf %156, %157 : vector<64x128xf32>
    %cst_91 = arith.constant dense<0.000000e+00> : vector<128xf32>
    %159 = vector.multi_reduction <add>, %158, %cst_91 [0] : vector<64x128xf32> to vector<128xf32>
    %160 = vector.shape_cast %159 : vector<128xf32> to vector<1x128xf32>
    %c0_92 = arith.constant 0 : index
    %c0_93 = arith.constant 0 : index
    %161 = vector.load %arg5[%c0_92, %c0_93] : memref<128x32xf32, #tpu.memory_space<vmem>>, vector<128x32xf32>
    %cst_94 = arith.constant dense<0.000000e+00> : vector<1x32xf32>
    %162 = tpu.matmul %160, %161, %cst_94 {dimension_numbers = #tpu.dot_dimension_numbers<[1], [0], [0], [1], [0, 0, 1, 1], [], []>} : vector<1x128xf32>, vector<128x32xf32>, vector<1x32xf32> -> vector<1x32xf32>
    %cst_95 = arith.constant 3.906250e-03 : f32
    %163 = vector.broadcast %cst_95 : f32 to vector<1x32xf32>
    %164 = arith.mulf %162, %163 : vector<1x32xf32>
    %c0_96 = arith.constant 0 : index
    %c0_97 = arith.constant 0 : index
    %165 = vector.load %arg6[%c0_96, %c0_97] : memref<32x128xf32, #tpu.memory_space<vmem>>, vector<32x128xf32>
    %cst_98 = arith.constant dense<0.000000e+00> : vector<1x128xf32>
    %166 = tpu.matmul %164, %165, %cst_98 {dimension_numbers = #tpu.dot_dimension_numbers<[1], [0], [0], [1], [0, 0, 1, 1], [], []>} : vector<1x32xf32>, vector<32x128xf32>, vector<1x128xf32> -> vector<1x128xf32>
    %167 = vector.broadcast %166 : vector<1x128xf32> to vector<64x128xf32>
    %168 = arith.subf %158, %167 : vector<64x128xf32>
    %169 = arith.mulf %168, %168 : vector<64x128xf32>
    %cst_99 = arith.constant dense<0.000000e+00> : vector<128xf32>
    %170 = vector.multi_reduction <add>, %169, %cst_99 [0] : vector<64x128xf32> to vector<128xf32>
    %171 = vector.shape_cast %170 : vector<128xf32> to vector<1x128xf32>
    %c0_100 = arith.constant 0 : index
    %c0_101 = arith.constant 0 : index
    %172 = vector.load %arg5[%c0_100, %c0_101] : memref<128x32xf32, #tpu.memory_space<vmem>>, vector<128x32xf32>
    %cst_102 = arith.constant dense<0.000000e+00> : vector<1x32xf32>
    %173 = tpu.matmul %171, %172, %cst_102 {dimension_numbers = #tpu.dot_dimension_numbers<[1], [0], [0], [1], [0, 0, 1, 1], [], []>} : vector<1x128xf32>, vector<128x32xf32>, vector<1x32xf32> -> vector<1x32xf32>
    %cst_103 = arith.constant 3.906250e-03 : f32
    %174 = vector.broadcast %cst_103 : f32 to vector<1x32xf32>
    %175 = arith.mulf %173, %174 : vector<1x32xf32>
    %c0_104 = arith.constant 0 : index
    %c0_105 = arith.constant 0 : index
    %176 = vector.load %arg6[%c0_104, %c0_105] : memref<32x128xf32, #tpu.memory_space<vmem>>, vector<32x128xf32>
    %cst_106 = arith.constant dense<0.000000e+00> : vector<1x128xf32>
    %177 = tpu.matmul %175, %176, %cst_106 {dimension_numbers = #tpu.dot_dimension_numbers<[1], [0], [0], [1], [0, 0, 1, 1], [], []>} : vector<1x32xf32>, vector<32x128xf32>, vector<1x128xf32> -> vector<1x128xf32>
    %cst_107 = arith.constant 9.99999974E-6 : f32
    %178 = vector.broadcast %cst_107 : f32 to vector<1x128xf32>
    %179 = arith.addf %177, %178 : vector<1x128xf32>
    %180 = math.rsqrt %179 : vector<1x128xf32>
    %181 = vector.broadcast %180 : vector<1x128xf32> to vector<64x128xf32>
    %182 = arith.mulf %168, %181 : vector<64x128xf32>
    %183 = vector.broadcast %4 : vector<1x128xf32> to vector<64x128xf32>
    %184 = arith.mulf %182, %183 : vector<64x128xf32>
    %185 = vector.broadcast %5 : vector<1x128xf32> to vector<64x128xf32>
    %186 = arith.addf %184, %185 : vector<64x128xf32>
    %cst_108 = arith.constant 0.000000e+00 : f32
    %187 = vector.broadcast %cst_108 : f32 to vector<64x128xf32>
    %188 = arith.maximumf %186, %187 : vector<64x128xf32>
    %189 = vector.extract_strided_slice %188 {offsets = [0, 0], sizes = [64, 64], strides = [1, 1]} : vector<64x128xf32> to vector<64x64xf32>
    %190 = vector.extract_strided_slice %188 {offsets = [0, 64], sizes = [64, 64], strides = [1, 1]} : vector<64x128xf32> to vector<64x64xf32>
    %191 = arith.maximumf %189, %190 : vector<64x64xf32>
    %192 = vector.extract_strided_slice %191 {offsets = [0, 0], sizes = [64, 32], strides = [1, 1]} : vector<64x64xf32> to vector<64x32xf32>
    %193 = vector.extract_strided_slice %191 {offsets = [0, 32], sizes = [64, 32], strides = [1, 1]} : vector<64x64xf32> to vector<64x32xf32>
    %194 = arith.maximumf %192, %193 : vector<64x32xf32>
    %195 = vector.extract_strided_slice %194 {offsets = [0, 0], sizes = [64, 16], strides = [1, 1]} : vector<64x32xf32> to vector<64x16xf32>
    %196 = vector.extract_strided_slice %194 {offsets = [0, 16], sizes = [64, 16], strides = [1, 1]} : vector<64x32xf32> to vector<64x16xf32>
    %197 = arith.maximumf %195, %196 : vector<64x16xf32>
    %cst_109 = arith.constant 0.000000e+00 : f32
    %198 = vector.broadcast %cst_109 : f32 to vector<2x12x16xf32>
    %c0_110 = arith.constant 0 : index
    %c0_111 = arith.constant 0 : index
    %c0_112 = arith.constant 0 : index
    %199 = vector.load %arg17[%c0_110, %c0_111, %c0_112] : memref<12x12x16xf32, #tpu.memory_space<vmem>>, vector<2x12x16xf32>
    tpu.vector_store %arg17[%c0_110, %c0_111, %c0_112], %198 {strides = array<i32>} : memref<12x12x16xf32, #tpu.memory_space<vmem>>, vector<2x12x16xf32>,
    %c10 = arith.constant 10 : index
    %c0_113 = arith.constant 0 : index
    %c0_114 = arith.constant 0 : index
    %200 = vector.load %arg17[%c10, %c0_113, %c0_114] : memref<12x12x16xf32, #tpu.memory_space<vmem>>, vector<2x12x16xf32>
    tpu.vector_store %arg17[%c10, %c0_113, %c0_114], %198 {strides = array<i32>} : memref<12x12x16xf32, #tpu.memory_space<vmem>>, vector<2x12x16xf32>,
    %cst_115 = arith.constant 0.000000e+00 : f32
    %201 = vector.broadcast %cst_115 : f32 to vector<8x2x16xf32>
    %c2 = arith.constant 2 : index
    %c0_116 = arith.constant 0 : index
    %c0_117 = arith.constant 0 : index
    %202 = vector.load %arg17[%c2, %c0_116, %c0_117] : memref<12x12x16xf32, #tpu.memory_space<vmem>>, vector<8x2x16xf32>
    tpu.vector_store %arg17[%c2, %c0_116, %c0_117], %201 {strides = array<i32>} : memref<12x12x16xf32, #tpu.memory_space<vmem>>, vector<8x2x16xf32>,
    %c2_118 = arith.constant 2 : index
    %c10_119 = arith.constant 10 : index
    %c0_120 = arith.constant 0 : index
    %203 = vector.load %arg17[%c2_118, %c10_119, %c0_120] : memref<12x12x16xf32, #tpu.memory_space<vmem>>, vector<8x2x16xf32>
    tpu.vector_store %arg17[%c2_118, %c10_119, %c0_120], %201 {strides = array<i32>} : memref<12x12x16xf32, #tpu.memory_space<vmem>>, vector<8x2x16xf32>,
    %204 = vector.shape_cast %197 : vector<64x16xf32> to vector<8x8x16xf32>
    %c2_121 = arith.constant 2 : index
    %c2_122 = arith.constant 2 : index
    %c0_123 = arith.constant 0 : index
    %205 = vector.load %arg17[%c2_121, %c2_122, %c0_123] : memref<12x12x16xf32, #tpu.memory_space<vmem>>, vector<8x8x16xf32>
    tpu.vector_store %arg17[%c2_121, %c2_122, %c0_123], %204 {strides = array<i32>} : memref<12x12x16xf32, #tpu.memory_space<vmem>>, vector<8x8x16xf32>,
    %c0_124 = arith.constant 0 : index
    %c0_125 = arith.constant 0 : index
    %c0_126 = arith.constant 0 : index
    %206 = vector.load %arg17[%c0_124, %c0_125, %c0_126] : memref<12x12x16xf32, #tpu.memory_space<vmem>>, vector<8x8x16xf32>
    %207 = vector.shape_cast %206 : vector<8x8x16xf32> to vector<64x16xf32>
    %c0_127 = arith.constant 0 : index
    %c1 = arith.constant 1 : index
    %c0_128 = arith.constant 0 : index
    %208 = vector.load %arg17[%c0_127, %c1, %c0_128] : memref<12x12x16xf32, #tpu.memory_space<vmem>>, vector<8x8x16xf32>
    %209 = vector.shape_cast %208 : vector<8x8x16xf32> to vector<64x16xf32>
    %c0_129 = arith.constant 0 : index
    %c2_130 = arith.constant 2 : index
    %c0_131 = arith.constant 0 : index
    %210 = vector.load %arg17[%c0_129, %c2_130, %c0_131] : memref<12x12x16xf32, #tpu.memory_space<vmem>>, vector<8x8x16xf32>
    %211 = vector.shape_cast %210 : vector<8x8x16xf32> to vector<64x16xf32>
    %c0_132 = arith.constant 0 : index
    %c3_133 = arith.constant 3 : index
    %c0_134 = arith.constant 0 : index
    %212 = vector.load %arg17[%c0_132, %c3_133, %c0_134] : memref<12x12x16xf32, #tpu.memory_space<vmem>>, vector<8x8x16xf32>
    %213 = vector.shape_cast %212 : vector<8x8x16xf32> to vector<64x16xf32>
    %c0_135 = arith.constant 0 : index
    %c4_136 = arith.constant 4 : index
    %c0_137 = arith.constant 0 : index
    %214 = vector.load %arg17[%c0_135, %c4_136, %c0_137] : memref<12x12x16xf32, #tpu.memory_space<vmem>>, vector<8x8x16xf32>
    %215 = vector.shape_cast %214 : vector<8x8x16xf32> to vector<64x16xf32>
    %c1_138 = arith.constant 1 : index
    %c0_139 = arith.constant 0 : index
    %c0_140 = arith.constant 0 : index
    %216 = vector.load %arg17[%c1_138, %c0_139, %c0_140] : memref<12x12x16xf32, #tpu.memory_space<vmem>>, vector<8x8x16xf32>
    %217 = vector.shape_cast %216 : vector<8x8x16xf32> to vector<64x16xf32>
    %c1_141 = arith.constant 1 : index
    %c1_142 = arith.constant 1 : index
    %c0_143 = arith.constant 0 : index
    %218 = vector.load %arg17[%c1_141, %c1_142, %c0_143] : memref<12x12x16xf32, #tpu.memory_space<vmem>>, vector<8x8x16xf32>
    %219 = vector.shape_cast %218 : vector<8x8x16xf32> to vector<64x16xf32>
    %c1_144 = arith.constant 1 : index
    %c2_145 = arith.constant 2 : index
    %c0_146 = arith.constant 0 : index
    %220 = vector.load %arg17[%c1_144, %c2_145, %c0_146] : memref<12x12x16xf32, #tpu.memory_space<vmem>>, vector<8x8x16xf32>
    %221 = vector.shape_cast %220 : vector<8x8x16xf32> to vector<64x16xf32>
    %c1_147 = arith.constant 1 : index
    %c3_148 = arith.constant 3 : index
    %c0_149 = arith.constant 0 : index
    %222 = vector.load %arg17[%c1_147, %c3_148, %c0_149] : memref<12x12x16xf32, #tpu.memory_space<vmem>>, vector<8x8x16xf32>
    %223 = vector.shape_cast %222 : vector<8x8x16xf32> to vector<64x16xf32>
    %c1_150 = arith.constant 1 : index
    %c4_151 = arith.constant 4 : index
    %c0_152 = arith.constant 0 : index
    %224 = vector.load %arg17[%c1_150, %c4_151, %c0_152] : memref<12x12x16xf32, #tpu.memory_space<vmem>>, vector<8x8x16xf32>
    %225 = vector.shape_cast %224 : vector<8x8x16xf32> to vector<64x16xf32>
    %c2_153 = arith.constant 2 : index
    %c0_154 = arith.constant 0 : index
    %c0_155 = arith.constant 0 : index
    %226 = vector.load %arg17[%c2_153, %c0_154, %c0_155] : memref<12x12x16xf32, #tpu.memory_space<vmem>>, vector<8x8x16xf32>
    %227 = vector.shape_cast %226 : vector<8x8x16xf32> to vector<64x16xf32>
    %c2_156 = arith.constant 2 : index
    %c1_157 = arith.constant 1 : index
    %c0_158 = arith.constant 0 : index
    %228 = vector.load %arg17[%c2_156, %c1_157, %c0_158] : memref<12x12x16xf32, #tpu.memory_space<vmem>>, vector<8x8x16xf32>
    %229 = vector.shape_cast %228 : vector<8x8x16xf32> to vector<64x16xf32>
    %c2_159 = arith.constant 2 : index
    %c2_160 = arith.constant 2 : index
    %c0_161 = arith.constant 0 : index
    %230 = vector.load %arg17[%c2_159, %c2_160, %c0_161] : memref<12x12x16xf32, #tpu.memory_space<vmem>>, vector<8x8x16xf32>
    %231 = vector.shape_cast %230 : vector<8x8x16xf32> to vector<64x16xf32>
    %c2_162 = arith.constant 2 : index
    %c3_163 = arith.constant 3 : index
    %c0_164 = arith.constant 0 : index
    %232 = vector.load %arg17[%c2_162, %c3_163, %c0_164] : memref<12x12x16xf32, #tpu.memory_space<vmem>>, vector<8x8x16xf32>
    %233 = vector.shape_cast %232 : vector<8x8x16xf32> to vector<64x16xf32>
    %c2_165 = arith.constant 2 : index
    %c4_166 = arith.constant 4 : index
    %c0_167 = arith.constant 0 : index
    %234 = vector.load %arg17[%c2_165, %c4_166, %c0_167] : memref<12x12x16xf32, #tpu.memory_space<vmem>>, vector<8x8x16xf32>
    %235 = vector.shape_cast %234 : vector<8x8x16xf32> to vector<64x16xf32>
    %c3_168 = arith.constant 3 : index
    %c0_169 = arith.constant 0 : index
    %c0_170 = arith.constant 0 : index
    %236 = vector.load %arg17[%c3_168, %c0_169, %c0_170] : memref<12x12x16xf32, #tpu.memory_space<vmem>>, vector<8x8x16xf32>
    %237 = vector.shape_cast %236 : vector<8x8x16xf32> to vector<64x16xf32>
    %c3_171 = arith.constant 3 : index
    %c1_172 = arith.constant 1 : index
    %c0_173 = arith.constant 0 : index
    %238 = vector.load %arg17[%c3_171, %c1_172, %c0_173] : memref<12x12x16xf32, #tpu.memory_space<vmem>>, vector<8x8x16xf32>
    %239 = vector.shape_cast %238 : vector<8x8x16xf32> to vector<64x16xf32>
    %c3_174 = arith.constant 3 : index
    %c2_175 = arith.constant 2 : index
    %c0_176 = arith.constant 0 : index
    %240 = vector.load %arg17[%c3_174, %c2_175, %c0_176] : memref<12x12x16xf32, #tpu.memory_space<vmem>>, vector<8x8x16xf32>
    %241 = vector.shape_cast %240 : vector<8x8x16xf32> to vector<64x16xf32>
    %c3_177 = arith.constant 3 : index
    %c3_178 = arith.constant 3 : index
    %c0_179 = arith.constant 0 : index
    %242 = vector.load %arg17[%c3_177, %c3_178, %c0_179] : memref<12x12x16xf32, #tpu.memory_space<vmem>>, vector<8x8x16xf32>
    %243 = vector.shape_cast %242 : vector<8x8x16xf32> to vector<64x16xf32>
    %c3_180 = arith.constant 3 : index
    %c4_181 = arith.constant 4 : index
    %c0_182 = arith.constant 0 : index
    %244 = vector.load %arg17[%c3_180, %c4_181, %c0_182] : memref<12x12x16xf32, #tpu.memory_space<vmem>>, vector<8x8x16xf32>
    %245 = vector.shape_cast %244 : vector<8x8x16xf32> to vector<64x16xf32>
    %c4_183 = arith.constant 4 : index
    %c0_184 = arith.constant 0 : index
    %c0_185 = arith.constant 0 : index
    %246 = vector.load %arg17[%c4_183, %c0_184, %c0_185] : memref<12x12x16xf32, #tpu.memory_space<vmem>>, vector<8x8x16xf32>
    %247 = vector.shape_cast %246 : vector<8x8x16xf32> to vector<64x16xf32>
    %c4_186 = arith.constant 4 : index
    %c1_187 = arith.constant 1 : index
    %c0_188 = arith.constant 0 : index
    %248 = vector.load %arg17[%c4_186, %c1_187, %c0_188] : memref<12x12x16xf32, #tpu.memory_space<vmem>>, vector<8x8x16xf32>
    %249 = vector.shape_cast %248 : vector<8x8x16xf32> to vector<64x16xf32>
    %c4_189 = arith.constant 4 : index
    %c2_190 = arith.constant 2 : index
    %c0_191 = arith.constant 0 : index
    %250 = vector.load %arg17[%c4_189, %c2_190, %c0_191] : memref<12x12x16xf32, #tpu.memory_space<vmem>>, vector<8x8x16xf32>
    %251 = vector.shape_cast %250 : vector<8x8x16xf32> to vector<64x16xf32>
    %c4_192 = arith.constant 4 : index
    %c3_193 = arith.constant 3 : index
    %c0_194 = arith.constant 0 : index
    %252 = vector.load %arg17[%c4_192, %c3_193, %c0_194] : memref<12x12x16xf32, #tpu.memory_space<vmem>>, vector<8x8x16xf32>
    %253 = vector.shape_cast %252 : vector<8x8x16xf32> to vector<64x16xf32>
    %c4_195 = arith.constant 4 : index
    %c4_196 = arith.constant 4 : index
    %c0_197 = arith.constant 0 : index
    %254 = vector.load %arg17[%c4_195, %c4_196, %c0_197] : memref<12x12x16xf32, #tpu.memory_space<vmem>>, vector<8x8x16xf32>
    %255 = vector.shape_cast %254 : vector<8x8x16xf32> to vector<64x16xf32>
    %256 = tpu.concatenate %207, %209, %211, %213, %215, %217, %219, %221, %223, %225, %227, %229, %231, %233, %235, %237 in 1 : vector<64x16xf32>, vector<64x16xf32>, vector<64x16xf32>, vector<64x16xf32>, vector<64x16xf32>, vector<64x16xf32>, vector<64x16xf32>, vector<64x16xf32>, vector<64x16xf32>, vector<64x16xf32>, vector<64x16xf32>, vector<64x16xf32>, vector<64x16xf32>, vector<64x16xf32>, vector<64x16xf32>, vector<64x16xf32> -> vector<64x256xf32>
    %257 = tpu.concatenate %239, %241, %243, %245, %247, %249, %251, %253, %255 in 1 : vector<64x16xf32>, vector<64x16xf32>, vector<64x16xf32>, vector<64x16xf32>, vector<64x16xf32>, vector<64x16xf32>, vector<64x16xf32>, vector<64x16xf32>, vector<64x16xf32> -> vector<64x144xf32>
    %258 = tpu.concatenate %256, %257 in 1 : vector<64x256xf32>, vector<64x144xf32> -> vector<64x400xf32>
    %c0_198 = arith.constant 0 : index
    %c0_199 = arith.constant 0 : index
    %259 = vector.load %arg7[%c0_198, %c0_199] : memref<400x16xf32, #tpu.memory_space<vmem>>, vector<400x16xf32>
    %cst_200 = arith.constant dense<0.000000e+00> : vector<64x16xf32>
    %260 = tpu.matmul %258, %259, %cst_200 {dimension_numbers = #tpu.dot_dimension_numbers<[1], [0], [0], [1], [0, 0, 1, 1], [], []>} : vector<64x400xf32>, vector<400x16xf32>, vector<64x16xf32> -> vector<64x16xf32>
    %261 = vector.broadcast %6 : vector<1x16xf32> to vector<64x16xf32>
    %262 = arith.addf %260, %261 : vector<64x16xf32>
    %263 = arith.addf %262, %197 : vector<64x16xf32>
    %c0_201 = arith.constant 0 : index
    %c0_202 = arith.constant 0 : index
    %264 = vector.load %arg8[%c0_201, %c0_202] : memref<128x32xf32, #tpu.memory_space<vmem>>, vector<128x32xf32>
    %cst_203 = arith.constant dense<0.000000e+00> : vector<64x32xf32>
    %265 = tpu.matmul %188, %264, %cst_203 {dimension_numbers = #tpu.dot_dimension_numbers<[1], [0], [0], [1], [0, 0, 1, 1], [], []>} : vector<64x128xf32>, vector<128x32xf32>, vector<64x32xf32> -> vector<64x32xf32>
    %c0_204 = arith.constant 0 : index
    %c0_205 = arith.constant 0 : index
    %266 = vector.load %arg9[%c0_204, %c0_205] : memref<16x32xf32, #tpu.memory_space<vmem>>, vector<16x32xf32>
    %cst_206 = arith.constant dense<0.000000e+00> : vector<64x32xf32>
    %267 = tpu.matmul %263, %266, %cst_206 {dimension_numbers = #tpu.dot_dimension_numbers<[1], [0], [0], [1], [0, 0, 1, 1], [], []>} : vector<64x16xf32>, vector<16x32xf32>, vector<64x32xf32> -> vector<64x32xf32>
    %268 = arith.addf %265, %267 : vector<64x32xf32>
    %269 = vector.broadcast %7 : vector<1x32xf32> to vector<64x32xf32>
    %270 = arith.addf %268, %269 : vector<64x32xf32>
    %cst_207 = arith.constant dense<0xFF800000> : vector<32xf32>
    %271 = vector.multi_reduction <maximumf>, %270, %cst_207 [0] : vector<64x32xf32> to vector<32xf32>
    %272 = vector.shape_cast %271 : vector<32xf32> to vector<1x32xf32>
    %273 = vector.broadcast %272 : vector<1x32xf32> to vector<64x32xf32>
    %274 = arith.subf %270, %273 : vector<64x32xf32>
    %275 = math.exp %274 : vector<64x32xf32>
    %c0_208 = arith.constant 0 : index
    %c0_209 = arith.constant 0 : index
    %276 = vector.load %arg10[%c0_208, %c0_209] : memref<3x64xf32, #tpu.memory_space<vmem>>, vector<3x64xf32>
    %cst_210 = arith.constant dense<0.000000e+00> : vector<3x32xf32>
    %277 = tpu.matmul %276, %275, %cst_210 {dimension_numbers = #tpu.dot_dimension_numbers<[1], [0], [0], [1], [0, 0, 1, 1], [], []>} : vector<3x64xf32>, vector<64x32xf32>, vector<3x32xf32> -> vector<3x32xf32>
    %278 = vector.extract_strided_slice %277 {offsets = [0, 0], sizes = [1, 32], strides = [1, 1]} : vector<3x32xf32> to vector<1x32xf32>
    %279 = tpu.reciprocal %278 {approx = true} : vector<1x32xf32> -> vector<1x32xf32>
    %280 = arith.mulf %278, %279 : vector<1x32xf32>
    %cst_211 = arith.constant 2.000000e+00 : f32
    %281 = vector.broadcast %cst_211 : f32 to vector<1x32xf32>
    %282 = arith.subf %281, %280 : vector<1x32xf32>
    %283 = arith.mulf %279, %282 : vector<1x32xf32>
    %284 = vector.broadcast %283 : vector<1x32xf32> to vector<64x32xf32>
    %285 = arith.mulf %275, %284 : vector<64x32xf32>
    %286 = vector.shape_cast %285 : vector<64x32xf32> to vector<8x8x32xf32>
    %c0_212 = arith.constant 0 : index
    %c0_213 = arith.constant 0 : index
    %c0_214 = arith.constant 0 : index
    %c0_215 = arith.constant 0 : index
    %287 = vector.load %arg14[%c0_212, %c0_213, %c0_214, %c0_215] : memref<1x8x8x32xf32, #tpu.memory_space<vmem>>, vector<1x8x8x32xf32>
    %288 = vector.shape_cast %287 : vector<1x8x8x32xf32> to vector<8x8x32xf32>
    %289 = vector.shape_cast %286 : vector<8x8x32xf32> to vector<1x8x8x32xf32>
    tpu.vector_store %arg14[%c0_212, %c0_213, %c0_214, %c0_215], %289 {strides = array<i32>} : memref<1x8x8x32xf32, #tpu.memory_space<vmem>>, vector<1x8x8x32xf32>,
    %290 = vector.extract_strided_slice %277 {offsets = [1, 0], sizes = [1, 32], strides = [1, 1]} : vector<3x32xf32> to vector<1x32xf32>
    %291 = arith.mulf %290, %283 : vector<1x32xf32>
    %292 = vector.extract_strided_slice %277 {offsets = [2, 0], sizes = [1, 32], strides = [1, 1]} : vector<3x32xf32> to vector<1x32xf32>
    %293 = arith.mulf %292, %283 : vector<1x32xf32>
    %cst_216 = arith.constant 0.000000e+00 : f32
    %294 = vector.broadcast %cst_216 : f32 to vector<1x28xf32>
    %295 = tpu.concatenate %135, %294 in 1 : vector<1x4xf32>, vector<1x28xf32> -> vector<1x32xf32>
    %296 = tpu.concatenate %291, %293, %295 in 0 : vector<1x32xf32>, vector<1x32xf32>, vector<1x32xf32> -> vector<3x32xf32>
    %c0_217 = arith.constant 0 : index
    %c0_218 = arith.constant 0 : index
    %c0_219 = arith.constant 0 : index
    %297 = vector.load %arg15[%c0_217, %c0_218, %c0_219] : memref<1x3x32xf32, #tpu.memory_space<vmem>>, vector<1x3x32xf32>
    %298 = vector.shape_cast %297 : vector<1x3x32xf32> to vector<3x32xf32>
    %299 = vector.shape_cast %296 : vector<3x32xf32> to vector<1x3x32xf32>
    tpu.vector_store %arg15[%c0_217, %c0_218, %c0_219], %299 {strides = array<i32>} : memref<1x3x32xf32, #tpu.memory_space<vmem>>, vector<1x3x32xf32>,
    return
  }
  func.func @transform_0(%arg0: i32) -> (i32, i32, i32, i32) {
    %c0_i32 = arith.constant 0 : i32
    %c0_i32_0 = arith.constant 0 : i32
    %c0_i32_1 = arith.constant 0 : i32
    %c0_i32_2 = arith.constant 0 : i32
    return %arg0, %c0_i32, %c0_i32_0, %c0_i32_1 : i32, i32, i32, i32
  }
  func.func @transform_1(%arg0: i32) -> (i32, i32) {
    %c0_i32 = arith.constant 0 : i32
    %c0_i32_0 = arith.constant 0 : i32
    %c0_i32_1 = arith.constant 0 : i32
    return %c0_i32, %c0_i32_0 : i32, i32
  }
  func.func @transform_2(%arg0: i32) -> (i32, i32) {
    %c0_i32 = arith.constant 0 : i32
    %c0_i32_0 = arith.constant 0 : i32
    %c0_i32_1 = arith.constant 0 : i32
    return %c0_i32, %c0_i32_0 : i32, i32
  }
  func.func @transform_3(%arg0: i32) -> (i32, i32) {
    %c0_i32 = arith.constant 0 : i32
    %c0_i32_0 = arith.constant 0 : i32
    %c0_i32_1 = arith.constant 0 : i32
    return %c0_i32, %c0_i32_0 : i32, i32
  }
  func.func @transform_4(%arg0: i32) -> (i32, i32) {
    %c0_i32 = arith.constant 0 : i32
    %c0_i32_0 = arith.constant 0 : i32
    %c0_i32_1 = arith.constant 0 : i32
    return %c0_i32, %c0_i32_0 : i32, i32
  }
  func.func @transform_5(%arg0: i32) -> (i32, i32) {
    %c0_i32 = arith.constant 0 : i32
    %c0_i32_0 = arith.constant 0 : i32
    %c0_i32_1 = arith.constant 0 : i32
    return %c0_i32, %c0_i32_0 : i32, i32
  }
  func.func @transform_6(%arg0: i32) -> (i32, i32) {
    %c0_i32 = arith.constant 0 : i32
    %c0_i32_0 = arith.constant 0 : i32
    %c0_i32_1 = arith.constant 0 : i32
    return %c0_i32, %c0_i32_0 : i32, i32
  }
  func.func @transform_7(%arg0: i32) -> (i32, i32) {
    %c0_i32 = arith.constant 0 : i32
    %c0_i32_0 = arith.constant 0 : i32
    %c0_i32_1 = arith.constant 0 : i32
    return %c0_i32, %c0_i32_0 : i32, i32
  }
  func.func @transform_8(%arg0: i32) -> (i32, i32) {
    %c0_i32 = arith.constant 0 : i32
    %c0_i32_0 = arith.constant 0 : i32
    %c0_i32_1 = arith.constant 0 : i32
    return %c0_i32, %c0_i32_0 : i32, i32
  }
  func.func @transform_9(%arg0: i32) -> (i32, i32) {
    %c0_i32 = arith.constant 0 : i32
    %c0_i32_0 = arith.constant 0 : i32
    %c0_i32_1 = arith.constant 0 : i32
    return %c0_i32, %c0_i32_0 : i32, i32
  }
  func.func @transform_10(%arg0: i32) -> (i32, i32) {
    %c0_i32 = arith.constant 0 : i32
    %c0_i32_0 = arith.constant 0 : i32
    %c0_i32_1 = arith.constant 0 : i32
    return %c0_i32, %c0_i32_0 : i32, i32
  }
  func.func @transform_11(%arg0: i32) -> (i32, i32) {
    %c0_i32 = arith.constant 0 : i32
    %c0_i32_0 = arith.constant 0 : i32
    %c0_i32_1 = arith.constant 0 : i32
    return %c0_i32, %c0_i32_0 : i32, i32
  }
  func.func @transform_12(%arg0: i32) -> (i32, i32) {
    %c0_i32 = arith.constant 0 : i32
    %c0_i32_0 = arith.constant 0 : i32
    %c0_i32_1 = arith.constant 0 : i32
    return %c0_i32, %c0_i32_0 : i32, i32
  }
  func.func @transform_13(%arg0: i32) -> (i32, i32, i32, i32) {
    %c0_i32 = arith.constant 0 : i32
    %c0_i32_0 = arith.constant 0 : i32
    %c0_i32_1 = arith.constant 0 : i32
    %c0_i32_2 = arith.constant 0 : i32
    return %arg0, %c0_i32, %c0_i32_0, %c0_i32_1 : i32, i32, i32, i32
  }
  func.func @transform_14(%arg0: i32) -> (i32, i32, i32) {
    %c0_i32 = arith.constant 0 : i32
    %c0_i32_0 = arith.constant 0 : i32
    %c0_i32_1 = arith.constant 0 : i32
    return %arg0, %c0_i32, %c0_i32_0 : i32, i32, i32
  }
}

</mosaic_0001>

<bundles_post_ra>
// kernel: tile.8
= control target key start
LH: loop header
LB: loop body
LE: loop exit
PB: predicated region body
PF: predicated region fallthrough
CT: control target
= control target key end

     0   :  { %s22_s0 = inlined_call_operand.vmem [shape: f32[8], index: 0, kind: input, shape index: {}]   ;;  %s23_s1 = inlined_call_operand.vmem [shape: f32[8,8], index: 1, kind: output, shape index: {}]  }
   0x1   :  { %v4_v0 = vld [vmem:[%s22_s0] ss:$0 sm:$0xff] }
   0x2   :  { %5 = vst [vmem:[%s23_s1] sm:$0xff] %v4_v0 }

// kernel: fushion_lane_detection_forward.1
= control target key start
LH: loop header
LB: loop body
LE: loop exit
PB: predicated region body
PF: predicated region fallthrough
CT: control target
= control target key end

     0   :  { %s6066_s29 = smov 0   ;;  %s8049_s0 = inlined_call_operand.vmem [shape: f32[2,8,8,16], index: 0, kind: input, shape index: {}]   ;;  %s8050_s1 = inlined_call_operand.vmem [shape: f32[144,32], index: 1, kind: input, shape index: {}]   ;;  %s8051_s2 = inlined_call_operand.vmem [shape: f32[32,5], index: 2, kind: input, shape index: {}]   ;;  %s8052_s3 = inlined_call_operand.vmem [shape: f32[144,128], index: 3, kind: input, shape index: {}]   ;;  %s8053_s4 = inlined_call_operand.vmem [shape: f32[128,32], index: 4, kind: input, shape index: {}]   ;;  %s8054_s5 = inlined_call_operand.vmem [shape: f32[32,128], index: 5, kind: input, shape index: {}]   ;;  %s8055_s6 = inlined_call_operand.vmem [shape: f32[400,16], index: 6, kind: input, shape index: {}]   ;;  %s8056_s7 = inlined_call_operand.vmem [shape: f32[128,32], index: 7, kind: input, shape index: {}]   ;;  %s8057_s8 = inlined_call_operand.vmem [shape: f32[16,32], index: 8, kind: input, shape index: {}]   ;;  %s8058_s9 = inlined_call_operand.vmem [shape: f32[3,64], index: 9, kind: input, shape index: {}]   ;;  %s8059_s10 = inlined_call_operand.vmem [shape: f32[80,128], index: 10, kind: input, shape index: {}]   ;;  %s8060_s11 = inlined_call_operand.vmem [shape: f32[128,4], index: 11, kind: input, shape index: {}]   ;;  %s8061_s12 = inlined_call_operand.vmem [shape: f32[9,128], index: 12, kind: input, shape index: {}]   ;;  %s8062_s13 = inlined_call_operand.vmem [shape: f32[2,8,8,32], index: 13, kind: output, shape index: {0}]   ;;  %s8063_s14 = inlined_call_operand.vmem [shape: f32[2,3,32], index: 14, kind: output, shape index: {1}]  }
   0x1 LB: > { %s4465_s30 = sadd.s32 4294967295, %s5964_s29   ;;  %p4469_p0 = scmp.ge.s32.totalorder %s5964_s29, 1  ;;  %s5964_s29 = sphi %s6066_s29, %s25_s29  }
   0x2   : > { %p415_p1 = scmp.lt.s32.totalorder %s5964_s29, 3 }
   0x4   : > { %p416_p2 = pnand %p4469_p0, %p415_p1 }
   0x6   : > { %419 = sbr.rel (%p416_p2) target bundleno = 3620 (0xe24), region = 72 }
   0xd   : > { %vm481_vm0 = vcmask 130048   ;;  %vm500_vm1 = vcmask 125952   ;;  %v8079_v0 = vmov 0.0   ;;  %p6116_p3 = scmp.lt.s32.totalorder %s4465_s30, 1  ;;  %v8080_v1 = vmov 0.0|0.0   ;;  %v892_v2 = vld [vmem:[%s8050_s1] sm:$0xff] }
   0xe   : > { %482 = vst.msk [vmem:[#allocation2] sm:$0xff] %vm481_vm0, %v8079_v0  ;;  %483 = vst.msk [vmem:[#allocation2 + $0x8] sm:$0xff] %vm481_vm0, %v8079_v0  ;;  %4956 = vmatprep.subr.bf16.mxu0 %v8080_v1  ;;  %v893_v3 = vld [vmem:[%s8050_s1 + $0x8] sm:$0xff]  ;;  %v894_v4 = vld [vmem:[%s8050_s1 + $0x10] sm:$0xff]  ;;  %s8077_s22 = smov 16   ;;  %s8075_s28 = smov 32  }
   0xf   : > { %484 = vst.msk [vmem:[#allocation2 + $0x10] sm:$0xff] %vm481_vm0, %v8079_v0  ;;  %485 = vst.msk [vmem:[#allocation2 + $0x18] sm:$0xff] %vm481_vm0, %v8079_v0  ;;  %v4957_v5 = vpack.c.bf16 %v893_v3, %v892_v2  ;;  %v895_v6 = vld [vmem:[%s8050_s1 + $0x18] sm:$0xff]  ;;  %s8169_s30 = smov (!%p6116_p3, %s4465_s30), 1  ;;  %v896_v8 = vld [vmem:[%s8050_s1 + $0x20] sm:$0xff]  ;;  %s5970_s19 = smov 48  }
  0x10   : > { %486 = vst.msk [vmem:[#allocation2 + $0x20] sm:$0xff] %vm481_vm0, %v8079_v0  ;;  %487 = vst.msk [vmem:[#allocation2 + $0x28] sm:$0xff] %vm481_vm0, %v8079_v0  ;;  %v4960_v7 = vpack.c.bf16 %v895_v6, %v894_v4  ;;  %s8064_s24 = sshll.u32 %s8169_s30, 6  ;;  %v897_v9 = vld [vmem:[%s8050_s1 + $0x28] sm:$0xff]  ;;  %v898_v13 = vld [vmem:[%s8050_s1 + $0x30] sm:$0xff]  ;;  %s8073_s20 = smov 80  }
  0x11   : > { %488 = vst.msk [vmem:[#allocation2 + $0x30] sm:$0xff] %vm481_vm0, %v8079_v0  ;;  %489 = vst.msk [vmem:[#allocation2 + $0x38] sm:$0xff] %vm481_vm0, %v8079_v0  ;;  %4958 = vmatpush1.bf16.msra.mxu0 %v4957_v5  ;;  %s6192_s17 = scalar_lea.vmem %s8049_s0, %s8064_s24  ;;  %v899_v14 = vld [vmem:[%s8050_s1 + $0x38] sm:$0xff]  ;;  %v4963_v18 = vpack.c.bf16 %v897_v9, %v896_v8  ;;  %v900_v31 = vld [vmem:[%s8050_s1 + $0x40] sm:$0xff]  ;;  %s8065_s27 = smov 64   ;;  %vm838_vm2 = vcmask 261120  }
  0x12   : > { %491 = vst.msk [vmem:[#allocation2 + $0xc0] sm:$0xff] %vm481_vm0, %v8079_v0  ;;  %492 = vst.msk [vmem:[#allocation2 + $0xc8] sm:$0xff] %vm481_vm0, %v8079_v0  ;;  %4959 = vmatprep.subr.bf16.mxu0 %v8080_v1  ;;  %v517_v10 = vld [vmem:[%s6192_s17] sm:$0xff]  ;;  %v518_v11 = vld [vmem:[%s6192_s17 + $0x8] sm:$0xff]  ;;  %v4966_v30 = vpack.c.bf16 %v899_v14, %v898_v13  ;;  %s8071_s16 = smov 112   ;;  %s8069_s23 = smov 96  }
  0x13   : > { %493 = vst.msk [vmem:[#allocation2 + $0xd0] sm:$0xff] %vm481_vm0, %v8079_v0  ;;  %494 = vst.msk [vmem:[#allocation2 + $0xd8] sm:$0xff] %vm481_vm0, %v8079_v0  ;;  %v521_v12 = vld [vmem:[%s6192_s17 + $0x20] sm:$0xff]  ;;  %v522_v24 = vld [vmem:[%s6192_s17 + $0x28] sm:$0xff]  ;;  %vm847_vm3 = vcmask 392192   ;;  %vm856_vm4 = vcmask 523264  }
  0x14   : > { %495 = vst.msk [vmem:[#allocation2 + $0xe0] sm:$0xff] %vm481_vm0, %v8079_v0  ;;  %496 = vst.msk [vmem:[#allocation2 + $0xe8] sm:$0xff] %vm481_vm0, %v8079_v0  ;;  %v519_v26 = vld [vmem:[%s6192_s17 + $0x10] sm:$0xff]  ;;  %v520_v27 = vld [vmem:[%s6192_s17 + $0x18] sm:$0xff]  ;;  %vm865_vm5 = vcmask 654336   ;;  %vm8068_vm6 = vcmask 785408  }
  0x15   : > { %497 = vst.msk [vmem:[#allocation2 + $0xf0] sm:$0xff] %vm481_vm0, %v8079_v0  ;;  %498 = vst.msk [vmem:[#allocation2 + $0xf8] sm:$0xff] %vm481_vm0, %v8079_v0  ;;  %v541_v15 = vld [vmem:[#allocation2 + $0x4] sm:$0xff]  ;;  %4961 = vmatpush1.bf16.msra.mxu0 %v4960_v7  ;;  %v523_v28 = vld [vmem:[%s6192_s17 + $0x30] sm:$0xff]  ;;  %vm8067_vm7 = vcmask 916480   ;;  %vm1188_vm8 = vcmask 39936  }
  0x16   : > { %2574 = vst.msk [vmem:[#allocation3] sm:$0xff] %vm481_vm0, %v8079_v0  ;;  %2576 = vst.msk [vmem:[#allocation3 + $0x10] sm:$0xff] %vm481_vm0, %v8079_v0  ;;  %v542_v16 = vld [vmem:[#allocation2 + $0x14] sm:$0xff]  ;;  %v549_v21 = vld [vmem:[#allocation2 + $0x8] sm:$0xff]  ;;  %4962 = vmatprep.subr.bf16.mxu0 %v8080_v1  ;;  %s5975_s15 = smov 10   ;;  %s5977_s18 = smov 15  }
  0x17   : > { %2579 = vst.msk [vmem:[#allocation3 + $0xa0] sm:$0xff] %vm481_vm0, %v8079_v0  ;;  %2581 = vst.msk [vmem:[#allocation3 + $0xb0] sm:$0xff] %vm481_vm0, %v8079_v0  ;;  %v543_v17 = vld [vmem:[#allocation2 + $0x24] sm:$0xff]  ;;  %v5265_v19 = vpack.i.bf16 %v542_v16, %v541_v15  ;;  %v550_v22 = vld [vmem:[#allocation2 + $0x18] sm:$0xff]  ;;  %s5978_s21 = smov 20   ;;  %s5979_s24 = smov 25  }
  0x18   : > { %501 = vst.msk [vmem:[#allocation2 + $0x40] sm:$0xf] %vm500_vm1, %v8079_v0  ;;  %502 = vst.msk [vmem:[#allocation2 + $0x50] sm:$0xf] %vm500_vm1, %v8079_v0  ;;  %v544_v20 = vld [vmem:[#allocation2 + $0x34] sm:$0xff]  ;;  %v5270_v25 = vpack.i.bf16 %v550_v22, %v549_v21  ;;  %v901_v32 = vld [vmem:[%s8050_s1 + $0x48] sm:$0xff] }
  0x19   : > { %503 = vst.msk [vmem:[#allocation2 + $0x60] sm:$0xf] %vm500_vm1, %v8079_v0  ;;  %504 = vst.msk [vmem:[#allocation2 + $0x70] sm:$0xf] %vm500_vm1, %v8079_v0  ;;  %v5275_v23 = vpack.i.bf16 %v544_v20, %v543_v17  ;;  %5266 = vrot.lane.b32.xlu0 %v5265_v19, %s8077_s22  ;;  %v524_v29 = vld [vmem:[%s6192_s17 + $0x38] sm:$0xff]  ;;  %4964 = vmatpush1.bf16.msra.mxu0 %v4963_v18  ;;  %v902_v36 = vld [vmem:[%s8050_s1 + $0x50] sm:$0xff]  ;;  %v4969_v41 = vpack.c.bf16 %v901_v32, %v900_v31 }
  0x1a   : > { %505 = vst.msk [vmem:[#allocation2 + $0x80] sm:$0xf] %vm500_vm1, %v8079_v0  ;;  %506 = vst.msk [vmem:[#allocation2 + $0x90] sm:$0xf] %vm500_vm1, %v8079_v0  ;;  %4965 = vmatprep.subr.bf16.mxu0 %v8080_v1  ;;  %v903_v45 = vld [vmem:[%s8050_s1 + $0x58] sm:$0xff]  ;;  %v551_v51 = vld [vmem:[#allocation2 + $0x28] sm:$0xff] }
  0x1b   : > { %507 = vst.msk [vmem:[#allocation2 + $0xa0] sm:$0xf] %vm500_vm1, %v8079_v0  ;;  %508 = vst.msk [vmem:[#allocation2 + $0xb0] sm:$0xf] %vm500_vm1, %v8079_v0  ;;  %5276 = vrot.lane.b32.xlu1 %v5275_v23, %s8077_s22  ;;  %v552_v52 = vld [vmem:[#allocation2 + $0x38] sm:$0xff]  ;;  %v4972_v53 = vpack.c.bf16 %v903_v45, %v902_v36  ;;  %v904_v54 = vld [vmem:[%s8050_s1 + $0x60] sm:$0xff] }
  0x1c   : > { %509 = vst.msk [vmem:[#allocation2 + $0x4c] sm:$0xf] %vm500_vm1, %v8079_v0  ;;  %510 = vst.msk [vmem:[#allocation2 + $0x5c] sm:$0xf] %vm500_vm1, %v8079_v0  ;;  %v905_v55 = vld [vmem:[%s8050_s1 + $0x68] sm:$0xff]  ;;  %v5305_v57 = vpack.i.bf16 %v552_v52, %v551_v51  ;;  %v906_v63 = vld [vmem:[%s8050_s1 + $0x70] sm:$0xff] }
  0x1d   : > { %511 = vst.msk [vmem:[#allocation2 + $0x6c] sm:$0xf] %vm500_vm1, %v8079_v0  ;;  %512 = vst.msk [vmem:[#allocation2 + $0x7c] sm:$0xf] %vm500_vm1, %v8079_v0  ;;  %5271 = vrot.lane.b32.xlu0 %v5270_v25, %s8075_s28  ;;  %4967 = vmatpush1.bf16.msra.mxu0 %v4966_v30  ;;  %v4975_v62 = vpack.c.bf16 %v905_v55, %v904_v54  ;;  %v907_v2 = vld [vmem:[%s8050_s1 + $0x78] sm:$0xff]  ;;  %v586_v20 = vld [vmem:[#allocation2 + $0xc0] sm:$0xff] }
  0x1e   : > { %513 = vst.msk [vmem:[#allocation2 + $0x8c] sm:$0xf] %vm500_vm1, %v8079_v0  ;;  %514 = vst.msk [vmem:[#allocation2 + $0x9c] sm:$0xf] %vm500_vm1, %v8079_v0  ;;  %4968 = vmatprep.subr.bf16.mxu0 %v8080_v1  ;;  %v4978_v9 = vpack.c.bf16 %v907_v2, %v906_v63  ;;  %v587_v21 = vld [vmem:[#allocation2 + $0xd0] sm:$0xff]  ;;  %v594_v22 = vld [vmem:[#allocation2 + $0xc4] sm:$0xff] }
  0x1f   : > { %515 = vst.msk [vmem:[#allocation2 + $0xac] sm:$0xf] %vm500_vm1, %v8079_v0  ;;  %516 = vst.msk [vmem:[#allocation2 + $0xbc] sm:$0xf] %vm500_vm1, %v8079_v0  ;;  %v595_v23 = vld [vmem:[#allocation2 + $0xd4] sm:$0xff]  ;;  %s5976_s17 = smov 5  }
  0x20   : > { %2575 = vst.msk [vmem:[#allocation3 + $0x8] sm:$0xf] %vm500_vm1, %v8079_v0  ;;  %2577 = vst.msk [vmem:[#allocation3 + $0x18] sm:$0xf] %vm500_vm1, %v8079_v0  ;;  %v5365_v25 = vpack.i.bf16 %v595_v23, %v594_v22  ;;  %v589_v30 = vld [vmem:[#allocation2 + $0xf0] sm:$0xff]  ;;  %s5985_s25 = smov 55  }
  0x21   : > { %2580 = vst.msk [vmem:[#allocation3 + $0xa8] sm:$0xf] %vm500_vm1, %v8079_v0  ;;  %2582 = vst.msk [vmem:[#allocation3 + $0xb8] sm:$0xf] %vm500_vm1, %v8079_v0  ;;  %4970 = vmatpush1.bf16.msra.mxu0 %v4969_v41  ;;  %v597_v31 = vld [vmem:[#allocation2 + $0xf4] sm:$0xff]  ;;  %s5986_s26 = smov 60  }
  0x22   : > { %525 = vst.msk [vmem:[#allocation2 + $0x44] sm:$0xff] %vm481_vm0, %v517_v10  ;;  %526 = vst.msk [vmem:[#allocation2 + $0x54] sm:$0xff] %vm481_vm0, %v518_v11  ;;  %4971 = vmatprep.subr.bf16.mxu0 %v8080_v1  ;;  %v908_v10 = vld [vmem:[%s8050_s1 + $0x80] sm:$0xff]  ;;  %v909_v11 = vld [vmem:[%s8050_s1 + $0x88] sm:$0xff]  ;;  %vm5987_vm9 = vmmov 0   ;;  %vm1383_vm10 = vcmask 80896  }
  0x23   : > { %529 = vst.msk [vmem:[#allocation2 + $0x84] sm:$0xff] %vm481_vm0, %v521_v12  ;;  %530 = vst.msk [vmem:[#allocation2 + $0x94] sm:$0xff] %vm481_vm0, %v522_v24  ;;  %v4981_v16 = vpack.c.bf16 %v909_v11, %v908_v10  ;;  %v5360_v24 = vpack.i.bf16 %v587_v21, %v586_v20  ;;  %v534_v45 = vld [vmem:[#allocation2 + $0x10] sm:$0xff]  ;;  %vm1385_vm11 = vcmask 121856   ;;  %vm1387_vm12 = vcmask 162816  }
  0x24   : > { %527 = vst.msk [vmem:[#allocation2 + $0x64] sm:$0xff] %vm481_vm0, %v519_v26  ;;  %528 = vst.msk [vmem:[#allocation2 + $0x74] sm:$0xff] %vm481_vm0, %v520_v27  ;;  %v588_v27 = vld [vmem:[#allocation2 + $0xe0] sm:$0xff]  ;;  %vm1389_vm13 = vcmask 203776   ;;  %vm1391_vm14 = vcmask 244736   ;;  %vm1393_vm15 = vcmask 285696  }
  0x25   : > { %531 = vst.msk [vmem:[#allocation2 + $0xa4] sm:$0xff] %vm481_vm0, %v523_v28  ;;  %532 = vst.msk [vmem:[#allocation2 + $0xb4] sm:$0xff] %vm481_vm0, %v524_v29  ;;  %4973 = vmatpush1.bf16.msra.mxu0 %v4972_v53  ;;  %v596_v28 = vld [vmem:[#allocation2 + $0xe4] sm:$0xff]  ;;  %vm1395_vm1 = vcmask 326656  }
  0x26   : > { %4974 = vmatprep.subr.bf16.mxu0 %v8080_v1 }
  0x29   : > { %v6227_v33 = vld [vmem:[#allocation2 + $0x40] sm:$0xff]  ;;  %v6229_v34 = vld [vmem:[#allocation2 + $0x50] sm:$0xff]  ;;  %v573_v35 = vld [vmem:[#allocation2 + $0x48] sm:$0xff]  ;;  %4976 = vmatpush1.bf16.msra.mxu0 %v4975_v62 }
  0x2a   : > { %v5280_v37 = vpack.i.bf16 %v6229_v34, %v6227_v33  ;;  %v574_v38 = vld [vmem:[#allocation2 + $0x58] sm:$0xff]  ;;  %v6236_v39 = vld [vmem:[#allocation2 + $0x44] sm:$0xff]  ;;  %v583_v50 = vld [vmem:[#allocation2 + $0x90] sm:$0xff]  ;;  %4977 = vmatprep.subr.bf16.mxu0 %v8080_v1 }
  0x2b   : > { %v6238_v40 = vld [vmem:[#allocation2 + $0x54] sm:$0xff]  ;;  %v6240_v42 = vpack.i.bf16 %v574_v38, %v573_v35  ;;  %v6242_v43 = vld [vmem:[#allocation2 + $0x84] sm:$0xff] }
  0x2c   : > { %v6244_v44 = vld [vmem:[#allocation2 + $0x88] sm:$0xff]  ;;  %5281 = vrot.lane.b32.xlu1 %v5280_v37, %s5970_s19  ;;  %v5285_v46 = vpack.i.bf16 %v6238_v40, %v6236_v39  ;;  %v591_v47 = vld [vmem:[#allocation2 + $0x94] sm:$0xff]  ;;  %v582_v49 = vld [vmem:[#allocation2 + $0x80] sm:$0xff] }
  0x2d   : > { %4475 = vmatprep.mubr.msk.f32.mxu0 %vm481_vm0, %v6244_v44  ;;  %5291 = vrot.lane.b32.xlu0 %v6240_v42, %s8073_s20  ;;  %v5300_v48 = vpack.i.bf16 %v591_v47, %v6242_v43  ;;  %v5295_v56 = vpack.i.bf16 %v583_v50, %v582_v49  ;;  %v6267_v58 = vld [vmem:[#allocation2 + $0x60] sm:$0xff]  ;;  %v6269_v59 = vld [vmem:[#allocation2 + $0x70] sm:$0xff]  ;;  %v575_v5 = vld [vmem:[#allocation2 + $0x68] sm:$0xff] }
  0x2e   : > { %v6271_v60 = vld [vmem:[#allocation2 + $0x64] sm:$0xff]  ;;  %v6273_v61 = vld [vmem:[#allocation2 + $0x74] sm:$0xff]  ;;  %v5310_v3 = vpack.i.bf16 %v6269_v59, %v6267_v58  ;;  %4979 = vmatpush1.bf16.msra.mxu0 %v4978_v9 }
  0x2f   : > { %v5315_v4 = vpack.i.bf16 %v6273_v61, %v6271_v60  ;;  %v576_v6 = vld [vmem:[#allocation2 + $0x78] sm:$0xff]  ;;  %v584_v7 = vld [vmem:[#allocation2 + $0xa0] sm:$0xff]  ;;  %v585_v8 = vld [vmem:[#allocation2 + $0xb0] sm:$0xff]  ;;  %4980 = vmatprep.subr.bf16.mxu0 %v8080_v1 }
  0x30   : > { %5286 = vrot.lane.b32.xlu1 %v5285_v46, %s8065_s27  ;;  %v5320_v12 = vpack.i.bf16 %v576_v6, %v575_v5  ;;  %v5325_v13 = vpack.i.bf16 %v585_v8, %v584_v7  ;;  %v592_v14 = vld [vmem:[#allocation2 + $0xa4] sm:$0xff]  ;;  %v593_v15 = vld [vmem:[#allocation2 + $0xb4] sm:$0xff] }
  0x31   : > { %5301 = vrot.lane.b32.xlu0 %v5300_v48, %s8071_s16  ;;  %v5330_v17 = vpack.i.bf16 %v593_v15, %v592_v14  ;;  %v6303_v18 = vld [vmem:[#allocation2 + $0x98] sm:$0xff]  ;;  %v6318_v26 = vld [vmem:[#allocation2 + $0xa8] sm:$0xff]  ;;  %v533_v38 = vld [vmem:[#allocation2] sm:$0xff] }
  0x32   : > { %4982 = vmatpush1.bf16.msra.mxu0 %v4981_v16  ;;  %v5355_v19 = vpack.i.bf16 %v6303_v18, %v6244_v44  ;;  %v6323_v29 = vld [vmem:[#allocation2 + $0xb8] sm:$0xff]  ;;  %v535_v5 = vld [vmem:[#allocation2 + $0x20] sm:$0xff] }
  0x33   : > { %5030 = vmatprep.subr.bf16.mxu0 %v8080_v1 }
  0x34   : > { %5296 = vrot.lane.b32.xlu1 %v5295_v56, %s8069_s23 }
  0x35   : > { %5306 = vrot.lane.b32.xlu0 %v5305_v57, %s8075_s28 }
  0x38   : > { %5311 = vrot.lane.b32.xlu1 %v5310_v3, %s5970_s19 }
  0x39   : > { %5316 = vrot.lane.b32.xlu0 %v5315_v4, %s8065_s27 }
  0x3c   : > { %5321 = vrot.lane.b32.xlu1 %v5320_v12, %s8073_s20 }
  0x3d   : > { %5326 = vrot.lane.b32.xlu0 %v5325_v13, %s8069_s23 }
  0x40   : > { %5331 = vrot.lane.b32.xlu1 %v5330_v17, %s8071_s16 }
  0x41   : > { %5336 = vrot.lane.b32.xlu0 %v5285_v46, %s8077_s22 }
  0x44   : > { %5341 = vrot.lane.b32.xlu1 %v6240_v42, %s8075_s28 }
  0x45   : > { %5346 = vrot.lane.b32.xlu0 %v5295_v56, %s5970_s19 }
  0x48   : > { %5351 = vrot.lane.b32.xlu1 %v5300_v48, %s8065_s27 }
  0x49   : > { %5356 = vrot.lane.b32.xlu0 %v5355_v19, %s8073_s20 }
  0x4c   : > { %5361 = vrot.lane.b32.xlu1 %v5360_v24, %s8069_s23 }
  0x4d   : > { %5366 = vrot.lane.b32.xlu0 %v5365_v25, %s8071_s16 }
  0x50   : > { %5371 = vrot.lane.b32.xlu1 %v5315_v4, %s8077_s22  ;;  %v536_v4 = vld [vmem:[#allocation2 + $0x30] sm:$0xff] }
  0x51   : > { %5376 = vrot.lane.b32.xlu0 %v5320_v12, %s8075_s28 }
  0x54   : > { %5381 = vrot.lane.b32.xlu1 %v5325_v13, %s5970_s19 }
  0x55   : > { %5386 = vrot.lane.b32.xlu0 %v5330_v17, %s8065_s27  ;;  %s5980_s27 = smov 30  }
  0x58   : > { %754 = vrot.lane.b32.xlu1 %v6318_v26, %s8073_s20 }
  0x59   : > { %786 = vrot.lane.b32.xlu0 %v588_v27, %s8069_s23 }
  0x5c   : > { %818 = vrot.lane.b32.xlu1 %v596_v28, %s8071_s16 }
  0x5d   : > { %756 = vrot.lane.b32.xlu0 %v6323_v29, %s8073_s20 }
  0x60   : > { %788 = vrot.lane.b32.xlu1 %v589_v30, %s8069_s23 }
  0x61   : > { %820 = vrot.lane.b32.xlu0 %v597_v31, %s8071_s16 }
  0x8b   : > { %v5267_v32 = vpop.permute.xlu0 %5266 }
  0x8c   : > { %v5268_v37 = vunpack.i.l.bf16 %v5267_v32  ;;  %v5269_v42 = vunpack.i.h.bf16 %v5267_v32 }
  0x8d   : > { %v5277_v35 = vpop.permute.xlu1 %5276 }
  0x8e   : > { %v830_v48 = vsel %vm481_vm0, %v533_v38, %v5268_v37  ;;  %v831_v51 = vsel %vm481_vm0, %v534_v45, %v5269_v42  ;;  %v5279_v63 = vunpack.i.h.bf16 %v5277_v35  ;;  %v5278_v2 = vunpack.i.l.bf16 %v5277_v35 }
  0x8f   : > { %v5272_v36 = vpop.permute.xlu0 %5271 }
  0x90   : > { %v5273_v41 = vunpack.i.l.bf16 %v5272_v36  ;;  %v5274_v46 = vunpack.i.h.bf16 %v5272_v36  ;;  %v833_v19 = vsel %vm481_vm0, %v536_v4, %v5279_v63  ;;  %v832_v20 = vsel %vm481_vm0, %v535_v5, %v5278_v2 }
  0x92   : > { %v839_v50 = vsel %vm838_vm2, %v830_v48, %v5273_v41  ;;  %v840_v54 = vsel %vm838_vm2, %v831_v51, %v5274_v46 }
  0x9e   : > { %v5282_v44 = vpop.permute.xlu1 %5281 }
  0x9f   : > { %v5292_v47 = vpop.permute.xlu0 %5291  ;;  %v5283_v49 = vunpack.i.l.bf16 %v5282_v44  ;;  %v5284_v52 = vunpack.i.h.bf16 %v5282_v44 }
  0xa0   : > { %v5293_v7 = vunpack.i.l.bf16 %v5292_v47  ;;  %v5294_v9 = vunpack.i.h.bf16 %v5292_v47 }
  0xa1   : > { %v848_v62 = vsel %vm847_vm3, %v839_v50, %v5283_v49  ;;  %v849_v6 = vsel %vm847_vm3, %v840_v54, %v5284_v52 }
  0xa2   : > { %v6333_v53 = vpop.permute.xlu1 %5286 }
  0xa3   : > { %v5289_v55 = vunpack.i.h.bf16 %v6333_v53  ;;  %v5288_v56 = vunpack.i.l.bf16 %v6333_v53  ;;  %v5302_v57 = vpop.permute.xlu0 %5301  ;;  %v1417_v53 = vld [vmem:[%s8059_s10 + $0x30] sm:$0xff] }
  0xa4   : > { %v5303_v14 = vunpack.i.l.bf16 %v5302_v57  ;;  %v5304_v35 = vunpack.i.h.bf16 %v5302_v57 }
  0xa5   : > { %v857_v3 = vsel %vm856_vm4, %v848_v62, %v5288_v56  ;;  %v858_v10 = vsel %vm856_vm4, %v849_v6, %v5289_v55 }
  0xa6   : > { %v5297_v8 = vpop.permute.xlu1 %5296  ;;  %v866_v17 = vsel %vm865_vm5, %v857_v3, %v5293_v7  ;;  %v867_v27 = vsel %vm865_vm5, %v858_v10, %v5294_v9 }
  0xa7   : > { %v5299_v11 = vunpack.i.h.bf16 %v5297_v8  ;;  %v5298_v12 = vunpack.i.l.bf16 %v5297_v8  ;;  %v5307_v13 = vpop.permute.xlu0 %5306 }
  0xa8   : > { %v5309_v15 = vunpack.i.h.bf16 %v5307_v13  ;;  %v5308_v16 = vunpack.i.l.bf16 %v5307_v13 }
  0xa9   : > { %v875_v21 = vsel %vm8068_vm6, %v866_v17, %v5298_v12  ;;  %v876_v32 = vsel %vm8068_vm6, %v867_v27, %v5299_v11 }
  0xaa   : > { %v842_v22 = vsel %vm838_vm2, %v833_v19, %v5309_v15  ;;  %v841_v23 = vsel %vm838_vm2, %v832_v20, %v5308_v16  ;;  %v5312_v24 = vpop.permute.xlu1 %5311  ;;  %v884_v25 = vsel %vm8067_vm7, %v875_v21, %v5303_v14  ;;  %v885_v45 = vsel %vm8067_vm7, %v876_v32, %v5304_v35  ;;  %v602_v14 = vld [vmem:[#allocation2 + $0xc8] sm:$0xff] }
  0xab   : > { %v5314_v28 = vunpack.i.h.bf16 %v5312_v24  ;;  %v5313_v30 = vunpack.i.l.bf16 %v5312_v24  ;;  %1003 = vmatmul.mubr.f32.vlgmr.msra.gmra.mrb[0].mxu0 %v884_v25  ;;  %v6354_v31 = vpop.permute.xlu0 %5316 }
  0xac   : > { %v5319_v36 = vunpack.i.h.bf16 %v6354_v31  ;;  %v5318_v37 = vunpack.i.l.bf16 %v6354_v31  ;;  %4476 = vmatprep.mubr.msk.f32.mxu0 %vm481_vm0, %v6303_v18 }
  0xad   : > { %v851_v38 = vsel %vm847_vm3, %v842_v22, %v5314_v28  ;;  %v850_v41 = vsel %vm847_vm3, %v841_v23, %v5313_v30 }
  0xae   : > { %v859_v42 = vsel %vm856_vm4, %v850_v41, %v5318_v37  ;;  %v5322_v44 = vpop.permute.xlu1 %5321  ;;  %v860_v49 = vsel %vm856_vm4, %v851_v38, %v5319_v36 }
  0xaf   : > { %v5324_v46 = vunpack.i.h.bf16 %v5322_v44  ;;  %v5323_v47 = vunpack.i.l.bf16 %v5322_v44  ;;  %1008 = vmatmul.mubr.f32.gmra.mrb[2].mxu0 %v885_v45  ;;  %v5327_v48 = vpop.permute.xlu0 %5326  ;;  %v603_v44 = vld [vmem:[#allocation2 + $0xd8] sm:$0xff] }
  0xb0   : > { %v5328_v18 = vunpack.i.l.bf16 %v5327_v48  ;;  %4477 = vmatprep.mubr.msk.f32.mxu0 %vm481_vm0, %v6318_v26  ;;  %v5329_v51 = vunpack.i.h.bf16 %v5327_v48 }
  0xb1   : > { %v868_v50 = vsel %vm865_vm5, %v859_v42, %v5323_v47  ;;  %v869_v63 = vsel %vm865_vm5, %v860_v49, %v5324_v46 }
  0xb2   : > { %v5332_v52 = vpop.permute.xlu1 %5331  ;;  %v877_v54 = vsel %vm8068_vm6, %v868_v50, %v5328_v18  ;;  %v878_v8 = vsel %vm8068_vm6, %v869_v63, %v5329_v51 }
  0xb3   : > { %v5333_v57 = vunpack.i.l.bf16 %v5332_v52  ;;  %v5337_v62 = vpop.permute.xlu0 %5336  ;;  %v5334_v4 = vunpack.i.h.bf16 %v5332_v52 }
  0xb4   : > { %v5339_v2 = vunpack.i.h.bf16 %v5337_v62  ;;  %v5338_v3 = vunpack.i.l.bf16 %v5337_v62 }
  0xb5   : > { %v886_v5 = vsel %vm8067_vm7, %v877_v54, %v5333_v57  ;;  %v887_v16 = vsel %vm8067_vm7, %v878_v8, %v5334_v4  ;;  %v604_v57 = vld [vmem:[#allocation2 + $0xe8] sm:$0xff] }
  0xb6   : > { %v835_v6 = vsel %vm481_vm0, %v6229_v34, %v5339_v2  ;;  %v834_v26 = vsel %vm481_vm0, %v6227_v33, %v5338_v3  ;;  %1013 = vmatmul.mubr.f32.gmra.mrb[4].mxu0 %v886_v5  ;;  %v5342_v7 = vpop.permute.xlu1 %5341 }
  0xb7   : > { %v5344_v9 = vunpack.i.h.bf16 %v5342_v7  ;;  %v5343_v10 = vunpack.i.l.bf16 %v5342_v7  ;;  %v5347_v11 = vpop.permute.xlu0 %5346  ;;  %4478 = vmatprep.mubr.msk.f32.mxu0 %vm481_vm0, %v6323_v29 }
  0xb8   : > { %v5349_v12 = vunpack.i.h.bf16 %v5347_v11  ;;  %v5348_v13 = vunpack.i.l.bf16 %v5347_v11 }
  0xb9   : > { %v843_v15 = vsel %vm838_vm2, %v834_v26, %v5343_v10  ;;  %v844_v34 = vsel %vm838_vm2, %v835_v6, %v5344_v9 }
  0xba   : > { %v852_v33 = vsel %vm847_vm3, %v843_v15, %v5348_v13  ;;  %v853_v17 = vsel %vm847_vm3, %v844_v34, %v5349_v12  ;;  %1018 = vmatmul.mubr.f32.gmra.mrb[6].mxu0 %v887_v16  ;;  %v6388_v19 = vpop.permute.xlu1 %5351  ;;  %v605_v15 = vld [vmem:[#allocation2 + $0xf8] sm:$0xff] }
  0xbb   : > { %v5354_v20 = vunpack.i.h.bf16 %v6388_v19  ;;  %v5353_v29 = vunpack.i.l.bf16 %v6388_v19  ;;  %v5357_v21 = vpop.permute.xlu0 %5356  ;;  %4479 = vmatprep.mubr.msk.f32.mxu0 %vm481_vm0, %v602_v14  ;;  %v1504_v19 = vld [vmem:[%s8060_s11 + $0x30] sm:$0xff] }
  0xbc   : > { %v5359_v22 = vunpack.i.h.bf16 %v5357_v21  ;;  %v5358_v23 = vunpack.i.l.bf16 %v5357_v21 }
  0xbd   : > { %v861_v24 = vsel %vm856_vm4, %v852_v33, %v5353_v29  ;;  %v862_v25 = vsel %vm856_vm4, %v853_v17, %v5354_v20 }
  0xbe   : > { %v5362_v27 = vpop.permute.xlu1 %5361  ;;  %v870_v28 = vsel %vm865_vm5, %v861_v24, %v5358_v23  ;;  %v871_v41 = vsel %vm865_vm5, %v862_v25, %v5359_v22  ;;  %v1051_v25 = vld [vmem:[%s8051_s2] sm:$0xff] }
  0xbf   : > { %v5364_v30 = vunpack.i.h.bf16 %v5362_v27  ;;  %v5363_v32 = vunpack.i.l.bf16 %v5362_v27  ;;  %v5367_v35 = vpop.permute.xlu0 %5366  ;;  %v1052_v27 = vld [vmem:[%s8051_s2 + $0x8] sm:$0xff] }
  0xc0   : > { %v5368_v38 = vunpack.i.l.bf16 %v5367_v35  ;;  %v5369_v45 = vunpack.i.h.bf16 %v5367_v35 }
  0xc1   : > { %v879_v42 = vsel %vm8068_vm6, %v870_v28, %v5363_v32  ;;  %v880_v50 = vsel %vm8068_vm6, %v871_v41, %v5364_v30  ;;  %v4983_v28 = vpack.c.bf16 %v1052_v27, %v1051_v25  ;;  %v1053_v30 = vld [vmem:[%s8051_s2 + $0x10] sm:$0xff]  ;;  %v1054_v32 = vld [vmem:[%s8051_s2 + $0x18] sm:$0xff] }
  0xc2   : > { %v5372_v46 = vpop.permute.xlu1 %5371  ;;  %v888_v47 = vsel %vm8067_vm7, %v879_v42, %v5368_v38  ;;  %v889_v3 = vsel %vm8067_vm7, %v880_v50, %v5369_v45  ;;  %v4987_v35 = vpack.c.bf16 %v1054_v32, %v1053_v30  ;;  %v910_v38 = vlaneseq }
  0xc3   : > { %v5374_v48 = vunpack.i.h.bf16 %v5372_v46  ;;  %v5373_v49 = vunpack.i.l.bf16 %v5372_v46  ;;  %v5377_v18 = vpop.permute.xlu0 %5376  ;;  %1023 = vmatmul.mubr.f32.gmra.mrb[8].mxu0 %v888_v47  ;;  %4984 = vmatprep.subr.bf16.mxu1 %v4983_v28 }
  0xc4   : > { %v5378_v51 = vunpack.i.l.bf16 %v5377_v18  ;;  %4480 = vmatprep.mubr.msk.f32.mxu0 %vm481_vm0, %v603_v44  ;;  %v5379_v54 = vunpack.i.h.bf16 %v5377_v18  ;;  %4986 = vmatpush3.bf16.msra.mxu1 %v4983_v28  ;;  %v6445_v41 = vshrl.u32 %v910_v38, 7  ;;  %v479_v44 = vld [vmem:[%s8061_s12] sm:$0xff] }
  0xc5   : > { %v836_v52 = vsel %vm481_vm0, %v6267_v58, %v5373_v49  ;;  %v837_v62 = vsel %vm481_vm0, %v6269_v59, %v5374_v48  ;;  %4988 = vmatprep.subr.bf16.mxu1 %v4987_v35 }
  0xc6   : > { %v845_v63 = vsel %vm838_vm2, %v836_v52, %v5378_v51  ;;  %v5382_v2 = vpop.permute.xlu1 %5381  ;;  %v846_v58 = vsel %vm838_vm2, %v837_v62, %v5379_v54  ;;  %v6448_v42 = vsub.s32 0, %v6445_v41 }
  0xc7   : > { %v5383_v4 = vunpack.i.l.bf16 %v5382_v2  ;;  %v6411_v5 = vpop.permute.xlu0 %5386  ;;  %1028 = vmatmul.mubr.f32.gmra.mrb[10].mxu0 %v889_v3  ;;  %v5384_v6 = vunpack.i.h.bf16 %v5382_v2 }
  0xc8   : > { %v5388_v26 = vunpack.i.l.bf16 %v6411_v5  ;;  %4481 = vmatprep.mubr.msk.f32.mxu0 %vm481_vm0, %v604_v57  ;;  %v5389_v9 = vunpack.i.h.bf16 %v6411_v5  ;;  %4990 = vmatpush3.bf16.msra.mxu1 %v4987_v35  ;;  %8090 = vst [vmem:[#allocation4_spill] sm:$0xff] %v6448_v42  ;;  %v913_v45 = vrot.slane %v479_v44, %v6448_v42  ;;  %v1511_v5 = vld [vmem:[%s8060_s11 + $0x68] sm:$0xff] }
  0xc9   : > { %v854_v7 = vsel %vm847_vm3, %v845_v63, %v5383_v4  ;;  %v855_v13 = vsel %vm847_vm3, %v846_v58, %v5384_v6  ;;  %4991 = vmatprep.subr.bf16.mxu1 %v8080_v1 }
  0xca   : > { %v755_v8 = vpop.permute.xlu1 %754  ;;  %v863_v59 = vsel %vm856_vm4, %v854_v7, %v5388_v26  ;;  %v864_v16 = vsel %vm856_vm4, %v855_v13, %v5389_v9 }
  0xcb   : > { %v872_v10 = vsel %vm865_vm5, %v863_v59, %v755_v8  ;;  %v787_v11 = vpop.permute.xlu0 %786 }
  0xcc   : > { %v881_v12 = vsel %vm8068_vm6, %v872_v10, %v787_v11 }
  0xce   : > { %v819_v14 = vpop.permute.xlu1 %818 }
  0xcf   : > { %v757_v34 = vpop.permute.xlu0 %756  ;;  %v890_v33 = vsel %vm8067_vm7, %v881_v12, %v819_v14 }
  0xd0   : > { %v873_v17 = vsel %vm865_vm5, %v864_v16, %v757_v34  ;;  %1033 = vmatmul.mubr.f32.gmra.mrb[12].mxu0 %v890_v33 }
  0xd1   : > { %4482 = vmatprep.mubr.msk.f32.mxu0 %vm481_vm0, %v605_v15 }
  0xd2   : > { %v789_v21 = vpop.permute.xlu1 %788 }
  0xd3   : > { %v882_v22 = vsel %vm8068_vm6, %v873_v17, %v789_v21  ;;  %v821_v23 = vpop.permute.xlu0 %820 }
  0xd4   : > { %v891_v24 = vsel %vm8067_vm7, %v882_v22, %v821_v23  ;;  %v1057_v23 = vsub.s32 1, %v6445_v41 }
  0xd5   : > { %1038 = vmatmul.mubr.f32.gmra.mrb[14].mxu0 %v891_v24 }
  0xd6   : > { %v1058_v24 = vrot.slane %v479_v44, %v1057_v23 }
 0x17e   : > { %v1004_v46 = vpop.f32.mrb[0].mxu0 }
 0x17f   : > { %v1005_v47 = vadd.f32 %v1004_v46, %v913_v45  ;;  %v1006_v48 = vpop.f32.mrb[1].mxu0 }
 0x181   : > { %v1043_v49 = vmax.f32 %v1005_v47, 0.0 }
 0x182   : > { %v1009_v18 = vpop.f32.mrb[2].mxu0 }
 0x183   : > { %v1010_v50 = vadd.f32 %v1009_v18, %v913_v45  ;;  %v1011_v51 = vpop.f32.mrb[3].mxu0  ;;  %4715 = vmatprep.mubr.msk.f32.mxu1 %vm838_vm2, %v1043_v49 }
 0x185   : > { %v1044_v52 = vmax.f32 %v1010_v50, 0.0 }
 0x187   : > { %4716 = vmatmul.mubr.msk.f32.vlgmr.msra.gmra.mrb[0].mxu1 %vm838_vm2, %v1044_v52 }
 0x189   : > { %v1014_v54 = vpop.f32.mrb[4].mxu0 }
 0x18a   : > { %v1015_v57 = vadd.f32 %v1014_v54, %v913_v45  ;;  %v1016_v62 = vpop.f32.mrb[5].mxu0 }
 0x18c   : > { %v1045_v63 = vmax.f32 %v1015_v57, 0.0 }
 0x18d   : > { %v1019_v2 = vpop.f32.mrb[6].mxu0 }
 0x18e   : > { %v1020_v3 = vadd.f32 %v1019_v2, %v913_v45  ;;  %v1021_v4 = vpop.f32.mrb[7].mxu0  ;;  %4718 = vmatprep.mubr.msk.f32.mxu1 %vm838_vm2, %v1045_v63 }
 0x190   : > { %v1046_v6 = vmax.f32 %v1020_v3, 0.0 }
 0x192   : > { %4719 = vmatmul.mubr.msk.f32.gmra.mrb[2].mxu1 %vm838_vm2, %v1046_v6  ;;  %v6471_v6 = vld [vmem:[#allocation2 + $0x55] sm:$0xff] }
 0x193   : > { %4493 = vmatprep.mubr.msk.f32.mxu0 %vm481_vm0, %v6471_v6 }
 0x196   : > { %v1024_v58 = vpop.f32.mrb[8].mxu0 }
 0x197   : > { %v1025_v7 = vadd.f32 %v1024_v58, %v913_v45  ;;  %v1026_v8 = vpop.f32.mrb[9].mxu0 }
 0x199   : > { %v1047_v59 = vmax.f32 %v1025_v7, 0.0 }
 0x19a   : > { %v1029_v10 = vpop.f32.mrb[10].mxu0 }
 0x19b   : > { %v1030_v11 = vadd.f32 %v1029_v10, %v913_v45  ;;  %v1031_v12 = vpop.f32.mrb[11].mxu0  ;;  %4721 = vmatprep.mubr.msk.f32.mxu1 %vm838_vm2, %v1047_v59 }
 0x19d   : > { %v1048_v13 = vmax.f32 %v1030_v11, 0.0 }
 0x19f   : > { %4722 = vmatmul.mubr.msk.f32.gmra.mrb[4].mxu1 %vm838_vm2, %v1048_v13 }
 0x1a3   : > { %v1034_v14 = vpop.f32.mrb[12].mxu0 }
 0x1a4   : > { %v1035_v15 = vadd.f32 %v1034_v14, %v913_v45  ;;  %v1036_v34 = vpop.f32.mrb[13].mxu0 }
 0x1a6   : > { %v1049_v16 = vmax.f32 %v1035_v15, 0.0 }
 0x1a8   : > { %4724 = vmatprep.mubr.msk.f32.mxu1 %vm838_vm2, %v1049_v16  ;;  %v1039_v33 = vpop.f32.mrb[14].mxu0 }
 0x1a9   : > { %v1040_v17 = vadd.f32 %v1039_v33, %v913_v45  ;;  %v1041_v21 = vpop.f32.mrb[15].mxu0 }
 0x1ab   : > { %v1050_v22 = vmax.f32 %v1040_v17, 0.0 }
 0x1ad   : > { %4725 = vmatmul.mubr.msk.f32.gmra.mrb[6].mxu1 %vm838_vm2, %v1050_v22 }
 0x1ae   : > { %4747 = vmatprep.mubr.msk.f32.mxu1 %vm5987_vm9, %v8079_v0 }
 0x25a   : > { %v4717_v25 = vpop.f32.mrb[0].mxu1 }
 0x25b   : > { %v1155_v27 = vadd.f32 %v4717_v25, %v1058_v24  ;;  %v1149_v28 = vpop.f32.mrb[1].mxu1 }
 0x25c   : > { %v1150_v30 = vadd.f32 %v1149_v28, %v1058_v24 }
 0x25d   : > { %v1192_v32 = vsel %vm1188_vm8, %v1155_v27, -inf }
 0x25e   : > { %1193 = vmax.xlane.f32.xlu0 %v1192_v32  ;;  %v1189_v35 = vsel %vm1188_vm8, %v1150_v30, -inf }
 0x25f   : > { %1190 = vmax.xlane.f32.xlu1 %v1189_v35 }
 0x265   : > { %v4720_v38 = vpop.f32.mrb[2].mxu1 }
 0x266   : > { %v1165_v45 = vadd.f32 %v4720_v38, %v1058_v24  ;;  %v1159_v46 = vpop.f32.mrb[3].mxu1 }
 0x267   : > { %v1160_v47 = vadd.f32 %v1159_v46, %v1058_v24 }
 0x268   : > { %v1198_v48 = vsel %vm1188_vm8, %v1165_v45, -inf }
 0x269   : > { %1199 = vmax.xlane.f32.xlu1 %v1198_v48  ;;  %v1195_v44 = vsel %vm1188_vm8, %v1160_v47, -inf }
 0x26a   : > { %1196 = vmax.xlane.f32.xlu0 %v1195_v44 }
 0x272   : > { %v4723_v49 = vpop.f32.mrb[4].mxu1 }
 0x273   : > { %v1175_v18 = vadd.f32 %v4723_v49, %v1058_v24  ;;  %v1169_v50 = vpop.f32.mrb[5].mxu1 }
 0x274   : > { %v1170_v51 = vadd.f32 %v1169_v50, %v1058_v24 }
 0x275   : > { %v1204_v52 = vsel %vm1188_vm8, %v1175_v18, -inf }
 0x276   : > { %1205 = vmax.xlane.f32.xlu1 %v1204_v52  ;;  %v1201_v54 = vsel %vm1188_vm8, %v1170_v51, -inf }
 0x277   : > { %1202 = vmax.xlane.f32.xlu0 %v1201_v54 }
 0x280   : > { %v4726_v57 = vpop.f32.mrb[6].mxu1 }
 0x281   : > { %v1185_v62 = vadd.f32 %v4726_v57, %v1058_v24  ;;  %v1179_v63 = vpop.f32.mrb[7].mxu1  ;;  %v1904_v57 = vld [vmem:[%s8052_s3] sm:$0xff] }
 0x282   : > { %v1180_v2 = vadd.f32 %v1179_v63, %v1058_v24 }
 0x283   : > { %v1210_v3 = vsel %vm1188_vm8, %v1185_v62, -inf }
 0x284   : > { %1211 = vmax.xlane.f32.xlu1 %v1210_v3  ;;  %v1207_v4 = vsel %vm1188_vm8, %v1180_v2, -inf }
 0x285   : > { %1208 = vmax.xlane.f32.xlu0 %v1207_v4 }
 0x2eb   : > { %v1194_v58 = vpop.xlane.xlu0 %1193 }
 0x2ec   : > { %v1214_v7 = vsub.f32 %v1155_v27, %v1194_v58  ;;  %v1191_v8 = vpop.xlane.xlu1 %1190 }
 0x2ed   : > { %v1213_v59 = vsub.f32 %v1150_v30, %v1191_v8  ;;  %v1907_v8 = vld [vmem:[%s8052_s3 + $0x18] sm:$0xff] }
 0x2ee   : > { %v1223_v10 = vmul.f32 1.442695, %v1214_v7  ;;  %v1906_v7 = vld [vmem:[%s8052_s3 + $0x10] sm:$0xff] }
 0x2ef   : > { %v1221_v11 = vmul.f32 1.442695, %v1213_v59  ;;  %v5034_v59 = vpack.c.bf16 %v1907_v8, %v1906_v7  ;;  %v1921_v7 = vld [vmem:[%s8052_s3 + $0x88] sm:$0xff] }
 0x2f0   : > { %5900 = vpow2.f32 %v1223_v10  ;;  %v1908_v10 = vld [vmem:[%s8052_s3 + $0x20] sm:$0xff] }
 0x2f1   : > { %5902 = vpow2.f32 %v1221_v11  ;;  %v1909_v11 = vld [vmem:[%s8052_s3 + $0x28] sm:$0xff] }
 0x2f2   : > { %v6597_v8 = vld [vmem:[#allocation2 + $0x85] sm:$0xff] }
 0x2f6   : > { %v1200_v12 = vpop.xlane.xlu1 %1199 }
 0x2f7   : > { %v1216_v13 = vsub.f32 %v1165_v45, %v1200_v12  ;;  %v1197_v14 = vpop.xlane.xlu0 %1196  ;;  %v5037_v12 = vpack.c.bf16 %v1909_v11, %v1908_v10  ;;  %v6600_v10 = vld [vmem:[#allocation2 + $0x75] sm:$0xff] }
 0x2f8   : > { %v1215_v15 = vsub.f32 %v1160_v47, %v1197_v14  ;;  %v1911_v14 = vld [vmem:[%s8052_s3 + $0x38] sm:$0xff]  ;;  %v5455_v11 = vpack.i.bf16 %v6597_v8, %v6600_v10 }
 0x2f9   : > { %v1227_v34 = vmul.f32 1.442695, %v1216_v13  ;;  %v1910_v13 = vld [vmem:[%s8052_s3 + $0x30] sm:$0xff] }
 0x2fa   : > { %v6475_v16 = vpop.eup %5900  ;;  %v1225_v33 = vmul.f32 1.442695, %v1215_v15  ;;  %v1607_v15 = vld [vmem:[#allocation2 + $0x35] sm:$0xff] }
 0x2fb   : > { %v6477_v17 = vpop.eup %5902  ;;  %5904 = vpow2.f32 %v1227_v34  ;;  %v1240_v21 = vsel %vm1188_vm8, %v6475_v16, 0.0  ;;  %v1608_v34 = vld [vmem:[#allocation2 + $0x45] sm:$0xff] }
 0x2fc   : > { %5906 = vpow2.f32 %v1225_v33  ;;  %1241 = vadd.xlane.f32.xlu1 %v1240_v21  ;;  %v1237_v22 = vsel %vm1188_vm8, %v6477_v17, 0.0  ;;  %v5040_v33 = vpack.c.bf16 %v1911_v14, %v1910_v13  ;;  %v5395_v21 = vpack.i.bf16 %v1608_v34, %v1607_v15  ;;  %v6611_v14 = vld [vmem:[#allocation2 + $0x83] sm:$0xff] }
 0x2fd   : > { %1238 = vadd.xlane.f32.xlu0 %v1237_v22  ;;  %v1912_v22 = vld [vmem:[%s8052_s3 + $0x40] sm:$0xff] }
 0x303   : > { %v1206_v23 = vpop.xlane.xlu1 %1205 }
 0x304   : > { %v1218_v24 = vsub.f32 %v1175_v18, %v1206_v23  ;;  %v1203_v25 = vpop.xlane.xlu0 %1202  ;;  %v1913_v23 = vld [vmem:[%s8052_s3 + $0x48] sm:$0xff] }
 0x305   : > { %v6483_v27 = vpop.eup %5904  ;;  %v1217_v28 = vsub.f32 %v1170_v51, %v1203_v25  ;;  %v6543_v25 = vld [vmem:[#allocation2 + $0x53] sm:$0xff] }
 0x306   : > { %v6485_v30 = vpop.eup %5906  ;;  %v1231_v32 = vmul.f32 1.442695, %v1218_v24  ;;  %v1246_v35 = vsel %vm1188_vm8, %v6483_v27, 0.0  ;;  %v6541_v24 = vld [vmem:[#allocation2 + $0x43] sm:$0xff] }
 0x307   : > { %v1229_v38 = vmul.f32 1.442695, %v1217_v28  ;;  %1247 = vadd.xlane.f32.xlu1 %v1246_v35  ;;  %v1243_v45 = vsel %vm1188_vm8, %v6485_v30, 0.0  ;;  %v5043_v28 = vpack.c.bf16 %v1913_v23, %v1912_v22  ;;  %v5400_v35 = vpack.i.bf16 %v6543_v25, %v6541_v24 }
 0x308   : > { %5908 = vpow2.f32 %v1231_v32  ;;  %1244 = vadd.xlane.f32.xlu0 %v1243_v45  ;;  %v1599_v32 = vld [vmem:[#allocation2 + $0x34] sm:$0xff] }
 0x309   : > { %5910 = vpow2.f32 %v1229_v38  ;;  %v1914_v38 = vld [vmem:[%s8052_s3 + $0x50] sm:$0xff]  ;;  %v1915_v45 = vld [vmem:[%s8052_s3 + $0x58] sm:$0xff] }
 0x311   : > { %v1212_v46 = vpop.xlane.xlu1 %1211 }
 0x312   : > { %v6491_v47 = vpop.eup %5908  ;;  %v1220_v48 = vsub.f32 %v1185_v62, %v1212_v46  ;;  %v1209_v44 = vpop.xlane.xlu0 %1208  ;;  %v1905_v62 = vld [vmem:[%s8052_s3 + $0x8] sm:$0xff]  ;;  %v5046_v46 = vpack.c.bf16 %v1915_v45, %v1914_v38 }
 0x313   : > { %v6493_v49 = vpop.eup %5910  ;;  %v1219_v18 = vsub.f32 %v1180_v2, %v1209_v44  ;;  %v1252_v50 = vsel %vm1188_vm8, %v6491_v47, 0.0  ;;  %v5031_v2 = vpack.c.bf16 %v1905_v62, %v1904_v57  ;;  %v5420_v44 = vpack.i.bf16 %v6271_v60, %v6238_v40  ;;  %v1918_v60 = vld [vmem:[%s8052_s3 + $0x70] sm:$0xff]  ;;  %v1919_v57 = vld [vmem:[%s8052_s3 + $0x78] sm:$0xff] }
 0x314   : > { %v1235_v51 = vmul.f32 1.442695, %v1220_v48  ;;  %1253 = vadd.xlane.f32.xlu1 %v1252_v50  ;;  %v1249_v52 = vsel %vm1188_vm8, %v6493_v49, 0.0  ;;  %v5390_v48 = vpack.i.bf16 %v6236_v39, %v1599_v32  ;;  %v1917_v50 = vld [vmem:[%s8052_s3 + $0x68] sm:$0xff]  ;;  %v5405_v39 = vpack.i.bf16 %v6471_v6, %v1608_v34  ;;  %v6582_v62 = vld [vmem:[#allocation2 + $0x73] sm:$0xff] }
 0x315   : > { %v1233_v54 = vmul.f32 1.442695, %v1219_v18  ;;  %1250 = vadd.xlane.f32.xlu0 %v1249_v52  ;;  %5032 = vmatpush1.bf16.msra.mxu0 %v5031_v2  ;;  %v1916_v18 = vld [vmem:[%s8052_s3 + $0x60] sm:$0xff]  ;;  %v5052_v2 = vpack.c.bf16 %v1919_v57, %v1918_v60  ;;  %v5440_v34 = vpack.i.bf16 %v6611_v14, %v6582_v62 }
 0x316   : > { %5912 = vpow2.f32 %v1235_v51  ;;  %5033 = vmatprep.subr.bf16.mxu0 %v8080_v1  ;;  %v6566_v51 = vld [vmem:[#allocation2 + $0x65] sm:$0xff]  ;;  %v5049_v52 = vpack.c.bf16 %v1917_v50, %v1916_v18 }
 0x317   : > { %5914 = vpow2.f32 %v1233_v54  ;;  %v6570_v54 = vld [vmem:[#allocation2 + $0x63] sm:$0xff]  ;;  %v5425_v40 = vpack.i.bf16 %v6566_v51, %v6471_v6  ;;  %v5435_v13 = vpack.i.bf16 %v6600_v10, %v6566_v51 }
 0x318   : > { %v5430_v6 = vpack.i.bf16 %v6582_v62, %v6570_v54 }
 0x319   : > { %5035 = vmatpush1.bf16.msra.mxu0 %v5034_v59 }
 0x31a   : > { %5036 = vmatprep.subr.bf16.mxu0 %v8080_v1 }
 0x31d   : > { %5038 = vmatpush1.bf16.msra.mxu0 %v5037_v12  ;;  %v6606_v12 = vld [vmem:[#allocation2 + $0x95] sm:$0xff] }
 0x31e   : > { %5039 = vmatprep.subr.bf16.mxu0 %v8080_v1  ;;  %v5465_v15 = vpack.i.bf16 %v6606_v12, %v6597_v8 }
 0x320   : > { %v6505_v63 = vpop.eup %5912 }
 0x321   : > { %v6507_v3 = vpop.eup %5914  ;;  %v1258_v4 = vsel %vm1188_vm8, %v6505_v63, 0.0  ;;  %5041 = vmatpush1.bf16.msra.mxu0 %v5040_v33  ;;  %v5445_v33 = vpack.i.bf16 %v6242_v43, %v6273_v61 }
 0x322   : > { %1259 = vadd.xlane.f32.xlu1 %v1258_v4  ;;  %v1255_v58 = vsel %vm1188_vm8, %v6507_v3, 0.0  ;;  %5042 = vmatprep.subr.bf16.mxu0 %v8080_v1  ;;  %v5410_v4 = vpack.i.bf16 %v6570_v54, %v6543_v25 }
 0x323   : > { %1256 = vadd.xlane.f32.xlu0 %v1255_v58  ;;  %v1920_v58 = vld [vmem:[%s8052_s3 + $0x80] sm:$0xff] }
 0x324   : > { %v5055_v59 = vpack.c.bf16 %v1921_v7, %v1920_v58 }
 0x325   : > { %5044 = vmatpush1.bf16.msra.mxu0 %v5043_v28 }
 0x326   : > { %5045 = vmatprep.subr.bf16.mxu0 %v8080_v1 }
 0x329   : > { %5047 = vmatpush1.bf16.msra.mxu0 %v5046_v46 }
 0x32a   : > { %5048 = vmatprep.subr.bf16.mxu0 %v8080_v1 }
 0x32d   : > { %5050 = vmatpush1.bf16.msra.mxu0 %v5049_v52 }
 0x32e   : > { %5051 = vmatprep.subr.bf16.mxu0 %v8080_v1 }
 0x331   : > { %5053 = vmatpush1.bf16.msra.mxu0 %v5052_v2 }
 0x332   : > { %5054 = vmatprep.subr.bf16.mxu0 %v8080_v1 }
 0x333   : > { %5396 = vrot.lane.b32.xlu1 %v5395_v21, %s8075_s28  ;;  %v6624_v21 = vld [vmem:[#allocation2 + $0x93] sm:$0xff] }
 0x334   : > { %v5460_v22 = vpack.i.bf16 %v6624_v21, %v6611_v14 }
 0x335   : > { %5056 = vmatpush1.bf16.msra.mxu0 %v5055_v59 }
 0x336   : > { %5087 = vmatprep.subr.bf16.mxu0 %v8080_v1 }
 0x337   : > { %5401 = vrot.lane.b32.xlu1 %v5400_v35, %s5970_s19 }
 0x339   : > { %5391 = vrot.lane.b32.xlu0 %v5390_v48, %s8077_s22 }
 0x33b   : > { %5421 = vrot.lane.b32.xlu1 %v5420_v44, %s8077_s22 }
 0x33d   : > { %5406 = vrot.lane.b32.xlu0 %v5405_v39, %s8073_s20 }
 0x33f   : > { %5426 = vrot.lane.b32.xlu1 %v5425_v40, %s8075_s28 }
 0x341   : > { %5411 = vrot.lane.b32.xlu0 %v5410_v4, %s8069_s23 }
 0x343   : > { %5431 = vrot.lane.b32.xlu1 %v5430_v6, %s5970_s19 }
 0x345   : > { %5416 = vrot.lane.b32.xlu0 %v5420_v44, %s8071_s16 }
 0x347   : > { %5456 = vrot.lane.b32.xlu1 %v5455_v11, %s8075_s28 }
 0x349   : > { %5436 = vrot.lane.b32.xlu0 %v5435_v13, %s8073_s20 }
 0x34b   : > { %5466 = vrot.lane.b32.xlu1 %v5465_v15, %s8073_s20 }
 0x34d   : > { %5441 = vrot.lane.b32.xlu0 %v5440_v34, %s8069_s23 }
 0x351   : > { %5446 = vrot.lane.b32.xlu0 %v5445_v33, %s8071_s16 }
 0x355   : > { %5451 = vrot.lane.b32.xlu0 %v5445_v33, %s8077_s22 }
 0x359   : > { %5461 = vrot.lane.b32.xlu0 %v5460_v22, %s5970_s19 }
 0x389   : > { %v1242_v23 = vpop.xlane.xlu1 %1241 }
 0x38a   : > { %5916 = vrcp.f32 %v1242_v23  ;;  %v1239_v28 = vpop.xlane.xlu0 %1238 }
 0x38b   : > { %5918 = vrcp.f32 %v1239_v28 }
 0x394   : > { %v5917_v32 = vpop.eup %5916  ;;  %v1248_v35 = vpop.xlane.xlu1 %1247 }
 0x395   : > { %v5919_v38 = vpop.eup %5918  ;;  %v1270_v45 = vmul.f32 %v5917_v32, %v1242_v23  ;;  %5920 = vrcp.f32 %v1248_v35  ;;  %v1245_v43 = vpop.xlane.xlu0 %1244 }
 0x396   : > { %v1269_v61 = vmul.f32 %v5919_v38, %v1239_v28  ;;  %5922 = vrcp.f32 %v1245_v43 }
 0x397   : > { %v1278_v46 = vsub.f32 2.0, %v1270_v45 }
 0x398   : > { %v1277_v48 = vsub.f32 2.0, %v1269_v61 }
 0x399   : > { %v1286_v44 = vmul.f32 %v5917_v32, %v1278_v46 }
 0x39a   : > { %v1285_v18 = vmul.f32 %v5919_v38, %v1277_v48 }
 0x39b   : > { %v1294_v50 = vmul.f32 %v6475_v16, %v1286_v44 }
 0x39c   : > { %v1293_v52 = vmul.f32 %v6477_v17, %v1285_v18 }
 0x39e   : > { %v1301_v39 = vmax.f32 %v1293_v52, %v1294_v50 }
 0x39f   : > { %v5921_v40 = vpop.eup %5920 }
 0x3a0   : > { %v5923_v60 = vpop.eup %5922  ;;  %v1303_v57 = vrot.slane %v1301_v39, 1  ;;  %v1272_v2 = vmul.f32 %v5921_v40, %v1248_v35 }
 0x3a1   : > { %v1271_v4 = vmul.f32 %v5923_v60, %v1245_v43  ;;  %v1254_v6 = vpop.xlane.xlu1 %1253 }
 0x3a2   : > { %v1280_v58 = vsub.f32 2.0, %v1272_v2  ;;  %5924 = vrcp.f32 %v1254_v6  ;;  %v1251_v7 = vpop.xlane.xlu0 %1250  ;;  %v6632_v59 = vmax.f32 %v1301_v39, %v1303_v57 }
 0x3a3   : > { %v1279_v11 = vsub.f32 2.0, %v1271_v4  ;;  %5926 = vrcp.f32 %v1251_v7 }
 0x3a4   : > { %v1288_v13 = vmul.f32 %v5921_v40, %v1280_v58  ;;  %v1326_v15 = vrot.slane %v6632_v59, 4  ;;  %v1322_v16 = vrot.slane %v6632_v59, 2  ;;  %v1330_v22 = vrot.slane %v6632_v59, 6 }
 0x3a5   : > { %v1287_v17 = vmul.f32 %v5923_v60, %v1279_v11  ;;  %v1591_v60 = vld [vmem:[#allocation2 + $0x33] sm:$0xff] }
 0x3a6   : > { %v1296_v34 = vmul.f32 %v6483_v27, %v1288_v13  ;;  %1327 = vrot.lane.b32.xlu0 %v1326_v15, %s5975_s15  ;;  %1323 = vrot.lane.b32.xlu1 %v1322_v16, %s5976_s17  ;;  %s5984_s17 = smov 50   ;;  %s5988_s15 = smov 65  }
 0x3a7   : > { %v1295_v33 = vmul.f32 %v6485_v30, %v1287_v17 }
 0x3a9   : > { %v1306_v23 = vmax.f32 %v1295_v33, %v1296_v34 }
 0x3aa   : > { %1331 = vrot.lane.b32.xlu0 %v1330_v22, %s5977_s18  ;;  %s5981_s18 = smov 35  }
 0x3ab   : > { %v1308_v28 = vrot.slane %v1306_v23, 1 }
 0x3ac   : > { %v5925_v32 = vpop.eup %5924 }
 0x3ad   : > { %v5927_v35 = vpop.eup %5926  ;;  %v1274_v38 = vmul.f32 %v5925_v32, %v1254_v6  ;;  %v1310_v45 = vmax.f32 %v1306_v23, %v1308_v28 }
 0x3ae   : > { %v1273_v43 = vmul.f32 %v5927_v35, %v1251_v7 }
 0x3af   : > { %v1282_v61 = vsub.f32 2.0, %v1274_v38  ;;  %1335 = vrot.lane.b32.xlu1 %v1310_v45, %s5978_s21  ;;  %v1260_v27 = vpop.xlane.xlu1 %1259  ;;  %v1338_v30 = vrot.slane %v1310_v45, 2  ;;  %v1342_v6 = vrot.slane %v1310_v45, 4  ;;  %v1346_v33 = vrot.slane %v1310_v45, 6  ;;  %s5982_s21 = smov 40  }
 0x3b0   : > { %v1281_v46 = vsub.f32 2.0, %v1273_v43  ;;  %5928 = vrcp.f32 %v1260_v27  ;;  %v1257_v48 = vpop.xlane.xlu0 %1256 }
 0x3b1   : > { %v1290_v44 = vmul.f32 %v5925_v32, %v1282_v61  ;;  %5930 = vrcp.f32 %v1257_v48 }
 0x3b2   : > { %v1289_v18 = vmul.f32 %v5927_v35, %v1281_v46 }
 0x3b3   : > { %v1298_v50 = vmul.f32 %v6491_v47, %v1290_v44  ;;  %1339 = vrot.lane.b32.xlu1 %v1338_v30, %s5979_s24  ;;  %v5397_v52 = vpop.permute.xlu1 %5396  ;;  %v1411_v47 = vld [vmem:[%s8059_s10] sm:$0xff]  ;;  %s5983_s24 = smov 45  }
 0x3b4   : > { %v1297_v39 = vmul.f32 %v6493_v49, %v1289_v18  ;;  %v5398_v40 = vunpack.i.l.bf16 %v5397_v52  ;;  %v5392_v57 = vpop.permute.xlu0 %5391  ;;  %v1412_v49 = vld [vmem:[%s8059_s10 + $0x8] sm:$0xff]  ;;  %v5399_v13 = vunpack.i.h.bf16 %v5397_v52 }
 0x3b5   : > { %v5394_v2 = vunpack.i.h.bf16 %v5392_v57  ;;  %v5393_v4 = vunpack.i.l.bf16 %v5392_v57  ;;  %v4992_v23 = vpack.c.bf16 %v1412_v49, %v1411_v47  ;;  %v1415_v49 = vld [vmem:[%s8059_s10 + $0x20] sm:$0xff] }
 0x3b6   : > { %v1311_v58 = vmax.f32 %v1297_v39, %v1298_v50 }
 0x3b7   : > { %v1848_v7 = vsel %vm481_vm0, %v1591_v60, %v5393_v4  ;;  %1343 = vrot.lane.b32.xlu1 %v1342_v6, %s5980_s27  ;;  %v5402_v11 = vpop.permute.xlu1 %5401  ;;  %v1849_v34 = vsel %vm481_vm0, %v6541_v24, %v5394_v2  ;;  %4993 = vmatpush3.bf16.msra.mxu1 %v4992_v23  ;;  %s8100_s27 = smov 64  }
 0x3b8   : > { %v5403_v15 = vunpack.i.l.bf16 %v5402_v11  ;;  %v1856_v16 = vsel %vm838_vm2, %v1848_v7, %v5398_v40  ;;  %v6649_v17 = vpop.permute.xlu0 %5406  ;;  %v1313_v22 = vrot.slane %v1311_v58, 1  ;;  %v5404_v43 = vunpack.i.h.bf16 %v5402_v11  ;;  %4994 = vmatprep.subr.bf16.mxu1 %v8080_v1  ;;  %v1414_v40 = vld [vmem:[%s8059_s10 + $0x18] sm:$0xff] }
 0x3b9   : > { %v1857_v30 = vsel %vm838_vm2, %v1849_v34, %v5399_v13  ;;  %v5408_v18 = vunpack.i.l.bf16 %v6649_v17  ;;  %v1416_v13 = vld [vmem:[%s8059_s10 + $0x28] sm:$0xff] }
 0x3ba   : > { %v5929_v28 = vpop.eup %5928  ;;  %v1864_v32 = vsel %vm847_vm3, %v1856_v16, %v5403_v15  ;;  %v6654_v46 = vmax.f32 %v1311_v58, %v1313_v22  ;;  %v1865_v57 = vsel %vm847_vm3, %v1857_v30, %v5404_v43 }
 0x3bb   : > { %v5931_v35 = vpop.eup %5930  ;;  %v1276_v38 = vmul.f32 %v5929_v28, %v1260_v27  ;;  %1347 = vrot.lane.b32.xlu1 %v1346_v33, %s5981_s18  ;;  %v5422_v61 = vpop.permute.xlu1 %5421  ;;  %v1872_v50 = vsel %vm856_vm4, %v1864_v32, %v5288_v56  ;;  %v5409_v56 = vunpack.i.h.bf16 %v6649_v17  ;;  %s5990_s18 = smov 75  }
 0x3bc   : > { %v1275_v44 = vmul.f32 %v5931_v35, %v1257_v48  ;;  %v5412_v24 = vpop.permute.xlu0 %5411  ;;  %v5423_v52 = vunpack.i.l.bf16 %v5422_v61  ;;  %1351 = vrot.lane.b32.xlu0 %v6654_v46, %s5982_s21  ;;  %v1413_v48 = vld [vmem:[%s8059_s10 + $0x10] sm:$0xff]  ;;  %v1354_v4 = vrot.slane %v6654_v46, 2  ;;  %v1880_v58 = vsel %vm865_vm5, %v1872_v50, %v5408_v18 }
 0x3bd   : > { %v1284_v45 = vsub.f32 2.0, %v1276_v38  ;;  %v5413_v39 = vunpack.i.l.bf16 %v5412_v24  ;;  %v5424_v7 = vunpack.i.h.bf16 %v5422_v61  ;;  %v4995_v34 = vpack.c.bf16 %v1414_v40, %v1413_v48 }
 0x3be   : > { %v1283_v27 = vsub.f32 2.0, %v1275_v44  ;;  %v1850_v16 = vsel %vm481_vm0, %v6543_v25, %v5423_v52  ;;  %v5414_v22 = vunpack.i.h.bf16 %v5412_v24  ;;  %v4998_v25 = vpack.c.bf16 %v1416_v13, %v1415_v49 }
 0x3bf   : > { %v1292_v60 = vmul.f32 %v5929_v28, %v1284_v45  ;;  %v5427_v2 = vpop.permute.xlu1 %5426  ;;  %v1888_v23 = vsel %vm8068_vm6, %v1880_v58, %v5413_v39  ;;  %v1873_v28 = vsel %vm856_vm4, %v1865_v57, %v5289_v55  ;;  %4996 = vmatpush3.bf16.msra.mxu1 %v4995_v34  ;;  %v1418_v55 = vld [vmem:[%s8059_s10 + $0x38] sm:$0xff]  ;;  %v1851_v18 = vsel %vm481_vm0, %v6570_v54, %v5424_v7 }
 0x3c0   : > { %v1291_v6 = vmul.f32 %v5931_v35, %v1283_v27  ;;  %v5428_v11 = vunpack.i.l.bf16 %v5427_v2  ;;  %v5417_v47 = vpop.permute.xlu0 %5416  ;;  %1355 = vrot.lane.b32.xlu0 %v1354_v4, %s5983_s24  ;;  %v5429_v43 = vunpack.i.h.bf16 %v5427_v2  ;;  %4997 = vmatprep.subr.bf16.mxu1 %v8080_v1  ;;  %v1881_v24 = vsel %vm865_vm5, %v1873_v28, %v5409_v56  ;;  %v6706_v27 = vld [vmem:[#allocation2 + $0xa3] sm:$0xff]  ;;  %v1605_v7 = vld [vmem:[#allocation2 + $0x94] sm:$0xff] }
 0x3c1   : > { %v1300_v15 = vmul.f32 %v6505_v63, %v1292_v60  ;;  %v5418_v17 = vunpack.i.l.bf16 %v5417_v47  ;;  %v5419_v32 = vunpack.i.h.bf16 %v5417_v47  ;;  %v1358_v63 = vrot.slane %v6654_v46, 4  ;;  %v1420_v56 = vld [vmem:[%s8059_s10 + $0x48] sm:$0xff] }
 0x3c2   : > { %v1299_v33 = vmul.f32 %v6507_v3, %v1291_v6  ;;  %v1858_v61 = vsel %vm838_vm2, %v1850_v16, %v5428_v11  ;;  %v1362_v45 = vrot.slane %v6654_v46, 6  ;;  %v1889_v50 = vsel %vm8068_vm6, %v1881_v24, %v5414_v22  ;;  %v1419_v46 = vld [vmem:[%s8059_s10 + $0x40] sm:$0xff] }
 0x3c3   : > { %v5432_v35 = vpop.permute.xlu1 %5431  ;;  %v1896_v38 = vsel %vm8067_vm7, %v1888_v23, %v5418_v17  ;;  %v1897_v40 = vsel %vm8067_vm7, %v1889_v50, %v5419_v32  ;;  %4999 = vmatpush3.bf16.msra.mxu1 %v4998_v25  ;;  %v5001_v54 = vpack.c.bf16 %v1418_v55, %v1417_v53  ;;  %v1859_v60 = vsel %vm838_vm2, %v1851_v18, %v5429_v43  ;;  %v1606_v11 = vld [vmem:[#allocation2 + $0xa4] sm:$0xff]  ;;  %v1622_v23 = vld [vmem:[#allocation2 + $0xb3] sm:$0xff] }
 0x3c4   : > { %v5433_v44 = vunpack.i.l.bf16 %v5432_v35  ;;  %v6690_v3 = vpop.permute.xlu0 %5436  ;;  %2015 = vmatmul.mubr.f32.vlgmr.msra.gmra.mrb[16].mxu0 %v1896_v38  ;;  %v1316_v30 = vmax.f32 %v1299_v33, %v1300_v15  ;;  %1359 = vrot.lane.b32.xlu0 %v1358_v63, %s5984_s17  ;;  %v5434_v39 = vunpack.i.h.bf16 %v5432_v35  ;;  %v5470_v4 = vpack.i.bf16 %v6706_v27, %v6624_v21  ;;  %s5989_s17 = smov 70  }
 0x3c5   : > { %4494 = vmatprep.mubr.msk.f32.mxu0 %vm481_vm0, %v6566_v51  ;;  %5000 = vmatprep.subr.bf16.mxu1 %v8080_v1  ;;  %v5438_v2 = vunpack.i.l.bf16 %v6690_v3  ;;  %v5004_v49 = vpack.c.bf16 %v1420_v56, %v1419_v46  ;;  %v5480_v17 = vpack.i.bf16 %v1606_v11, %v1605_v7  ;;  %v5490_v31 = vpack.i.bf16 %v1622_v23, %v6706_v27 }
 0x3c6   : > { %v1318_v52 = vrot.slane %v1316_v30, 1  ;;  %v1866_v48 = vsel %vm847_vm3, %v1858_v61, %v5433_v44  ;;  %v1867_v47 = vsel %vm847_vm3, %v1859_v60, %v5434_v39  ;;  %v6755_v61 = vld [vmem:[#allocation2 + $0xb5] sm:$0xff]  ;;  %v1647_v44 = vld [vmem:[#allocation2 + $0xc4] sm:$0xff] }
 0x3c7   : > { %v1874_v58 = vsel %vm856_vm4, %v1866_v48, %v5318_v37  ;;  %5002 = vmatpush3.bf16.msra.mxu1 %v5001_v54  ;;  %v1875_v22 = vsel %vm856_vm4, %v1867_v47, %v5319_v36 }
 0x3c8   : > { %v5442_v57 = vpop.permute.xlu0 %5441  ;;  %2020 = vmatmul.mubr.f32.gmra.mrb[18].mxu0 %v1897_v40  ;;  %v1320_v51 = vmax.f32 %v1316_v30, %v1318_v52  ;;  %1363 = vrot.lane.b32.xlu0 %v1362_v45, %s5985_s25  ;;  %v1882_v37 = vsel %vm865_vm5, %v1874_v58, %v5438_v2  ;;  %v1639_v30 = vld [vmem:[#allocation2 + $0xc3] sm:$0xff]  ;;  %s8109_s25 = smov 112  }
 0x3c9   : > { %4495 = vmatprep.mubr.msk.f32.mxu0 %vm481_vm0, %v6600_v10  ;;  %v5443_v6 = vunpack.i.l.bf16 %v5442_v57  ;;  %5003 = vmatprep.subr.bf16.mxu1 %v8080_v1  ;;  %v5439_v10 = vunpack.i.h.bf16 %v6690_v3  ;;  %v5444_v34 = vunpack.i.h.bf16 %v5442_v57  ;;  %v1646_v3 = vld [vmem:[#allocation2 + $0xb4] sm:$0xff] }
 0x3ca   : > { %1367 = vrot.lane.b32.xlu1 %v1320_v51, %s5986_s26  ;;  %v1370_v15 = vrot.slane %v1320_v51, 2  ;;  %v1374_v35 = vrot.slane %v1320_v51, 4  ;;  %v1378_v25 = vrot.slane %v1320_v51, 6  ;;  %s8110_s26 = smov 16  }
 0x3cb   : > { %v1890_v33 = vsel %vm8068_vm6, %v1882_v37, %v5443_v6  ;;  %5005 = vmatpush3.bf16.msra.mxu1 %v5004_v49  ;;  %v1883_v63 = vsel %vm865_vm5, %v1875_v22, %v5439_v10 }
 0x3cc   : > { %v5447_v13 = vpop.permute.xlu0 %5446  ;;  %5471 = vrot.lane.b32.xlu0 %v5470_v4, %s8069_s23  ;;  %5006 = vmatprep.subr.bf16.mxu1 %v8080_v1  ;;  %v1891_v36 = vsel %vm8068_vm6, %v1883_v63, %v5444_v34  ;;  %vm1401_vm6 = vcmask 449536  }
 0x3cd   : > { %v5448_v16 = vunpack.i.l.bf16 %v5447_v13  ;;  %v5449_v28 = vunpack.i.h.bf16 %v5447_v13 }
 0x3ce   : > { %1371 = vrot.lane.b32.xlu1 %v1370_v15, %s5988_s15 }
 0x3cf   : > { %v1898_v32 = vsel %vm8067_vm7, %v1890_v33, %v5448_v16  ;;  %v1899_v38 = vsel %vm8067_vm7, %v1891_v36, %v5449_v28  ;;  %vm1397_vm7 = vcmask 367616  }
 0x3d0   : > { %2025 = vmatmul.mubr.f32.gmra.mrb[20].mxu0 %v1898_v32  ;;  %5481 = vrot.lane.b32.xlu0 %v5480_v17, %s8077_s22  ;;  %v5452_v53 = vpop.permute.xlu0 %5451 }
 0x3d1   : > { %4496 = vmatprep.mubr.msk.f32.mxu0 %vm481_vm0, %v6597_v8  ;;  %v6749_v8 = vld [vmem:[#allocation2 + $0xa5] sm:$0xff]  ;;  %v5453_v11 = vunpack.i.l.bf16 %v5452_v53 }
 0x3d2   : > { %1375 = vrot.lane.b32.xlu1 %v1374_v35, %s5989_s17  ;;  %v5485_v43 = vpack.i.bf16 %v6749_v8, %v6606_v12  ;;  %v1499_v35 = vld [vmem:[%s8060_s11 + $0x8] sm:$0xff] }
 0x3d3   : > { %v1852_v10 = vsel %vm481_vm0, %v6582_v62, %v5453_v11  ;;  %v1498_v62 = vld [vmem:[%s8060_s11] sm:$0xff] }
 0x3d4   : > { %2030 = vmatmul.mubr.f32.gmra.mrb[22].mxu0 %v1899_v38  ;;  %5491 = vrot.lane.b32.xlu0 %v5490_v31, %s5970_s19  ;;  %v6767_v18 = vpop.permute.xlu0 %5461 }
 0x3d5   : > { %4497 = vmatprep.mubr.msk.f32.mxu0 %vm481_vm0, %v6606_v12  ;;  %v5457_v12 = vpop.permute.xlu1 %5456  ;;  %v5463_v33 = vunpack.i.l.bf16 %v6767_v18  ;;  %v5464_v31 = vunpack.i.h.bf16 %v6767_v18 }
 0x3d6   : > { %1379 = vrot.lane.b32.xlu1 %v1378_v25, %s5990_s18  ;;  %v5458_v49 = vunpack.i.l.bf16 %v5457_v12  ;;  %v5459_v34 = vunpack.i.h.bf16 %v5457_v12  ;;  %v1501_v12 = vld [vmem:[%s8060_s11 + $0x18] sm:$0xff]  ;;  %s8107_s18 = smov 80  }
 0x3d8   : > { %1804 = vrot.lane.b32.xlu0 %v1622_v23, %s8069_s23  ;;  %v1860_v28 = vsel %vm838_vm2, %v1852_v10, %v5458_v49 }
 0x3d9   : > { %v6765_v55 = vpop.permute.xlu1 %5466  ;;  %v1868_v38 = vsel %vm847_vm3, %v1860_v28, %v5463_v33 }
 0x3da   : > { %5476 = vrot.lane.b32.xlu1 %v5480_v17, %s8071_s16 }
 0x3dc   : > { %1774 = vrot.lane.b32.xlu0 %v6755_v61, %s8073_s20 }
 0x3de   : > { %5486 = vrot.lane.b32.xlu1 %v5485_v43, %s8075_s28  ;;  %v5007_v43 = vpack.c.bf16 %v1499_v35, %v1498_v62 }
 0x3e0   : > { %1838 = vrot.lane.b32.xlu0 %v1647_v44, %s8071_s16 }
 0x3e2   : > { %1772 = vrot.lane.b32.xlu1 %v6749_v8, %s8073_s20 }
 0x3e6   : > { %1836 = vrot.lane.b32.xlu1 %v1646_v3, %s8071_s16 }
 0x3ea   : > { %1806 = vrot.lane.b32.xlu1 %v1639_v30, %s8069_s23  ;;  %v1500_v30 = vld [vmem:[%s8060_s11 + $0x10] sm:$0xff] }
 0x418   : > { %v1324_v24 = vpop.permute.xlu1 %1323  ;;  %v1328_v45 = vpop.permute.xlu0 %1327 }
 0x419   : > { %v1382_v60 = vsel %vm1188_vm8, %v6632_v59, %v1324_v24  ;;  %vm1399_vm8 = vcmask 408576   ;;  %v5454_v59 = vunpack.i.h.bf16 %v5452_v53  ;;  %v5468_v53 = vunpack.i.l.bf16 %v6765_v55 }
 0x41a   : > { %v1384_v51 = vsel %vm1383_vm10, %v1382_v60, %v1328_v45  ;;  %vm1403_vm10 = vcmask 490496   ;;  %v5469_v60 = vunpack.i.h.bf16 %v6765_v55 }
 0x41b   : > { %v1853_v23 = vsel %vm481_vm0, %v6611_v14, %v5454_v59 }
 0x41c   : > { %v1332_v52 = vpop.permute.xlu0 %1331  ;;  %v1861_v14 = vsel %vm838_vm2, %v1853_v23, %v5459_v34 }
 0x41d   : > { %v1386_v56 = vsel %vm1385_vm11, %v1384_v51, %v1332_v52  ;;  %vm1405_vm11 = vcmask 531456   ;;  %v1869_v24 = vsel %vm847_vm3, %v1861_v14, %v5464_v31  ;;  %v1655_v14 = vld [vmem:[#allocation2 + $0xc5] sm:$0xff] }
 0x41e   : > { %v1877_v51 = vsel %vm856_vm4, %v1869_v24, %v5354_v20  ;;  %v1505_v20 = vld [vmem:[%s8060_s11 + $0x38] sm:$0xff] }
 0x421   : > { %v1336_v50 = vpop.permute.xlu1 %1335 }
 0x422   : > { %v1388_v2 = vsel %vm1387_vm12, %v1386_v56, %v1336_v50  ;;  %v1876_v50 = vsel %vm856_vm4, %v1868_v38, %v5353_v29  ;;  %vm8091_vm12 = vcmask 785408  }
 0x425   : > { %v1340_v39 = vpop.permute.xlu1 %1339 }
 0x426   : > { %v1390_v4 = vsel %vm1389_vm13, %v1388_v2, %v1340_v39  ;;  %v5010_v39 = vpack.c.bf16 %v1501_v12, %v1500_v30  ;;  %vm8092_vm13 = vcmask 916480   ;;  %v1510_v12 = vld [vmem:[%s8060_s11 + $0x60] sm:$0xff] }
 0x429   : > { %v1344_v40 = vpop.permute.xlu1 %1343 }
 0x42a   : > { %v1392_v58 = vsel %vm1391_vm14, %v1390_v4, %v1344_v40  ;;  %v1502_v40 = vld [vmem:[%s8060_s11 + $0x20] sm:$0xff]  ;;  %vm8093_vm14 = vmmov %vm8091_vm12 }
 0x42d   : > { %v1348_v46 = vpop.permute.xlu1 %1347 }
 0x42e   : > { %v1352_v48 = vpop.permute.xlu0 %1351  ;;  %v1394_v47 = vsel %vm1393_vm15, %v1392_v58, %v1348_v46  ;;  %vm8094_vm15 = vmmov %vm8092_vm13 }
 0x42f   : > { %v1396_v13 = vsel %vm1395_vm1, %v1394_v47, %v1352_v48  ;;  %vm8095_vm1 = vmmov %vm8091_vm12 }
 0x432   : > { %v1356_v54 = vpop.permute.xlu0 %1355 }
 0x433   : > { %v1398_v16 = vsel %vm1397_vm7, %v1396_v13, %v1356_v54  ;;  %vm1407_vm7 = vcmask 572416   ;;  %v1503_v54 = vld [vmem:[%s8060_s11 + $0x28] sm:$0xff]  ;;  %v1885_v13 = vsel %vm865_vm5, %v1877_v51, %v5469_v60 }
 0x436   : > { %v1360_v57 = vpop.permute.xlu0 %1359 }
 0x437   : > { %v1400_v17 = vsel %vm1399_vm8, %v1398_v16, %v1360_v57  ;;  %v1884_v57 = vsel %vm865_vm5, %v1876_v50, %v5468_v53  ;;  %vm8096_vm8 = vmmov %vm8092_vm13 }
 0x43a   : > { %v1364_v6 = vpop.permute.xlu0 %1363 }
 0x43b   : > { %v1402_v22 = vsel %vm1401_vm6, %v1400_v17, %v1364_v6  ;;  %vm1409_vm6 = vcmask 613376  }
 0x43c   : > { %v1368_v7 = vpop.permute.xlu1 %1367 }
 0x43d   : > { %v1404_v36 = vsel %vm1403_vm10, %v1402_v22, %v1368_v7  ;;  %v5013_v7 = vpack.c.bf16 %v1503_v54, %v1502_v40  ;;  %v5016_v22 = vpack.c.bf16 %v1505_v20, %v1504_v19  ;;  %vm8097_vm10 = vmmov %vm8095_vm1  ;;  %v2075_v19 = vld [vmem:[%s8053_s4 + $0x38] sm:$0xff] }
 0x43e   : > { %v6773_v37 = vpop.permute.xlu0 %5471 }
 0x43f   : > { %v5473_v45 = vunpack.i.l.bf16 %v6773_v37  ;;  %v5474_v46 = vunpack.i.h.bf16 %v6773_v37 }
 0x440   : > { %v1372_v15 = vpop.permute.xlu1 %1371 }
 0x441   : > { %v1406_v25 = vsel %vm1405_vm11, %v1404_v36, %v1372_v15  ;;  %v1892_v4 = vsel %vm8091_vm12, %v1884_v57, %v5473_v45  ;;  %v1893_v37 = vsel %vm8093_vm14, %v1885_v13, %v5474_v46  ;;  %vm8098_vm11 = vmmov %vm8096_vm8  ;;  %v2069_v57 = vld [vmem:[%s8053_s4 + $0x8] sm:$0xff]  ;;  %v2078_v13 = vld [vmem:[%s8053_s4 + $0x50] sm:$0xff] }
 0x442   : > { %v5482_v63 = vpop.permute.xlu0 %5481  ;;  %vm8113_vm12 = vmmov %vm8095_vm1 }
 0x443   : > { %v5484_v56 = vunpack.i.h.bf16 %v5482_v63  ;;  %v5483_v2 = vunpack.i.l.bf16 %v5482_v63  ;;  %vm8115_vm14 = vmmov %vm8096_vm8 }
 0x444   : > { %v1376_v32 = vpop.permute.xlu1 %1375 }
 0x445   : > { %v1408_v44 = vsel %vm1407_vm7, %v1406_v25, %v1376_v32  ;;  %v1855_v15 = vsel %vm481_vm0, %v6706_v27, %v5484_v56  ;;  %v1854_v10 = vsel %vm481_vm0, %v6624_v21, %v5483_v2  ;;  %v1506_v21 = vld [vmem:[%s8060_s11 + $0x40] sm:$0xff]  ;;  %v1507_v27 = vld [vmem:[%s8060_s11 + $0x48] sm:$0xff]  ;;  %v2070_v2 = vld [vmem:[%s8053_s4 + $0x10] sm:$0xff]  ;;  %vm2584_vm7 = vcmask 123904  }
 0x446   : > { %v5492_v52 = vpop.permute.xlu0 %5491  ;;  %v5019_v31 = vpack.c.bf16 %v1507_v27, %v1506_v21  ;;  %2585 = vst.msk [vmem:[#allocation3 + $0x20] sm:$0x3] %vm2584_vm7, %v8079_v0  ;;  %2586 = vst.msk [vmem:[#allocation3 + $0x30] sm:$0x3] %vm2584_vm7, %v8079_v0 }
 0x447   : > { %v5493_v11 = vunpack.i.l.bf16 %v5492_v52  ;;  %v5494_v16 = vunpack.i.h.bf16 %v5492_v52  ;;  %2587 = vst.msk [vmem:[#allocation3 + $0x40] sm:$0x3] %vm2584_vm7, %v8079_v0  ;;  %2588 = vst.msk [vmem:[#allocation3 + $0x50] sm:$0x3] %vm2584_vm7, %v8079_v0 }
 0x448   : > { %v1380_v3 = vpop.permute.xlu1 %1379  ;;  %2589 = vst.msk [vmem:[#allocation3 + $0x60] sm:$0x3] %vm2584_vm7, %v8079_v0  ;;  %2590 = vst.msk [vmem:[#allocation3 + $0x70] sm:$0x3] %vm2584_vm7, %v8079_v0 }
 0x449   : > { %v1410_v18 = vsel %vm1409_vm6, %v1408_v44, %v1380_v3  ;;  %2591 = vst.msk [vmem:[#allocation3 + $0x80] sm:$0x3] %vm2584_vm7, %v8079_v0  ;;  %2592 = vst.msk [vmem:[#allocation3 + $0x90] sm:$0x3] %vm2584_vm7, %v8079_v0 }
 0x44a   : > { %4748 = vmatmul.mubr.msk.f32.vlgmr.msra.gmra.mrb[8].mxu1 %vm865_vm5, %v1410_v18  ;;  %v1805_v49 = vpop.permute.xlu0 %1804  ;;  %v5025_v18 = vpack.c.bf16 %v1511_v5, %v1510_v12  ;;  %2593 = vst.msk [vmem:[#allocation3 + $0x2a] sm:$0x3] %vm2584_vm7, %v8079_v0  ;;  %2594 = vst.msk [vmem:[#allocation3 + $0x3a] sm:$0x3] %vm2584_vm7, %v8079_v0 }
 0x44b   : > { %5008 = vmatpush3.bf16.msra.mxu1 %v5007_v43  ;;  %4782 = vmatprep.mubr.msk.f32.mxu1 %vm5987_vm9, %v8079_v0  ;;  %2595 = vst.msk [vmem:[#allocation3 + $0x4a] sm:$0x3] %vm2584_vm7, %v8079_v0  ;;  %2596 = vst.msk [vmem:[#allocation3 + $0x5a] sm:$0x3] %vm2584_vm7, %v8079_v0 }
 0x44c   : > { %v5477_v48 = vpop.permute.xlu1 %5476  ;;  %5009 = vmatprep.subr.bf16.mxu1 %v8080_v1  ;;  %2597 = vst.msk [vmem:[#allocation3 + $0x6a] sm:$0x3] %vm2584_vm7, %v8079_v0  ;;  %2598 = vst.msk [vmem:[#allocation3 + $0x7a] sm:$0x3] %vm2584_vm7, %v8079_v0 }
 0x44d   : > { %v5478_v29 = vunpack.i.l.bf16 %v5477_v48  ;;  %v5479_v6 = vunpack.i.h.bf16 %v5477_v48  ;;  %v1513_v48 = vld [vmem:[%s8060_s11 + $0x78] sm:$0xff]  ;;  %2599 = vst.msk [vmem:[#allocation3 + $0x8a] sm:$0x3] %vm2584_vm7, %v8079_v0  ;;  %2600 = vst.msk [vmem:[#allocation3 + $0x9a] sm:$0x3] %vm2584_vm7, %v8079_v0 }
 0x44e   : > { %v1775_v35 = vpop.permute.xlu0 %1774  ;;  %vm8112_vm6 = vmmov %vm8095_vm1 }
 0x44f   : > { %v1900_v58 = vsel %vm8092_vm13, %v1892_v4, %v5478_v29  ;;  %5011 = vmatpush3.bf16.msra.mxu1 %v5010_v39  ;;  %v1901_v33 = vsel %vm8094_vm15, %v1893_v37, %v5479_v6  ;;  %v1512_v39 = vld [vmem:[%s8060_s11 + $0x70] sm:$0xff]  ;;  %v2068_v29 = vld [vmem:[%s8053_s4] sm:$0xff]  ;;  %v2071_v4 = vld [vmem:[%s8053_s4 + $0x18] sm:$0xff] }
 0x450   : > { %v5487_v55 = vpop.permute.xlu1 %5486  ;;  %2035 = vmatmul.mubr.f32.gmra.mrb[24].mxu0 %v1900_v58  ;;  %5012 = vmatprep.subr.bf16.mxu1 %v8080_v1  ;;  %v5028_v40 = vpack.c.bf16 %v1513_v48, %v1512_v39  ;;  %v5058_v51 = vpack.c.bf16 %v2069_v57, %v2068_v29  ;;  %v5061_v6 = vpack.c.bf16 %v2071_v4, %v2070_v2  ;;  %v2072_v58 = vld [vmem:[%s8053_s4 + $0x20] sm:$0xff]  ;;  %v2081_v37 = vld [vmem:[%s8053_s4 + $0x68] sm:$0xff]  ;;  %v2157_v4 = vld [vmem:[%s8054_s5 + $0x10] sm:$0xff] }
 0x451   : > { %v5489_v47 = vunpack.i.h.bf16 %v5487_v55  ;;  %v5488_v59 = vunpack.i.l.bf16 %v5487_v55  ;;  %4498 = vmatprep.mubr.msk.f32.mxu0 %vm481_vm0, %v6749_v8  ;;  %v2074_v55 = vld [vmem:[%s8053_s4 + $0x30] sm:$0xff]  ;;  %vm8114_vm13 = vmmov %vm8096_vm8 }
 0x452   : > { %v1839_v43 = vpop.permute.xlu0 %1838  ;;  %5089 = vmatpush3.bf16.msra.mxu0 %v5058_v51  ;;  %v5067_v20 = vpack.c.bf16 %v2075_v19, %v2074_v55  ;;  %vm8116_vm15 = vmmov %vm8095_vm1 }
 0x453   : > { %v1862_v17 = vsel %vm838_vm2, %v1854_v10, %v5488_v59  ;;  %v1863_v34 = vsel %vm838_vm2, %v1855_v15, %v5489_v47  ;;  %5014 = vmatpush3.bf16.msra.mxu1 %v5013_v7  ;;  %5090 = vmatprep.subr.bf16.mxu0 %v8080_v1  ;;  %v2073_v7 = vld [vmem:[%s8053_s4 + $0x28] sm:$0xff]  ;;  %v2076_v47 = vld [vmem:[%s8053_s4 + $0x40] sm:$0xff]  ;;  %v2079_v15 = vld [vmem:[%s8053_s4 + $0x58] sm:$0xff] }
 0x454   : > { %v1773_v8 = vpop.permute.xlu1 %1772  ;;  %v1870_v23 = vsel %vm847_vm3, %v1862_v17, %v5493_v11  ;;  %2040 = vmatmul.mubr.f32.gmra.mrb[26].mxu0 %v1901_v33  ;;  %5015 = vmatprep.subr.bf16.mxu1 %v8080_v1  ;;  %v1871_v62 = vsel %vm847_vm3, %v1863_v34, %v5494_v16  ;;  %v5064_v11 = vpack.c.bf16 %v2073_v7, %v2072_v58  ;;  %v2077_v59 = vld [vmem:[%s8053_s4 + $0x48] sm:$0xff]  ;;  %v2080_v16 = vld [vmem:[%s8053_s4 + $0x60] sm:$0xff]  ;;  %v2082_v34 = vld [vmem:[%s8053_s4 + $0x70] sm:$0xff] }
 0x455   : > { %v1878_v28 = vsel %vm856_vm4, %v1870_v23, %v5388_v26  ;;  %4499 = vmatprep.mubr.msk.f32.mxu0 %vm481_vm0, %v6755_v61  ;;  %v1508_v26 = vld [vmem:[%s8060_s11 + $0x50] sm:$0xff]  ;;  %v1509_v61 = vld [vmem:[%s8060_s11 + $0x58] sm:$0xff]  ;;  %v1879_v38 = vsel %vm856_vm4, %v1871_v62, %v5389_v9  ;;  %v5073_v10 = vpack.c.bf16 %v2079_v15, %v2078_v13  ;;  %v5076_v17 = vpack.c.bf16 %v2081_v37, %v2080_v16  ;;  %vm8119_vm7 = vmmov %vm8095_vm1 }
 0x456   : > { %v1886_v32 = vsel %vm865_vm5, %v1878_v28, %v1773_v8  ;;  %v5022_v44 = vpack.c.bf16 %v1509_v61, %v1508_v26  ;;  %v1887_v3 = vsel %vm865_vm5, %v1879_v38, %v1775_v35  ;;  %5092 = vmatpush3.bf16.msra.mxu0 %v5061_v6  ;;  %v2083_v33 = vld [vmem:[%s8053_s4 + $0x78] sm:$0xff]  ;;  %v6948_v8 = vld [vmem:[%s8061_s12] sm:$0xff] }
 0x457   : > { %v1894_v63 = vsel %vm8095_vm1, %v1886_v32, %v1805_v49  ;;  %5017 = vmatpush3.bf16.msra.mxu1 %v5016_v22  ;;  %5093 = vmatprep.subr.bf16.mxu0 %v8080_v1  ;;  %v5070_v49 = vpack.c.bf16 %v2077_v59, %v2076_v47  ;;  %v5079_v22 = vpack.c.bf16 %v2083_v33, %v2082_v34  ;;  %v1422_v23 = vrot.slane %v6948_v8, 7 }
 0x458   : > { %v1837_v36 = vpop.permute.xlu1 %1836  ;;  %5018 = vmatprep.subr.bf16.mxu1 %v8080_v1  ;;  %v1924_v32 = vsub.s32 2, %v6445_v41 }
 0x459   : > { %v1902_v25 = vsel %vm8096_vm8, %v1894_v63, %v1837_v36 }
 0x45a   : > { %2045 = vmatmul.mubr.f32.gmra.mrb[28].mxu0 %v1902_v25  ;;  %v1925_v35 = vrot.slane %v6948_v8, %v1924_v32 }
 0x45b   : > { %4500 = vmatprep.mubr.msk.f32.mxu0 %vm481_vm0, %v1655_v14  ;;  %5020 = vmatpush3.bf16.msra.mxu1 %v5019_v31 }
 0x45c   : > { %v1807_v30 = vpop.permute.xlu1 %1806  ;;  %5021 = vmatprep.subr.bf16.mxu1 %v8080_v1  ;;  %5095 = vmatpush3.bf16.msra.mxu0 %v5064_v11 }
 0x45d   : > { %v1895_v9 = vsel %vm8097_vm10, %v1887_v3, %v1807_v30  ;;  %5096 = vmatprep.subr.bf16.mxu0 %v8080_v1  ;;  %vm8117_vm10 = vmmov %vm8096_vm8 }
 0x45e   : > { %v1903_v53 = vsel %vm8098_vm11, %v1895_v9, %v1839_v43  ;;  %vm8118_vm11 = vmmov %vm8095_vm1 }
 0x45f   : > { %2050 = vmatmul.mubr.f32.gmra.mrb[30].mxu0 %v1903_v53  ;;  %5023 = vmatpush3.bf16.msra.mxu1 %v5022_v44 }
 0x460   : > { %5024 = vmatprep.subr.bf16.mxu1 %v8080_v1  ;;  %4863 = vmatprep.mubr.msk.f32.mxu0 %vm5987_vm9, %v8079_v0 }
 0x461   : > { %5098 = vmatpush3.bf16.msra.mxu0 %v5067_v20 }
 0x462   : > { %5099 = vmatprep.subr.bf16.mxu0 %v8080_v1 }
 0x463   : > { %5026 = vmatpush3.bf16.msra.mxu1 %v5025_v18 }
 0x464   : > { %5027 = vmatprep.subr.bf16.mxu1 %v8080_v1 }
 0x465   : > { %5101 = vmatpush3.bf16.msra.mxu0 %v5070_v49 }
 0x466   : > { %5102 = vmatprep.subr.bf16.mxu0 %v8080_v1 }
 0x467   : > { %5029 = vmatpush3.bf16.msra.mxu1 %v5028_v40 }
 0x468   : > { %5057 = vmatprep.subr.bf16.mxu1 %v8080_v1 }
 0x469   : > { %5104 = vmatpush3.bf16.msra.mxu0 %v5073_v10 }
 0x46a   : > { %5105 = vmatprep.subr.bf16.mxu0 %v8080_v1 }
 0x46d   : > { %5107 = vmatpush3.bf16.msra.mxu0 %v5076_v17 }
 0x46e   : > { %5108 = vmatprep.subr.bf16.mxu0 %v8080_v1 }
 0x471   : > { %5110 = vmatpush3.bf16.msra.mxu0 %v5079_v22 }
 0x472   : > { %5111 = vmatprep.subr.bf16.mxu0 %v8080_v1 }
 0x497   : > { %v6878_v24 = vpop.f32.mrb[16].mxu0 }
 0x498   : > { %v2018_v45 = vpop.f32.mrb[17].mxu0  ;;  %v2017_v14 = vadd.f32 %v6878_v24, %v1925_v35 }
 0x49b   : > { %v6880_v50 = vpop.f32.mrb[18].mxu0 }
 0x49c   : > { %v2023_v52 = vpop.f32.mrb[19].mxu0  ;;  %v6957_v36 = vadd.f32 %v6880_v50, %v1925_v35 }
 0x49e   : > { %v2055_v25 = vadd.f32 %v6957_v36, %v2017_v14 }
 0x4a3   : > { %v2026_v54 = vpop.f32.mrb[20].mxu0 }
 0x4a4   : > { %v2028_v60 = vpop.f32.mrb[21].mxu0  ;;  %v2027_v26 = vadd.f32 %v2026_v54, %v1925_v35 }
 0x4a6   : > { %v2056_v44 = vadd.f32 %v2055_v25, %v2027_v26 }
 0x4a7   : > { %v2031_v46 = vpop.f32.mrb[22].mxu0 }
 0x4a8   : > { %v2033_v56 = vpop.f32.mrb[23].mxu0  ;;  %v2032_v43 = vadd.f32 %v2031_v46, %v1925_v35  ;;  %v2155_v46 = vld [vmem:[%s8054_s5] sm:$0xff] }
 0x4a9   : > { %v2156_v56 = vld [vmem:[%s8054_s5 + $0x8] sm:$0xff] }
 0x4aa   : > { %v2057_v30 = vadd.f32 %v2056_v44, %v2032_v43  ;;  %v5082_v2 = vpack.c.bf16 %v2156_v56, %v2155_v46 }
 0x51d   : > { %v1493_v21 = vpop.f32.mrb[8].mxu1 }
 0x51e   : > { %v1494_v27 = vadd.f32 %v1493_v21, %v1422_v23  ;;  %v4749_v28 = vpop.f32.mrb[9].mxu1 }
 0x520   : > { %v1497_v62 = vmax.f32 %v1494_v27, 0.0 }
 0x522   : > { %4783 = vmatmul.mubr.f32.vlgmr.msra.gmra.mrb[10].mxu1 %v1497_v62 }
 0x523   : > { %v2036_v63 = vpop.f32.mrb[24].mxu0  ;;  %5059 = vmatpush3.bf16.msra.mxu1 %v5058_v51  ;;  %4817 = vmatprep.mubr.msk.f32.mxu1 %vm5987_vm9, %v8079_v0 }
 0x524   : > { %v2038_v31 = vpop.f32.mrb[25].mxu0  ;;  %5060 = vmatprep.subr.bf16.mxu1 %v8080_v1  ;;  %v2037_v3 = vadd.f32 %v2036_v63, %v1925_v35 }
 0x526   : > { %v2058_v53 = vadd.f32 %v2057_v30, %v2037_v3 }
 0x527   : > { %v2041_v61 = vpop.f32.mrb[26].mxu0  ;;  %5062 = vmatpush3.bf16.msra.mxu1 %v5061_v6  ;;  %v2158_v6 = vld [vmem:[%s8054_s5 + $0x18] sm:$0xff] }
 0x528   : > { %v2043_v38 = vpop.f32.mrb[27].mxu0  ;;  %5063 = vmatprep.subr.bf16.mxu1 %v8080_v1  ;;  %v2042_v12 = vadd.f32 %v2041_v61, %v1925_v35  ;;  %v5085_v58 = vpack.c.bf16 %v2158_v6, %v2157_v4 }
 0x52a   : > { %v2059_v24 = vadd.f32 %v2058_v53, %v2042_v12 }
 0x52b   : > { %5065 = vmatpush3.bf16.msra.mxu1 %v5064_v11 }
 0x52c   : > { %5066 = vmatprep.subr.bf16.mxu1 %v8080_v1 }
 0x52d   : > { %v2046_v5 = vpop.f32.mrb[28].mxu0 }
 0x52e   : > { %v2048_v9 = vpop.f32.mrb[29].mxu0  ;;  %v2047_v18 = vadd.f32 %v2046_v5, %v1925_v35 }
 0x52f   : > { %5068 = vmatpush3.bf16.msra.mxu1 %v5067_v20 }
 0x530   : > { %5069 = vmatprep.subr.bf16.mxu1 %v8080_v1  ;;  %v2060_v50 = vadd.f32 %v2059_v24, %v2047_v18 }
 0x532   : > { %v2051_v45 = vpop.f32.mrb[30].mxu0 }
 0x533   : > { %v2052_v52 = vadd.f32 %v2051_v45, %v1925_v35  ;;  %v2053_v39 = vpop.f32.mrb[31].mxu0  ;;  %5071 = vmatpush3.bf16.msra.mxu1 %v5070_v49 }
 0x534   : > { %5072 = vmatprep.subr.bf16.mxu1 %v8080_v1 }
 0x535   : > { %v2061_v48 = vadd.f32 %v2060_v50, %v2052_v52  ;;  %v2424_v50 = vsub.s32 3, %v6445_v41 }
 0x537   : > { %v2062_v40 = vrot.slane %v2061_v48, 4  ;;  %5074 = vmatpush3.bf16.msra.mxu1 %v5073_v10 }
 0x538   : > { %5075 = vmatprep.subr.bf16.mxu1 %v8080_v1 }
 0x539   : > { %v2063_v54 = vadd.f32 %v2062_v40, %v2061_v48  ;;  %v2425_v40 = vrot.slane %v6948_v8, %v2424_v50 }
 0x53b   : > { %v2064_v60 = vrot.slane %v2063_v54, 2  ;;  %5077 = vmatpush3.bf16.msra.mxu1 %v5076_v17 }
 0x53c   : > { %5078 = vmatprep.subr.bf16.mxu1 %v8080_v1 }
 0x53d   : > { %v2065_v29 = vadd.f32 %v2064_v60, %v2063_v54 }
 0x53f   : > { %v2066_v57 = vrot.slane %v2065_v29, 1  ;;  %5080 = vmatpush3.bf16.msra.mxu1 %v5079_v22 }
 0x540   : > { %5081 = vmatprep.subr.bf16.mxu1 %v8080_v1 }
 0x541   : > { %v2067_v51 = vadd.f32 %v2066_v57, %v2065_v29 }
 0x543   : > { %4818 = vmatmul.mubr.f32.vlgmr.msra.gmra.mrb[12].mxu1 %v2067_v51 }
 0x544   : > { %4828 = vmatprep.mubr.msk.f32.mxu1 %vm5987_vm9, %v8079_v0  ;;  %5083 = vmatpush3.bf16.msra.mxu1 %v5082_v2 }
 0x545   : > { %5084 = vmatprep.subr.bf16.mxu1 %v8080_v1 }
 0x548   : > { %5086 = vmatpush3.bf16.msra.mxu1 %v5085_v58 }
 0x549   : > { %5149 = vmatprep.subr.bf16.mxu1 %v8080_v1 }
 0x5f5   : > { %v6984_v7 = vpop.f32.mrb[10].mxu1 }
 0x5f6   : > { %8099 = vst [vmem:[#allocation5_spill] sm:$0xff] %v6984_v7  ;;  %v4784_v11 = vpop.f32.mrb[11].mxu1 }
 0x616   : > { %v2150_v55 = vpop.f32.mrb[12].mxu1 }
 0x617   : > { %v2154_v19 = vmul.f32 0.00390625, %v2150_v55  ;;  %v4819_v20 = vpop.f32.mrb[13].mxu1 }
 0x619   : > { %4829 = vmatmul.mubr.msk.f32.vlgmr.msra.gmra.mrb[14].mxu1 %vm838_vm2, %v2154_v19 }
 0x6ec   : > { %v2228_v47 = vpop.f32.mrb[14].mxu1 }
 0x6ed   : > { %v2235_v59 = vrot.slane %v2228_v47, %v6448_v42  ;;  %v4830_v49 = vpop.f32.mrb[15].mxu1 }
 0x6ef   : > { %v2236_v13 = vsub.f32 %v2017_v14, %v2235_v59  ;;  %v2237_v15 = vsub.f32 %v6957_v36, %v2235_v59  ;;  %v2238_v10 = vsub.f32 %v2027_v26, %v2235_v59  ;;  %v2239_v16 = vsub.f32 %v2032_v43, %v2235_v59 }
 0x6f0   : > { %v2240_v34 = vsub.f32 %v2037_v3, %v2235_v59  ;;  %v2241_v23 = vsub.f32 %v2042_v12, %v2235_v59  ;;  %v2242_v28 = vsub.f32 %v2047_v18, %v2235_v59  ;;  %v2243_v35 = vsub.f32 %v2052_v52, %v2235_v59 }
 0x6f1   : > { %v2244_v37 = vmul.f32 %v2236_v13, %v2236_v13  ;;  %v2245_v17 = vmul.f32 %v2237_v15, %v2237_v15  ;;  %v2246_v33 = vmul.f32 %v2238_v10, %v2238_v10  ;;  %v2247_v21 = vmul.f32 %v2239_v16, %v2239_v16 }
 0x6f2   : > { %v2248_v32 = vmul.f32 %v2240_v34, %v2240_v34  ;;  %v2249_v63 = vmul.f32 %v2241_v23, %v2241_v23  ;;  %v2250_v61 = vmul.f32 %v2242_v28, %v2242_v28  ;;  %v2251_v38 = vmul.f32 %v2243_v35, %v2243_v35 }
 0x6f3   : > { %v2252_v22 = vadd.f32 %v2245_v17, %v2244_v37  ;;  %v2436_v52 = vsub.s32 4, %v6445_v41 }
 0x6f5   : > { %v2253_v27 = vadd.f32 %v2252_v22, %v2246_v33  ;;  %v2437_v54 = vrot.slane %v6948_v8, %v2436_v52  ;;  %v2779_v33 = vld [vmem:[#allocation3 + $0xb0] sm:$0xff]  ;;  %v2617_v22 = vld [vmem:[#allocation3 + $0x1] sm:$0xff] }
 0x6f7   : > { %v2254_v62 = vadd.f32 %v2253_v27, %v2247_v21 }
 0x6f9   : > { %v2255_v31 = vadd.f32 %v2254_v62, %v2248_v32 }
 0x6fb   : > { %v2256_v14 = vadd.f32 %v2255_v31, %v2249_v63 }
 0x6fd   : > { %v2257_v36 = vadd.f32 %v2256_v14, %v2250_v61 }
 0x6ff   : > { %v2258_v26 = vadd.f32 %v2257_v36, %v2251_v38  ;;  %v2786_v38 = vld [vmem:[#allocation3 + $0xa1] sm:$0xff] }
 0x700   : > { %v2794_v36 = vld [vmem:[#allocation3 + $0xa2] sm:$0xff] }
 0x701   : > { %v2259_v25 = vrot.slane %v2258_v26, 4 }
 0x703   : > { %v2260_v43 = vadd.f32 %v2259_v25, %v2258_v26 }
 0x705   : > { %v2261_v44 = vrot.slane %v2260_v43, 2 }
 0x707   : > { %v2262_v3 = vadd.f32 %v2261_v44, %v2260_v43 }
 0x709   : > { %v2263_v30 = vrot.slane %v2262_v3, 1 }
 0x70b   : > { %v2264_v5 = vadd.f32 %v2263_v30, %v2262_v3 }
 0x70d   : > { %4864 = vmatmul.mubr.f32.vlgmr.msra.gmra.mrb[32].mxu0 %v2264_v5 }
 0x70e   : > { %5113 = vmatpush3.bf16.msra.mxu0 %v5082_v2  ;;  %4874 = vmatprep.mubr.msk.f32.mxu0 %vm5987_vm9, %v8079_v0 }
 0x70f   : > { %5114 = vmatprep.subr.bf16.mxu0 %v8080_v1 }
 0x712   : > { %5116 = vmatpush3.bf16.msra.mxu0 %v5085_v58 }
 0x7e0   : > { %v2331_v12 = vpop.f32.mrb[32].mxu0 }
 0x7e1   : > { %v2335_v9 = vmul.f32 0.00390625, %v2331_v12  ;;  %v4865_v53 = vpop.f32.mrb[33].mxu0 }
 0x7e3   : > { %4875 = vmatmul.mubr.msk.f32.vlgmr.msra.gmra.mrb[34].mxu0 %vm838_vm2, %v2335_v9 }
 0x8b6   : > { %v2405_v18 = vpop.f32.mrb[34].mxu0 }
 0x8b7   : > { %v2406_v24 = vadd.f32 1e-05, %v2405_v18  ;;  %v4876_v45 = vpop.f32.mrb[35].mxu0 }
 0x8b9   : > { %5932 = vrsqrt.f32 %v2406_v24 }
 0x8c3   : > { %v5933_v39 = vpop.eup %5932 }
 0x8c4   : > { %v2413_v48 = vrot.slane %v5933_v39, %v6448_v42 }
 0x8c6   : > { %v2415_v60 = vmul.f32 %v2413_v48, %v2237_v15  ;;  %v2414_v29 = vmul.f32 %v2413_v48, %v2236_v13  ;;  %v2417_v57 = vmul.f32 %v2413_v48, %v2239_v16  ;;  %v2416_v51 = vmul.f32 %v2413_v48, %v2238_v10 }
 0x8c7   : > { %v2419_v46 = vmul.f32 %v2413_v48, %v2241_v23  ;;  %v2418_v56 = vmul.f32 %v2413_v48, %v2240_v34  ;;  %v2421_v13 = vmul.f32 %v2413_v48, %v2243_v35  ;;  %v2420_v15 = vmul.f32 %v2413_v48, %v2242_v28  ;;  %v2778_v34 = vld [vmem:[#allocation3 + $0xa0] sm:$0xff]  ;;  %v7014_v23 = vld [vmem:[#allocation3 + $0x14] sm:$0xff] }
 0x8c8   : > { %v2427_v2 = vmul.f32 %v2425_v40, %v2415_v60  ;;  %v2426_v4 = vmul.f32 %v2425_v40, %v2414_v29  ;;  %v2429_v6 = vmul.f32 %v2425_v40, %v2417_v57  ;;  %v2428_v58 = vmul.f32 %v2425_v40, %v2416_v51 }
 0x8c9   : > { %v2431_v19 = vmul.f32 %v2425_v40, %v2419_v46  ;;  %v2430_v20 = vmul.f32 %v2425_v40, %v2418_v56  ;;  %v2433_v28 = vmul.f32 %v2425_v40, %v2421_v13  ;;  %v2432_v32 = vmul.f32 %v2425_v40, %v2420_v15  ;;  %v3668_v15 = vld [vmem:[%s8055_s6 + $0x80] sm:$0xff] }
 0x8ca   : > { %v2439_v11 = vadd.f32 %v2437_v54, %v2427_v2  ;;  %v2438_v55 = vadd.f32 %v2437_v54, %v2426_v4  ;;  %v2441_v49 = vadd.f32 %v2437_v54, %v2429_v6  ;;  %v2440_v8 = vadd.f32 %v2437_v54, %v2428_v58 }
 0x8cb   : > { %v2443_v37 = vadd.f32 %v2437_v54, %v2431_v19  ;;  %v2442_v17 = vadd.f32 %v2437_v54, %v2430_v20  ;;  %v5500_v62 = vpack.i.bf16 %v2779_v33, %v2778_v34  ;;  %v5495_v35 = vpack.i.bf16 %v2617_v22, %v7014_v23  ;;  %v3653_v33 = vld [vmem:[%s8055_s6 + $0x8] sm:$0xff] }
 0x8cc   : > { %v6998_v47 = vmax.f32 %v2439_v11, 0.0  ;;  %v7000_v59 = vmax.f32 %v2438_v55, 0.0  ;;  %v7006_v10 = vmax.f32 %v2441_v49, 0.0  ;;  %v7008_v16 = vmax.f32 %v2440_v8, 0.0 }
 0x8cd   : > { %v7016_v21 = vmax.f32 %v2443_v37, 0.0  ;;  %v7018_v27 = vmax.f32 %v2442_v17, 0.0  ;;  %v2445_v63 = vadd.f32 %v2437_v54, %v2433_v28  ;;  %v2444_v31 = vadd.f32 %v2437_v54, %v2432_v32  ;;  %v3669_v37 = vld [vmem:[%s8055_s6 + $0x88] sm:$0xff]  ;;  %v3652_v17 = vld [vmem:[%s8055_s6] sm:$0xff]  ;;  %v3670_v28 = vld [vmem:[%s8055_s6 + $0x90] sm:$0xff] }
 0x8ce   : > { %2464 = vrot.lane.b32.xlu0 %v6998_v47, %s8100_s27  ;;  %2462 = vrot.lane.b32.xlu1 %v7000_v59, %s8100_s27  ;;  %v5117_v34 = vpack.c.bf16 %v3669_v37, %v3668_v15  ;;  %v5119_v22 = vpack.c.bf16 %v3653_v33, %v3652_v17  ;;  %v3671_v32 = vld [vmem:[%s8055_s6 + $0x98] sm:$0xff] }
 0x8cf   : > { %v7027_v61 = vmax.f32 %v2445_v63, 0.0  ;;  %v7029_v14 = vmax.f32 %v2444_v31, 0.0  ;;  %v3655_v63 = vld [vmem:[%s8055_s6 + $0x18] sm:$0xff] }
 0x8d0   : > { %5118 = vmatprep.subr.bf16.mxu0 %v5117_v34 }
 0x8d1   : > { %5120 = vmatpush3.bf16.msra.mxu0 %v5119_v22 }
 0x8d2   : > { %2468 = vrot.lane.b32.xlu0 %v7006_v10, %s8100_s27  ;;  %2466 = vrot.lane.b32.xlu1 %v7008_v16, %s8100_s27 }
 0x8d6   : > { %2472 = vrot.lane.b32.xlu0 %v7016_v21, %s8100_s27  ;;  %2470 = vrot.lane.b32.xlu1 %v7018_v27, %s8100_s27 }
 0x8da   : > { %5501 = vrot.lane.b32.xlu0 %v5500_v62, %s8100_s27  ;;  %5496 = vrot.lane.b32.xlu1 %v5495_v35, %s8077_s22  ;;  %v3654_v62 = vld [vmem:[%s8055_s6 + $0x10] sm:$0xff]  ;;  %v5121_v35 = vpack.c.bf16 %v3671_v32, %v3670_v28 }
 0x8db   : > { %v5123_v31 = vpack.c.bf16 %v3655_v63, %v3654_v62  ;;  %v3678_v62 = vld [vmem:[%s8055_s6 + $0xd0] sm:$0xff] }
 0x8dc   : > { %5122 = vmatprep.subr.bf16.mxu0 %v5121_v35  ;;  %v3679_v35 = vld [vmem:[%s8055_s6 + $0xd8] sm:$0xff] }
 0x8dd   : > { %5124 = vmatpush3.bf16.msra.mxu0 %v5123_v31  ;;  %v5137_v31 = vpack.c.bf16 %v3679_v35, %v3678_v62 }
 0x8de   : > { %2476 = vrot.lane.b32.xlu0 %v7027_v61, %s8100_s27  ;;  %2474 = vrot.lane.b32.xlu1 %v7029_v14, %s8100_s27 }
 0x8e2   : > { %3520 = vrot.lane.b32.xlu0 %v2786_v38, %s8073_s20  ;;  %3552 = vrot.lane.b32.xlu1 %v2794_v36, %s8069_s23  ;;  %v3672_v38 = vld [vmem:[%s8055_s6 + $0xa0] sm:$0xff]  ;;  %v3673_v36 = vld [vmem:[%s8055_s6 + $0xa8] sm:$0xff] }
 0x940   : > { %v2465_v26 = vpop.permute.xlu0 %2464  ;;  %v2463_v25 = vpop.permute.xlu1 %2462 }
 0x941   : > { %v2487_v43 = vmax.f32 %v6998_v47, %v2465_v26  ;;  %v2486_v44 = vmax.f32 %v7000_v59, %v2463_v25  ;;  %v3656_v26 = vld [vmem:[%s8055_s6 + $0x20] sm:$0xff]  ;;  %v5125_v25 = vpack.c.bf16 %v3673_v36, %v3672_v38 }
 0x943   : > { %2504 = vrot.lane.b32.xlu0 %v2487_v43, %s8069_s23  ;;  %2502 = vrot.lane.b32.xlu1 %v2486_v44, %s8069_s23 }
 0x944   : > { %v2469_v3 = vpop.permute.xlu0 %2468  ;;  %v2467_v30 = vpop.permute.xlu1 %2466  ;;  %5126 = vmatprep.subr.bf16.mxu0 %v5125_v25 }
 0x945   : > { %v2489_v5 = vmax.f32 %v7006_v10, %v2469_v3  ;;  %v2488_v12 = vmax.f32 %v7008_v16, %v2467_v30 }
 0x947   : > { %2508 = vrot.lane.b32.xlu0 %v2489_v5, %s8069_s23  ;;  %2506 = vrot.lane.b32.xlu1 %v2488_v12, %s8069_s23 }
 0x948   : > { %v2473_v9 = vpop.permute.xlu0 %2472  ;;  %v2471_v53 = vpop.permute.xlu1 %2470 }
 0x949   : > { %v2491_v18 = vmax.f32 %v7016_v21, %v2473_v9  ;;  %v2490_v24 = vmax.f32 %v7018_v27, %v2471_v53  ;;  %v3674_v9 = vld [vmem:[%s8055_s6 + $0xb0] sm:$0xff]  ;;  %v3675_v53 = vld [vmem:[%s8055_s6 + $0xb8] sm:$0xff] }
 0x94b   : > { %2512 = vrot.lane.b32.xlu0 %v2491_v18, %s8069_s23  ;;  %2510 = vrot.lane.b32.xlu1 %v2490_v24, %s8069_s23 }
 0x94c   : > { %v7049_v45 = vpop.permute.xlu0 %5501  ;;  %v7051_v50 = vpop.permute.xlu1 %5496 }
 0x950   : > { %v2477_v52 = vpop.permute.xlu0 %2476  ;;  %v2475_v39 = vpop.permute.xlu1 %2474 }
 0x951   : > { %v2493_v48 = vmax.f32 %v7027_v61, %v2477_v52  ;;  %v2492_v40 = vmax.f32 %v7029_v14, %v2475_v39  ;;  %v5129_v39 = vpack.c.bf16 %v3675_v53, %v3674_v9 }
 0x953   : > { %2516 = vrot.lane.b32.xlu0 %v2493_v48, %s8069_s23  ;;  %2514 = vrot.lane.b32.xlu1 %v2492_v40, %s8069_s23 }
 0x954   : > { %v7057_v54 = vpop.permute.xlu0 %3520  ;;  %v7059_v60 = vpop.permute.xlu1 %3552 }
 0x9b5   : > { %v2505_v29 = vpop.permute.xlu0 %2504  ;;  %v2503_v57 = vpop.permute.xlu1 %2502 }
 0x9b6   : > { %v2527_v51 = vmax.f32 %v2487_v43, %v2505_v29  ;;  %v2526_v46 = vmax.f32 %v2486_v44, %v2503_v57  ;;  %v3657_v43 = vld [vmem:[%s8055_s6 + $0x28] sm:$0xff] }
 0x9b7   : > { %v5127_v44 = vpack.c.bf16 %v3657_v43, %v3656_v26  ;;  %v7223_v26 = vld [vmem:[#allocation3 + $0x10] sm:$0xff] }
 0x9b8   : > { %2544 = vrot.lane.b32.xlu0 %v2527_v51, %s8071_s16  ;;  %2542 = vrot.lane.b32.xlu1 %v2526_v46, %s8071_s16 }
 0x9b9   : > { %v2509_v56 = vpop.permute.xlu0 %2508  ;;  %v2507_v2 = vpop.permute.xlu1 %2506  ;;  %5128 = vmatpush3.bf16.msra.mxu0 %v5127_v44 }
 0x9ba   : > { %v2529_v4 = vmax.f32 %v2489_v5, %v2509_v56  ;;  %v2528_v6 = vmax.f32 %v2488_v12, %v2507_v2  ;;  %5130 = vmatprep.subr.bf16.mxu0 %v5129_v39  ;;  %v3660_v56 = vld [vmem:[%s8055_s6 + $0x40] sm:$0xff]  ;;  %v3662_v39 = vld [vmem:[%s8055_s6 + $0x50] sm:$0xff] }
 0x9bc   : > { %2548 = vrot.lane.b32.xlu0 %v2529_v4, %s8071_s16  ;;  %2546 = vrot.lane.b32.xlu1 %v2528_v6, %s8071_s16 }
 0x9bd   : > { %v2513_v58 = vpop.permute.xlu0 %2512  ;;  %v2511_v11 = vpop.permute.xlu1 %2510 }
 0x9be   : > { %v7097_v55 = vmax.f32 %v2491_v18, %v2513_v58  ;;  %v7099_v19 = vmax.f32 %v2490_v24, %v2511_v11  ;;  %v3658_v18 = vld [vmem:[%s8055_s6 + $0x30] sm:$0xff]  ;;  %v2633_v11 = vld [vmem:[#allocation3 + $0x3] sm:$0xff] }
 0x9c0   : > { %2552 = vrot.lane.b32.xlu0 %v7097_v55, %s8071_s16  ;;  %2550 = vrot.lane.b32.xlu1 %v7099_v19, %s8071_s16 }
 0x9c5   : > { %v2517_v20 = vpop.permute.xlu0 %2516  ;;  %v2515_v49 = vpop.permute.xlu1 %2514 }
 0x9c6   : > { %v7105_v8 = vmax.f32 %v2493_v48, %v2517_v20  ;;  %v7107_v13 = vmax.f32 %v2492_v40, %v2515_v49  ;;  %v3659_v48 = vld [vmem:[%s8055_s6 + $0x38] sm:$0xff]  ;;  %v2625_v20 = vld [vmem:[#allocation3 + $0x2] sm:$0xff] }
 0x9c7   : > { %v5131_v57 = vpack.c.bf16 %v3659_v48, %v3658_v18  ;;  %v3663_v48 = vld [vmem:[%s8055_s6 + $0x58] sm:$0xff] }
 0x9c8   : > { %2556 = vrot.lane.b32.xlu0 %v7105_v8, %s8071_s16  ;;  %2554 = vrot.lane.b32.xlu1 %v7107_v13, %s8071_s16  ;;  %s8108_s16 = smov 96  }
 0x9c9   : > { %5132 = vmatpush3.bf16.msra.mxu0 %v5131_v57 }
 0xa2a   : > { %v2545_v3 = vpop.permute.xlu0 %2544  ;;  %v2543_v30 = vpop.permute.xlu1 %2542 }
 0xa2b   : > { %v7149_v5 = vmax.f32 %v2527_v51, %v2545_v3  ;;  %v7151_v12 = vmax.f32 %v2526_v46, %v2543_v30  ;;  %v3676_v51 = vld [vmem:[%s8055_s6 + $0xc0] sm:$0xff]  ;;  %v3677_v46 = vld [vmem:[%s8055_s6 + $0xc8] sm:$0xff]  ;;  %v2626_v3 = vld [vmem:[#allocation3 + $0x12] sm:$0xff] }
 0xa2c   : > { %v5133_v2 = vpack.c.bf16 %v3677_v46, %v3676_v51  ;;  %v3680_v46 = vld [vmem:[%s8055_s6 + $0xe0] sm:$0xff] }
 0xa2d   : > { %2602 = vst.msk [vmem:[#allocation3 + $0x32] sm:$0xff] %vm481_vm0, %v7149_v5  ;;  %2601 = vst.msk [vmem:[#allocation3 + $0x22] sm:$0xff] %vm481_vm0, %v7151_v12 }
 0xa2e   : > { %v2549_v24 = vpop.permute.xlu0 %2548  ;;  %v2547_v52 = vpop.permute.xlu1 %2546  ;;  %5134 = vmatprep.subr.bf16.mxu0 %v5133_v2  ;;  %v5139_v2 = vpack.c.bf16 %v3663_v48, %v3662_v39  ;;  %v3688_v48 = vld [vmem:[%s8055_s6 + $0x120] sm:$0xff] }
 0xa2f   : > { %v7169_v40 = vmax.f32 %v2529_v4, %v2549_v24  ;;  %v7171_v29 = vmax.f32 %v2528_v6, %v2547_v52  ;;  %v3661_v4 = vld [vmem:[%s8055_s6 + $0x48] sm:$0xff] }
 0xa30   : > { %v5135_v49 = vpack.c.bf16 %v3661_v4, %v3660_v56  ;;  %v3681_v56 = vld [vmem:[%s8055_s6 + $0xe8] sm:$0xff]  ;;  %v3664_v4 = vld [vmem:[%s8055_s6 + $0x60] sm:$0xff] }
 0xa31   : > { %8101 = vst [vmem:[#allocation6_spill] sm:$0xff] %v7169_v40  ;;  %8102 = vst [vmem:[#allocation7_spill] sm:$0xff] %v7171_v29  ;;  %v5141_v62 = vpack.c.bf16 %v3681_v56, %v3680_v46 }
 0xa32   : > { %2604 = vst.msk [vmem:[#allocation3 + $0x52] sm:$0xff] %vm481_vm0, %v7169_v40  ;;  %2603 = vst.msk [vmem:[#allocation3 + $0x42] sm:$0xff] %vm481_vm0, %v7171_v29  ;;  %v2553_v6 = vpop.permute.xlu0 %2552  ;;  %v2551_v58 = vpop.permute.xlu1 %2550  ;;  %5136 = vmatpush3.bf16.msra.mxu0 %v5135_v49  ;;  %v3684_v49 = vld [vmem:[%s8055_s6 + $0x100] sm:$0xff] }
 0xa33   : > { %v7190_v15 = vmax.f32 %v7097_v55, %v2553_v6  ;;  %v7193_v37 = vmax.f32 %v7099_v19, %v2551_v58  ;;  %v2641_v55 = vld [vmem:[#allocation3 + $0x4] sm:$0xff]  ;;  %v2618_v19 = vld [vmem:[#allocation3 + $0x11] sm:$0xff]  ;;  %5138 = vmatprep.subr.bf16.mxu0 %v5137_v31 }
 0xa34   : > { %v7195_v17 = vld [vmem:[#allocation3 + $0x21] sm:$0xff]  ;;  %v7227_v30 = vld [vmem:[#allocation3 + $0x30] sm:$0xff] }
 0xa35   : > { %8103 = vst [vmem:[#allocation8_spill] sm:$0xff] %v7190_v15  ;;  %8104 = vst [vmem:[#allocation9_spill] sm:$0xff] %v7193_v37  ;;  %v7197_v34 = vld [vmem:[#allocation3 + $0x20] sm:$0xff]  ;;  %v5510_v33 = vpack.i.bf16 %v2633_v11, %v7195_v17  ;;  %v5530_v24 = vpack.i.bf16 %v2626_v3, %v7227_v30  ;;  %v7258_v57 = vld [vmem:[#allocation3 + $0x34] sm:$0xff] }
 0xa36   : > { %2606 = vst.msk [vmem:[#allocation3 + $0x72] sm:$0xff] %vm481_vm0, %v7190_v15  ;;  %2605 = vst.msk [vmem:[#allocation3 + $0x62] sm:$0xff] %vm481_vm0, %v7193_v37  ;;  %v5505_v22 = vpack.i.bf16 %v2625_v20, %v7197_v34  ;;  %v7205_v28 = vld [vmem:[#allocation3 + $0x22] sm:$0xff]  ;;  %v7260_v51 = vld [vmem:[#allocation3 + $0x32] sm:$0xff]  ;;  %5140 = vmatpush3.bf16.msra.mxu0 %v5139_v2 }
 0xa37   : > { %v7207_v32 = vld [vmem:[#allocation3 + $0x24] sm:$0xff]  ;;  %5511 = vrot.lane.b32.xlu1 %v5510_v33, %s5970_s19  ;;  %v5515_v38 = vpack.i.bf16 %v2641_v55, %v7205_v28  ;;  %v3682_v58 = vld [vmem:[%s8055_s6 + $0xf0] sm:$0xff]  ;;  %v5550_v11 = vpack.i.bf16 %v7258_v57, %v7260_v51  ;;  %v3683_v20 = vld [vmem:[%s8055_s6 + $0xf8] sm:$0xff]  ;;  %v5555_v3 = vpack.i.bf16 %v7014_v23, %v7260_v51  ;;  %5142 = vmatprep.subr.bf16.mxu0 %v5141_v62 }
 0xa38   : > { %5506 = vrot.lane.b32.xlu0 %v5505_v22, %s8075_s28  ;;  %v5520_v36 = vpack.i.bf16 %v2618_v19, %v7207_v32  ;;  %v7225_v44 = vld [vmem:[#allocation3 + $0x23] sm:$0xff]  ;;  %v3666_v55 = vld [vmem:[%s8055_s6 + $0x70] sm:$0xff]  ;;  %v3667_v19 = vld [vmem:[%s8055_s6 + $0x78] sm:$0xff] }
 0xa39   : > { %v7217_v63 = vld [vmem:[#allocation3 + $0x44] sm:$0xff]  ;;  %v5525_v18 = vpack.i.bf16 %v7223_v26, %v7225_v44  ;;  %v3686_v31 = vld [vmem:[%s8055_s6 + $0x110] sm:$0xff] }
 0xa3a   : > { %4503 = vmatprep.mubr.msk.f32.mxu1 %vm481_vm0, %v7217_v63  ;;  %v2557_v25 = vpop.permute.xlu0 %2556  ;;  %v2555_v43 = vpop.permute.xlu1 %2554  ;;  %v3665_v6 = vld [vmem:[%s8055_s6 + $0x68] sm:$0xff]  ;;  %v7290_v22 = vld [vmem:[#allocation3 + $0x40] sm:$0xff] }
 0xa3b   : > { %v7230_v9 = vmax.f32 %v7105_v8, %v2557_v25  ;;  %v7233_v53 = vmax.f32 %v7107_v13, %v2555_v43  ;;  %5521 = vrot.lane.b32.xlu1 %v5520_v36, %s8077_s22  ;;  %v7244_v8 = vld [vmem:[#allocation3 + $0x31] sm:$0xff]  ;;  %v3685_v33 = vld [vmem:[%s8055_s6 + $0x108] sm:$0xff]  ;;  %v5143_v35 = vpack.c.bf16 %v3665_v6, %v3664_v4  ;;  %v5145_v25 = vpack.c.bf16 %v3683_v20, %v3682_v58  ;;  %s8111_s22 = smov 32  }
 0xa3c   : > { %5516 = vrot.lane.b32.xlu0 %v5515_v38, %s8100_s27  ;;  %v7248_v13 = vld [vmem:[#allocation3 + $0x13] sm:$0xff]  ;;  %v5150_v43 = vpack.c.bf16 %v3685_v33, %v3684_v49  ;;  %v3689_v23 = vld [vmem:[%s8055_s6 + $0x128] sm:$0xff]  ;;  %v5580_v20 = vpack.i.bf16 %v7195_v17, %v7258_v57 }
 0xa3d   : > { %8105 = vst [vmem:[#allocation10_spill] sm:$0xff] %v7230_v9  ;;  %8106 = vst [vmem:[#allocation11_spill] sm:$0xff] %v7233_v53  ;;  %v5540_v52 = vpack.i.bf16 %v7248_v13, %v7244_v8  ;;  %v3687_v38 = vld [vmem:[%s8055_s6 + $0x118] sm:$0xff]  ;;  %5144 = vmatpush3.bf16.msra.mxu0 %v5143_v35  ;;  %v7327_v2 = vld [vmem:[#allocation3 + $0x42] sm:$0xff]  ;;  %v5156_v4 = vpack.c.bf16 %v3689_v23, %v3688_v48 }
 0xa3e   : > { %2608 = vst.msk [vmem:[#allocation3 + $0x92] sm:$0xff] %vm481_vm0, %v7230_v9  ;;  %2607 = vst.msk [vmem:[#allocation3 + $0x82] sm:$0xff] %vm481_vm0, %v7233_v53  ;;  %5151 = vmatpush1.bf16.msra.mxu1 %v5150_v43  ;;  %v5153_v39 = vpack.c.bf16 %v3687_v38, %v3686_v31  ;;  %5146 = vmatprep.subr.bf16.mxu0 %v5145_v25  ;;  %v3690_v6 = vld [vmem:[%s8055_s6 + $0x130] sm:$0xff]  ;;  %v3691_v58 = vld [vmem:[%s8055_s6 + $0x138] sm:$0xff]  ;;  %v5595_v25 = vpack.i.bf16 %v7205_v28, %v7290_v22 }
 0xa3f   : > { %5531 = vrot.lane.b32.xlu1 %v5530_v24, %s8075_s28  ;;  %5152 = vmatprep.subr.bf16.mxu1 %v8080_v1  ;;  %v7342_v49 = vld [vmem:[#allocation3 + $0x43] sm:$0xff]  ;;  %v5159_v33 = vpack.c.bf16 %v3691_v58, %v3690_v6  ;;  %v3694_v31 = vld [vmem:[%s8055_s6 + $0x150] sm:$0xff]  ;;  %v3695_v38 = vld [vmem:[%s8055_s6 + $0x158] sm:$0xff]  ;;  %v5620_v6 = vpack.i.bf16 %v7244_v8, %v7217_v63 }
 0xa40   : > { %5526 = vrot.lane.b32.xlu0 %v5525_v18, %s8107_s18  ;;  %v5590_v62 = vpack.i.bf16 %v7342_v49, %v7205_v28  ;;  %v5605_v28 = vpack.i.bf16 %v7217_v63, %v7225_v44  ;;  %v7383_v48 = vld [vmem:[#allocation3 + $0x50] sm:$0xff] }
 0xa41   : > { %v7398_v58 = vld [vmem:[#allocation3 + $0x51] sm:$0xff] }
 0xa42   : > { %5154 = vmatpush1.bf16.msra.mxu1 %v5153_v39  ;;  %v5610_v39 = vpack.i.bf16 %v7217_v63, %v7327_v2 }
 0xa43   : > { %5541 = vrot.lane.b32.xlu1 %v5540_v52, %s5970_s19  ;;  %v5147_v52 = vpack.c.bf16 %v3667_v19, %v3666_v55  ;;  %5155 = vmatprep.subr.bf16.mxu1 %v8080_v1  ;;  %v3692_v55 = vld [vmem:[%s8055_s6 + $0x140] sm:$0xff]  ;;  %v3693_v19 = vld [vmem:[%s8055_s6 + $0x148] sm:$0xff] }
 0xa44   : > { %5536 = vrot.lane.b32.xlu0 %v5520_v36, %s8108_s16  ;;  %v7306_v36 = vld [vmem:[#allocation3 + $0x33] sm:$0xff]  ;;  %v5162_v35 = vpack.c.bf16 %v3693_v19, %v3692_v55  ;;  %v5630_v55 = vpack.i.bf16 %v7398_v58, %v7227_v30 }
 0xa45   : > { %v5560_v18 = vpack.i.bf16 %v7290_v22, %v7306_v36  ;;  %v5565_v46 = vpack.i.bf16 %v7197_v34, %v7306_v36  ;;  %5148 = vmatpush3.bf16.msra.mxu0 %v5147_v52  ;;  %v3697_v52 = vld [vmem:[%s8055_s6 + $0x168] sm:$0xff]  ;;  %v7413_v19 = vld [vmem:[#allocation3 + $0x52] sm:$0xff]  ;;  %v5645_v30 = vpack.i.bf16 %v7306_v36, %v7398_v58 }
 0xa46   : > { %5157 = vmatpush1.bf16.msra.mxu1 %v5156_v4  ;;  %v5615_v4 = vpack.i.bf16 %v7383_v48, %v7207_v32  ;;  %v5625_v32 = vpack.i.bf16 %v7383_v48, %v7342_v49  ;;  %v2777_v7 = vld [vmem:[#allocation3 + $0x90] sm:$0xff] }
 0xa47   : > { %5551 = vrot.lane.b32.xlu1 %v5550_v11, %s8110_s26  ;;  %v5575_v11 = vpack.i.bf16 %v7327_v2, %v7195_v17  ;;  %5158 = vmatprep.subr.bf16.mxu1 %v8080_v1  ;;  %v5585_v17 = vpack.i.bf16 %v7327_v2, %v7290_v22 }
 0xa48   : > { %5546 = vrot.lane.b32.xlu0 %v5530_v24, %s8109_s25  ;;  %v7312_v24 = vld [vmem:[#allocation3 + $0x41] sm:$0xff] }
 0xa49   : > { %v5570_v56 = vpack.i.bf16 %v7312_v24, %v7258_v57  ;;  %v5600_v43 = vpack.i.bf16 %v7342_v49, %v7312_v24 }
 0xa4a   : > { %5160 = vmatpush1.bf16.msra.mxu1 %v5159_v33  ;;  %v3701_v33 = vld [vmem:[%s8055_s6 + $0x188] sm:$0xff] }
 0xa4b   : > { %5561 = vrot.lane.b32.xlu1 %v5560_v18, %s8111_s22  ;;  %5161 = vmatprep.subr.bf16.mxu1 %v8080_v1  ;;  %v3696_v18 = vld [vmem:[%s8055_s6 + $0x160] sm:$0xff] }
 0xa4c   : > { %5556 = vrot.lane.b32.xlu0 %v5555_v3, %s8100_s27  ;;  %v5165_v3 = vpack.c.bf16 %v3695_v38, %v3694_v31  ;;  %v5168_v23 = vpack.c.bf16 %v3697_v52, %v3696_v18  ;;  %v7422_v31 = vld [vmem:[#allocation3 + $0x54] sm:$0xff]  ;;  %v2694_v18 = vld [vmem:[#allocation3 + $0x60] sm:$0xff] }
 0xa4d   : > { %v5650_v38 = vpack.i.bf16 %v7422_v31, %v7413_v19 }
 0xa4e   : > { %5163 = vmatpush1.bf16.msra.mxu1 %v5162_v35  ;;  %v5640_v35 = vpack.i.bf16 %v7413_v19, %v7244_v8 }
 0xa4f   : > { %5571 = vrot.lane.b32.xlu1 %v5570_v56, %s5970_s19  ;;  %5164 = vmatprep.subr.bf16.mxu1 %v8080_v1  ;;  %v3699_v56 = vld [vmem:[%s8055_s6 + $0x178] sm:$0xff] }
 0xa50   : > { %5566 = vrot.lane.b32.xlu0 %v5565_v46, %s8107_s18  ;;  %v3698_v46 = vld [vmem:[%s8055_s6 + $0x170] sm:$0xff] }
 0xa52   : > { %5166 = vmatpush1.bf16.msra.mxu1 %v5165_v3  ;;  %v5660_v3 = vpack.i.bf16 %v7258_v57, %v7413_v19 }
 0xa53   : > { %5581 = vrot.lane.b32.xlu1 %v5580_v20, %s8108_s16  ;;  %5167 = vmatprep.subr.bf16.mxu1 %v8080_v1  ;;  %v3700_v20 = vld [vmem:[%s8055_s6 + $0x180] sm:$0xff] }
 0xa54   : > { %5576 = vrot.lane.b32.xlu0 %v5575_v11, %s8110_s26  ;;  %v5171_v11 = vpack.c.bf16 %v3699_v56, %v3698_v46  ;;  %v5685_v46 = vpack.i.bf16 %v7312_v24, %v7422_v31  ;;  %v7458_v56 = vld [vmem:[#allocation3 + $0x63] sm:$0xff] }
 0xa56   : > { %5169 = vmatpush1.bf16.msra.mxu1 %v5168_v23  ;;  %v7445_v23 = vld [vmem:[#allocation3 + $0x61] sm:$0xff] }
 0xa57   : > { %5591 = vrot.lane.b32.xlu1 %v5590_v62, %s8111_s22  ;;  %5170 = vmatprep.subr.bf16.mxu1 %v8080_v1  ;;  %v5635_v62 = vpack.i.bf16 %v7260_v51, %v7383_v48 }
 0xa58   : > { %5586 = vrot.lane.b32.xlu0 %v5585_v17, %s8100_s27  ;;  %v5174_v17 = vpack.c.bf16 %v3701_v33, %v3700_v20  ;;  %v5705_v33 = vpack.i.bf16 %v7458_v56, %v7445_v23 }
 0xa5a   : > { %5172 = vmatpush1.bf16.msra.mxu1 %v5171_v11  ;;  %v7465_v11 = vld [vmem:[#allocation3 + $0x64] sm:$0xff] }
 0xa5b   : > { %5601 = vrot.lane.b32.xlu1 %v5600_v43, %s8107_s18  ;;  %5173 = vmatprep.subr.bf16.mxu1 %v8080_v1  ;;  %v5710_v20 = vpack.i.bf16 %v7465_v11, %v7342_v49 }
 0xa5c   : > { %5596 = vrot.lane.b32.xlu0 %v5595_v25, %s8109_s25  ;;  %v7430_v25 = vld [vmem:[#allocation3 + $0x53] sm:$0xff] }
 0xa5d   : > { %v5655_v43 = vpack.i.bf16 %v7430_v25, %v7260_v51  ;;  %v5670_v52 = vpack.i.bf16 %v7290_v22, %v7430_v25  ;;  %v5675_v51 = vpack.i.bf16 %v7445_v23, %v7422_v31 }
 0xa5e   : > { %5175 = vmatpush1.bf16.msra.mxu1 %v5174_v17 }
 0xa5f   : > { %5611 = vrot.lane.b32.xlu1 %v5610_v39, %s8108_s16  ;;  %v7443_v39 = vld [vmem:[#allocation3 + $0x62] sm:$0xff] }
 0xa60   : > { %5606 = vrot.lane.b32.xlu0 %v5605_v28, %s5970_s19  ;;  %v5665_v28 = vpack.i.bf16 %v2694_v18, %v7430_v25  ;;  %v5680_v57 = vpack.i.bf16 %v7443_v39, %v7312_v24  ;;  %v5690_v22 = vpack.i.bf16 %v7443_v39, %v2694_v18 }
 0xa63   : > { %5621 = vrot.lane.b32.xlu1 %v5620_v6, %s8110_s26  ;;  %v5695_v6 = vpack.i.bf16 %v7458_v56, %v7327_v2 }
 0xa64   : > { %5616 = vrot.lane.b32.xlu0 %v5615_v4, %s8100_s27  ;;  %v5700_v4 = vpack.i.bf16 %v7327_v2, %v2694_v18 }
 0xa67   : > { %5631 = vrot.lane.b32.xlu1 %v5630_v55, %s8107_s18  ;;  %v5715_v55 = vpack.i.bf16 %v7465_v11, %v7443_v39 }
 0xa68   : > { %5626 = vrot.lane.b32.xlu0 %v5625_v32, %s8109_s25  ;;  %v7473_v32 = vld [vmem:[#allocation3 + $0x70] sm:$0xff] }
 0xa69   : > { %v5720_v2 = vpack.i.bf16 %v7473_v32, %v7217_v63  ;;  %v5730_v17 = vpack.i.bf16 %v7473_v32, %v7458_v56  ;;  %v5740_v63 = vpack.i.bf16 %v7413_v19, %v7473_v32 }
 0xa6b   : > { %5641 = vrot.lane.b32.xlu1 %v5640_v35, %s8108_s16  ;;  %v7487_v35 = vld [vmem:[#allocation3 + $0x71] sm:$0xff] }
 0xa6c   : > { %5636 = vrot.lane.b32.xlu0 %v5635_v62, %s8111_s22  ;;  %v5725_v62 = vpack.i.bf16 %v7398_v58, %v7465_v11 }
 0xa6f   : > { %5651 = vrot.lane.b32.xlu1 %v5650_v38, %s8110_s26  ;;  %v7495_v38 = vld [vmem:[#allocation3 + $0x72] sm:$0xff] }
 0xa70   : > { %5646 = vrot.lane.b32.xlu0 %v5645_v30, %s5970_s19  ;;  %v5735_v30 = vpack.i.bf16 %v7487_v35, %v7383_v48 }
 0xa73   : > { %5661 = vrot.lane.b32.xlu1 %v5660_v3, %s8100_s27  ;;  %v5745_v3 = vpack.i.bf16 %v7495_v38, %v7398_v58 }
 0xa74   : > { %5656 = vrot.lane.b32.xlu0 %v5655_v43, %s8109_s25  ;;  %v5750_v43 = vpack.i.bf16 %v7430_v25, %v7487_v35 }
 0xa77   : > { %5671 = vrot.lane.b32.xlu1 %v5670_v52, %s8107_s18  ;;  %v7503_v52 = vld [vmem:[#allocation3 + $0x73] sm:$0xff] }
 0xa78   : > { %5666 = vrot.lane.b32.xlu0 %v5665_v28, %s8111_s22  ;;  %v7505_v28 = vld [vmem:[#allocation3 + $0x74] sm:$0xff]  ;;  %v5760_v48 = vpack.i.bf16 %v7503_v52, %v7413_v19  ;;  %v5775_v19 = vpack.i.bf16 %v2694_v18, %v7503_v52 }
 0xa7b   : > { %5681 = vrot.lane.b32.xlu1 %v5680_v57, %s8110_s26  ;;  %v5755_v57 = vpack.i.bf16 %v7505_v28, %v7495_v38 }
 0xa7c   : > { %5676 = vrot.lane.b32.xlu0 %v5675_v51, %s5970_s19  ;;  %v7513_v51 = vld [vmem:[#allocation3 + $0x80] sm:$0xff] }
 0xa7f   : > { %5691 = vrot.lane.b32.xlu1 %v5690_v22, %s8100_s27  ;;  %v5765_v22 = vpack.i.bf16 %v7422_v31, %v7495_v38 }
 0xa80   : > { %5686 = vrot.lane.b32.xlu0 %v5685_v46, %s8108_s16  ;;  %v5770_v46 = vpack.i.bf16 %v7513_v51, %v7503_v52 }
 0xa83   : > { %5701 = vrot.lane.b32.xlu1 %v5700_v4, %s8109_s25  ;;  %v7521_v4 = vld [vmem:[#allocation3 + $0x81] sm:$0xff] }
 0xa84   : > { %5696 = vrot.lane.b32.xlu0 %v5695_v6, %s8111_s22  ;;  %v5780_v6 = vpack.i.bf16 %v7521_v4, %v7505_v28 }
 0xa87   : > { %5711 = vrot.lane.b32.xlu1 %v5710_v20, %s5970_s19  ;;  %v7528_v20 = vld [vmem:[#allocation3 + $0x82] sm:$0xff] }
 0xa88   : > { %5706 = vrot.lane.b32.xlu0 %v5705_v33, %s8107_s18  ;;  %v5785_v33 = vpack.i.bf16 %v7528_v20, %v7445_v23 }
 0xa8b   : > { %5721 = vrot.lane.b32.xlu1 %v5720_v2, %s8100_s27  ;;  %v5790_v2 = vpack.i.bf16 %v7445_v23, %v7505_v28 }
 0xa8c   : > { %5716 = vrot.lane.b32.xlu0 %v5715_v55, %s8108_s16  ;;  %v7536_v55 = vld [vmem:[#allocation3 + $0x83] sm:$0xff] }
 0xa8f   : > { %5731 = vrot.lane.b32.xlu1 %v5730_v17, %s8109_s25 }
 0xa90   : > { %5726 = vrot.lane.b32.xlu0 %v5725_v62, %s8110_s26  ;;  %v5795_v62 = vpack.i.bf16 %v7528_v20, %v7513_v51 }
 0xa93   : > { %5741 = vrot.lane.b32.xlu1 %v5740_v63, %s8111_s22  ;;  %v5800_v63 = vpack.i.bf16 %v7536_v55, %v7443_v39 }
 0xa94   : > { %5736 = vrot.lane.b32.xlu0 %v5735_v30, %s8107_s18 }
 0xa97   : > { %5751 = vrot.lane.b32.xlu1 %v5750_v43, %s5970_s19 }
 0xa98   : > { %5746 = vrot.lane.b32.xlu0 %v5745_v3, %s8108_s16  ;;  %v5805_v3 = vpack.i.bf16 %v7443_v39, %v7513_v51 }
 0xa9b   : > { %5761 = vrot.lane.b32.xlu1 %v5760_v48, %s8109_s25  ;;  %v5810_v48 = vpack.i.bf16 %v7536_v55, %v7521_v4 }
 0xa9c   : > { %5756 = vrot.lane.b32.xlu0 %v5755_v57, %s8110_s26  ;;  %v7552_v57 = vld [vmem:[#allocation3 + $0x84] sm:$0xff] }
 0xa9d   : > { %v5815_v1 = vpack.i.bf16 %v7552_v57, %v7458_v56  ;;  %v5820_v42 = vpack.i.bf16 %v7552_v57, %v7528_v20  ;;  %v5830_v56 = vpack.i.bf16 %v7487_v35, %v7552_v57 }
 0xa9f   : > { %5771 = vrot.lane.b32.xlu1 %v5770_v46, %s8111_s22  ;;  %v3949_v46 = vld [vmem:[%s8056_s7 + $0x8] sm:$0xff] }
 0xaa0   : > { %5766 = vrot.lane.b32.xlu0 %v5765_v22, %s8100_s27  ;;  %v3948_v22 = vld [vmem:[%s8056_s7] sm:$0xff] }
 0xaa1   : > { %v7564_v39 = vpack.c.bf16 %v3949_v46, %v3948_v22  ;;  %v5825_v22 = vpack.i.bf16 %v2777_v7, %v7465_v11 }
 0xaa3   : > { %5781 = vrot.lane.b32.xlu1 %v5780_v6, %s5970_s19  ;;  %v5498_v6 = vunpack.i.l.bf16 %v7051_v50  ;;  %5181 = vmatprep.subr.bf16.mxu0 %v7564_v39 }
 0xaa4   : > { %5776 = vrot.lane.b32.xlu0 %v5775_v19, %s8107_s18  ;;  %v5499_v19 = vunpack.i.h.bf16 %v7051_v50 }
 0xaa7   : > { %5791 = vrot.lane.b32.xlu1 %v5790_v2, %s8108_s16 }
 0xaa8   : > { %5786 = vrot.lane.b32.xlu0 %v5785_v33, %s8110_s26  ;;  %v2609_v33 = vld [vmem:[#allocation3] sm:$0xff] }
 0xaa9   : > { %v5512_v17 = vpop.permute.xlu1 %5511  ;;  %v3260_v50 = vsel %vm481_vm0, %v2609_v33, %v5499_v19 }
 0xaaa   : > { %v5507_v18 = vpop.permute.xlu0 %5506 }
 0xaab   : > { %5801 = vrot.lane.b32.xlu1 %v5800_v63, %s8111_s22  ;;  %v5509_v2 = vunpack.i.h.bf16 %v5507_v18 }
 0xaac   : > { %5796 = vrot.lane.b32.xlu0 %v5795_v62, %s8100_s27  ;;  %v5508_v62 = vunpack.i.l.bf16 %v5507_v18  ;;  %v5514_v18 = vunpack.i.h.bf16 %v5512_v17 }
 0xaad   : > { %v7546_v43 = vpop.permute.xlu1 %5521  ;;  %v3268_v46 = vsel %vm838_vm2, %v3260_v50, %v5509_v2 }
 0xaae   : > { %v5517_v30 = vpop.permute.xlu0 %5516  ;;  %v3276_v37 = vsel %vm847_vm3, %v3268_v46, %v5514_v18  ;;  %v2793_v46 = vld [vmem:[#allocation3 + $0x92] sm:$0xff] }
 0xaaf   : > { %5811 = vrot.lane.b32.xlu1 %v5810_v48, %s8107_s18  ;;  %v5513_v48 = vunpack.i.l.bf16 %v5512_v17  ;;  %v5519_v53 = vunpack.i.h.bf16 %v5517_v30  ;;  %v5518_v19 = vunpack.i.l.bf16 %v5517_v30 }
 0xab0   : > { %5806 = vrot.lane.b32.xlu0 %v5805_v3, %s8109_s25  ;;  %v3316_v3 = vsel %vm481_vm0, %v7248_v13, %v5498_v6  ;;  %v7585_v6 = vld [vmem:[#allocation3 + $0x91] sm:$0xff] }
 0xab1   : > { %v7566_v0 = vpop.permute.xlu1 %5531  ;;  %v3324_v9 = vsel %vm838_vm2, %v3316_v3, %v5508_v62  ;;  %v3284_v62 = vsel %vm856_vm4, %v3276_v37, %v5519_v53  ;;  %v3950_v37 = vld [vmem:[%s8056_s7 + $0x10] sm:$0xff] }
 0xab2   : > { %v5527_v63 = vpop.permute.xlu0 %5526  ;;  %v3332_v2 = vsel %vm847_vm3, %v3324_v9, %v5513_v48  ;;  %v3951_v9 = vld [vmem:[%s8056_s7 + $0x18] sm:$0xff] }
 0xab3   : > { %5821 = vrot.lane.b32.xlu1 %v5820_v42, %s8108_s16  ;;  %v5529_v13 = vunpack.i.h.bf16 %v5527_v63  ;;  %v3340_v30 = vsel %vm856_vm4, %v3332_v2, %v5518_v19  ;;  %v5850_v2 = vpack.i.bf16 %v2793_v46, %v7487_v35 }
 0xab4   : > { %5816 = vrot.lane.b32.xlu0 %v5815_v1, %s5970_s19  ;;  %v5528_v1 = vunpack.i.l.bf16 %v5527_v63  ;;  %v5835_v63 = vpack.i.bf16 %v2777_v7, %v7536_v55 }
 0xab5   : > { %v7583_v15 = vpop.permute.xlu1 %5541 }
 0xab6   : > { %v5537_v33 = vpop.permute.xlu0 %5536  ;;  %v3348_v18 = vsel %vm865_vm5, %v3340_v30, %v5528_v1  ;;  %v5845_v1 = vpack.i.bf16 %v7495_v38, %v2777_v7  ;;  %v2754_v30 = vld [vmem:[#allocation3 + $0xa2] sm:$0xff] }
 0xab7   : > { %v5539_v42 = vunpack.i.h.bf16 %v5537_v33  ;;  %v5538_v17 = vunpack.i.l.bf16 %v5537_v33  ;;  %5831 = vrot.lane.b32.xlu1 %v5830_v56, %s8110_s26  ;;  %v5840_v33 = vpack.i.bf16 %v7585_v6, %v7473_v32 }
 0xab8   : > { %5826 = vrot.lane.b32.xlu0 %v5825_v22, %s8100_s27  ;;  %v3292_v22 = vsel %vm865_vm5, %v3284_v62, %v5529_v13  ;;  %v5184_v62 = vpack.c.bf16 %v3951_v9, %v3950_v37  ;;  %v5870_v9 = vpack.i.bf16 %v7505_v28, %v2793_v46 }
 0xab9   : > { %v7593_v3 = vpop.permute.xlu1 %5551  ;;  %v3356_v53 = vsel %vm8112_vm6, %v3348_v18, %v5538_v17  ;;  %v3300_v32 = vsel %vm8113_vm12, %v3292_v22, %v5539_v42  ;;  %v3952_v42 = vld [vmem:[%s8056_s7 + $0x20] sm:$0xff]  ;;  %v5855_v17 = vpack.i.bf16 %v7503_v52, %v7585_v6  ;;  %v3954_v22 = vld [vmem:[%s8056_s7 + $0x30] sm:$0xff]  ;;  %vm8120_vm6 = vmmov %vm8096_vm8 }
 0xaba   : > { %v5547_v50 = vpop.permute.xlu0 %5546  ;;  %vm8121_vm12 = vmmov %vm8120_vm6 }
 0xabb   : > { %v5549_v40 = vunpack.i.h.bf16 %v5547_v50  ;;  %v5548_v56 = vunpack.i.l.bf16 %v5547_v50  ;;  %5841 = vrot.lane.b32.xlu1 %v5840_v33, %s8107_s18  ;;  %v5860_v50 = vpack.i.bf16 %v2754_v30, %v2793_v46  ;;  %v2801_v33 = vld [vmem:[#allocation3 + $0x93] sm:$0xff]  ;;  %v5533_v46 = vunpack.i.l.bf16 %v7566_v0 }
 0xabc   : > { %5836 = vrot.lane.b32.xlu0 %v5835_v63, %s8109_s25  ;;  %v5865_v37 = vpack.i.bf16 %v2801_v33, %v7495_v38  ;;  %v5534_v38 = vunpack.i.h.bf16 %v7566_v0  ;;  %v5880_v0 = vpack.i.bf16 %v7513_v51, %v2801_v33  ;;  %v3958_v51 = vld [vmem:[%s8056_s7 + $0x50] sm:$0xff] }
 0xabd   : > { %v3364_v55 = vsel %vm8114_vm13, %v3356_v53, %v5548_v56  ;;  %v3308_v48 = vsel %vm8115_vm14, %v3300_v32, %v5549_v40  ;;  %v7614_v13 = vpop.permute.xlu1 %5561  ;;  %v3953_v40 = vld [vmem:[%s8056_s7 + $0x28] sm:$0xff]  ;;  %v3955_v56 = vld [vmem:[%s8056_s7 + $0x38] sm:$0xff]  ;;  %vm8122_vm13 = vmmov %vm8095_vm1 }
 0xabe   : > { %v7612_v19 = vpop.permute.xlu0 %5556  ;;  %3794 = vmatprep.mubr.f32.mxu0 %v3364_v55  ;;  %v5188_v63 = vpack.c.bf16 %v3953_v40, %v3952_v42  ;;  %v7645_v53 = vld [vmem:[#allocation3 + $0xa3] sm:$0xff]  ;;  %v5192_v32 = vpack.c.bf16 %v3955_v56, %v3954_v22  ;;  %v5524_v55 = vunpack.i.h.bf16 %v7546_v43  ;;  %v7669_v22 = vld [vmem:[#allocation3 + $0x94] sm:$0xff]  ;;  %vm8123_vm14 = vmmov %vm8095_vm1 }
 0xabf   : > { %3795 = vmatmul.mubr.f32.vlgmr.msra.gmra.mrb[36].mxu0 %v3308_v48  ;;  %5851 = vrot.lane.b32.xlu1 %v5850_v2, %s8108_s16  ;;  %v5523_v48 = vunpack.i.l.bf16 %v7546_v43  ;;  %v3957_v2 = vld [vmem:[%s8056_s7 + $0x48] sm:$0xff]  ;;  %v5543_v43 = vunpack.i.l.bf16 %v7583_v15  ;;  %v5875_v30 = vpack.i.bf16 %v7645_v53, %v2801_v33  ;;  %v5559_v42 = vunpack.i.h.bf16 %v7612_v19  ;;  %v3959_v33 = vld [vmem:[%s8056_s7 + $0x58] sm:$0xff] }
 0xac0   : > { %5846 = vrot.lane.b32.xlu0 %v5845_v1, %s8111_s22  ;;  %5183 = vmatpush3.bf16.msra.mxu0 %v7564_v39  ;;  %v3956_v1 = vld [vmem:[%s8056_s7 + $0x40] sm:$0xff]  ;;  %v5558_v40 = vunpack.i.l.bf16 %v7612_v19 }
 0xac1   : > { %v7629_v35 = vpop.permute.xlu1 %5571  ;;  %5185 = vmatprep.subr.bf16.mxu0 %v5184_v62  ;;  %v7671_v56 = vld [vmem:[#allocation3 + $0xa4] sm:$0xff] }
 0xac2   : > { %v7627_v7 = vpop.permute.xlu0 %5566 }
 0xac3   : > { %5861 = vrot.lane.b32.xlu1 %v5860_v50, %s8110_s26  ;;  %v5569_v19 = vunpack.i.h.bf16 %v7627_v7 }
 0xac4   : > { %5856 = vrot.lane.b32.xlu0 %v5855_v17, %s5970_s19  ;;  %5187 = vmatpush3.bf16.msra.mxu0 %v5184_v62  ;;  %v5544_v62 = vunpack.i.h.bf16 %v7583_v15  ;;  %v3261_v15 = vsel %vm481_vm0, %v7223_v26, %v5524_v55 }
 0xac5   : > { %v5582_v18 = vpop.permute.xlu1 %5581  ;;  %5189 = vmatprep.subr.bf16.mxu0 %v5188_v63 }
 0xac6   : > { %v7641_v39 = vpop.permute.xlu0 %5576  ;;  %v5584_v26 = vunpack.i.h.bf16 %v5582_v18  ;;  %v5583_v55 = vunpack.i.l.bf16 %v5582_v18  ;;  %v5890_v18 = vpack.i.bf16 %v7521_v4, %v7669_v22 }
 0xac7   : > { %5871 = vrot.lane.b32.xlu1 %v5870_v9, %s8100_s27  ;;  %v5568_v9 = vunpack.i.l.bf16 %v7627_v7 }
 0xac8   : > { %5866 = vrot.lane.b32.xlu0 %v5865_v37, %s8109_s25  ;;  %5191 = vmatpush3.bf16.msra.mxu0 %v5188_v63  ;;  %v5196_v37 = vpack.c.bf16 %v3957_v2, %v3956_v1  ;;  %v3317_v63 = vsel %vm481_vm0, %v7225_v44, %v5523_v48  ;;  %v3269_v1 = vsel %vm838_vm2, %v3261_v15, %v5534_v38 }
 0xac9   : > { %v7666_v50 = vpop.permute.xlu1 %5591  ;;  %5193 = vmatprep.subr.bf16.mxu0 %v5192_v32  ;;  %v3325_v2 = vsel %vm838_vm2, %v3317_v63, %v5533_v46  ;;  %v3277_v44 = vsel %vm847_vm3, %v3269_v1, %v5544_v62  ;;  %v5885_v48 = vpack.i.bf16 %v7671_v56, %v7669_v22  ;;  %v2738_v1 = vld [vmem:[#allocation3 + $0xa0] sm:$0xff] }
 0xaca   : > { %v7664_v17 = vpop.permute.xlu0 %5586  ;;  %v3333_v7 = vsel %vm847_vm3, %v3325_v2, %v5543_v43  ;;  %v3285_v29 = vsel %vm856_vm4, %v3277_v44, %v5559_v42  ;;  %v3961_v42 = vld [vmem:[%s8056_s7 + $0x68] sm:$0xff]  ;;  %v5554_v44 = vunpack.i.h.bf16 %v7593_v3 }
 0xacb   : > { %5881 = vrot.lane.b32.xlu1 %v5880_v0, %s8107_s18  ;;  %v3341_v38 = vsel %vm856_vm4, %v3333_v7, %v5558_v40  ;;  %v3293_v63 = vsel %vm865_vm5, %v3285_v29, %v5569_v19  ;;  %v5553_v7 = vunpack.i.l.bf16 %v7593_v3  ;;  %v5573_v3 = vunpack.i.l.bf16 %v7629_v35 }
 0xacc   : > { %5876 = vrot.lane.b32.xlu0 %v5875_v30, %s8111_s22  ;;  %5195 = vmatpush3.bf16.msra.mxu0 %v5192_v32  ;;  %v5200_v30 = vpack.c.bf16 %v3959_v33, %v3958_v51  ;;  %v3349_v43 = vsel %vm865_vm5, %v3341_v38, %v5568_v9  ;;  %v3960_v32 = vld [vmem:[%s8056_s7 + $0x60] sm:$0xff]  ;;  %v3301_v40 = vsel %vm8095_vm1, %v3293_v63, %v5584_v26  ;;  %v3962_v26 = vld [vmem:[%s8056_s7 + $0x70] sm:$0xff]  ;;  %vm8125_vm1 = vmmov %vm8120_vm6 }
 0xacd   : > { %v7695_v46 = vpop.permute.xlu1 %5601  ;;  %5197 = vmatprep.subr.bf16.mxu0 %v5196_v37  ;;  %v3357_v4 = vsel %vm8116_vm15, %v3349_v43, %v5583_v55  ;;  %v5895_v33 = vpack.i.bf16 %v7528_v20, %v2738_v1  ;;  %v5204_v2 = vpack.c.bf16 %v3961_v42, %v3960_v32  ;;  %v5564_v55 = vunpack.i.h.bf16 %v7614_v13  ;;  %v2787_v38 = vld [vmem:[#allocation3 + $0xb1] sm:$0xff]  ;;  %vm8124_vm15 = vmmov %vm8120_vm6 }
 0xace   : > { %v5597_v15 = vpop.permute.xlu0 %5596  ;;  %v5574_v20 = vunpack.i.h.bf16 %v7629_v35  ;;  %v3318_v63 = vsel %vm481_vm0, %v7306_v36, %v5554_v44  ;;  %v5604_v35 = vunpack.i.h.bf16 %v7695_v46  ;;  %v5603_v1 = vunpack.i.l.bf16 %v7695_v46 }
 0xacf   : > { %v5599_v0 = vunpack.i.h.bf16 %v5597_v15  ;;  %v5598_v62 = vunpack.i.l.bf16 %v5597_v15  ;;  %5891 = vrot.lane.b32.xlu1 %v5890_v18, %s8108_s16  ;;  %v2795_v15 = vld [vmem:[#allocation3 + $0xb2] sm:$0xff]  ;;  %v5589_v18 = vunpack.i.h.bf16 %v7664_v17 }
 0xad0   : > { %5886 = vrot.lane.b32.xlu0 %v5885_v48, %s5970_s19  ;;  %5199 = vmatpush3.bf16.msra.mxu0 %v5196_v37  ;;  %v3963_v37 = vld [vmem:[%s8056_s7 + $0x78] sm:$0xff]  ;;  %v5563_v48 = vunpack.i.l.bf16 %v7614_v13  ;;  %s8167_s19 = sshll.u32 %s8169_s30, 6 }
 0xad1   : > { %v3365_v9 = vsel %vm8096_vm8, %v3357_v4, %v5598_v62  ;;  %v3309_v29 = vsel %vm8117_vm10, %v3301_v40, %v5599_v0  ;;  %v5612_v51 = vpop.permute.xlu1 %5611  ;;  %5201 = vmatprep.subr.bf16.mxu0 %v5200_v30  ;;  %v5588_v0 = vunpack.i.l.bf16 %v7664_v17  ;;  %v5208_v13 = vpack.c.bf16 %v3963_v37, %v3962_v26  ;;  %v2803_v40 = vld [vmem:[#allocation3 + $0xb3] sm:$0xff]  ;;  %vm8126_vm8 = vmmov %vm8119_vm7  ;;  %s474_s27 = scalar_lea.vmem %s8062_s13, %s8167_s19 }
 0xad2   : > { %v7713_v19 = vpop.permute.xlu0 %5606  ;;  %3799 = vmatprep.mubr.f32.mxu0 %v3365_v9  ;;  %v5614_v17 = vunpack.i.h.bf16 %v5612_v51  ;;  %v5613_v42 = vunpack.i.l.bf16 %v5612_v51  ;;  %vm8127_vm10 = vmmov %vm8119_vm7 }
 0xad3   : > { %3800 = vmatmul.mubr.f32.gmra.mrb[38].mxu0 %v3309_v29  ;;  %5896 = vrot.lane.b32.xlu1 %v5895_v33, %s8109_s25 }
 0xad4   : > { %3584 = vrot.lane.b32.xlu0 %v7645_v53, %s8109_s25  ;;  %5203 = vmatpush3.bf16.msra.mxu0 %v5200_v30  ;;  %v3596_v53 = vsel %vm481_vm0, %v7244_v8, %v5553_v7  ;;  %v3326_v30 = vsel %vm838_vm2, %v3318_v63, %v5564_v55  ;;  %v5608_v63 = vunpack.i.l.bf16 %v7713_v19 }
 0xad5   : > { %v7733_v43 = vpop.permute.xlu1 %5621  ;;  %5205 = vmatprep.subr.bf16.mxu0 %v5204_v2  ;;  %v3604_v32 = vsel %vm838_vm2, %v3596_v53, %v5563_v48  ;;  %v3334_v4 = vsel %vm847_vm3, %v3326_v30, %v5574_v20 }
 0xad6   : > { %v5617_v62 = vpop.permute.xlu0 %5616  ;;  %v3612_v36 = vsel %vm847_vm3, %v3604_v32, %v5573_v3  ;;  %v3342_v8 = vsel %vm856_vm4, %v3334_v4, %v5589_v18  ;;  %v5579_v3 = vunpack.i.h.bf16 %v7641_v39  ;;  %v5593_v18 = vunpack.i.l.bf16 %v7666_v50 }
 0xad7   : > { %3522 = vrot.lane.b32.xlu1 %v2787_v38, %s8107_s18  ;;  %v3620_v46 = vsel %vm856_vm4, %v3612_v36, %v5588_v0  ;;  %v3350_v7 = vsel %vm865_vm5, %v3342_v8, %v5604_v35  ;;  %v5578_v38 = vunpack.i.l.bf16 %v7641_v39  ;;  %v5609_v0 = vunpack.i.h.bf16 %v7713_v19  ;;  %s4474_s18 = sshll.u32 %s8169_s30, 2 }
 0xad8   : > { %3554 = vrot.lane.b32.xlu0 %v2795_v15, %s8108_s16  ;;  %5207 = vmatpush3.bf16.msra.mxu0 %v5204_v2  ;;  %v3628_v33 = vsel %vm865_vm5, %v3620_v46, %v5603_v1  ;;  %v3358_v26 = vsel %vm8118_vm11, %v3350_v7, %v5614_v17  ;;  %v5594_v15 = vunpack.i.h.bf16 %v7666_v50  ;;  %v5618_v53 = vunpack.i.l.bf16 %v5617_v62  ;;  %vm8128_vm11 = vmmov %vm8125_vm1 }
 0xad9   : > { %v5632_v29 = vpop.permute.xlu1 %5631  ;;  %5209 = vmatprep.subr.bf16.mxu0 %v5208_v13  ;;  %v3636_v37 = vsel %vm8119_vm7, %v3628_v33, %v5613_v42  ;;  %v3262_v30 = vsel %vm481_vm0, %v7197_v34, %v5578_v38  ;;  %v3597_v39 = vsel %vm481_vm0, %v7312_v24, %v5579_v3  ;;  %v5623_v3 = vunpack.i.l.bf16 %v7733_v43  ;;  %vm8129_vm7 = vmmov %vm8125_vm1 }
 0xada   : > { %v5627_v9 = vpop.permute.xlu0 %5626  ;;  %v5633_v32 = vunpack.i.l.bf16 %v5632_v29  ;;  %v3605_v17 = vsel %vm838_vm2, %v3597_v39, %v5594_v15  ;;  %v3270_v50 = vsel %vm838_vm2, %v3262_v30, %v5593_v18 }
 0xadb   : > { %v5629_v51 = vunpack.i.h.bf16 %v5627_v9  ;;  %v5628_v44 = vunpack.i.l.bf16 %v5627_v9  ;;  %3586 = vrot.lane.b32.xlu1 %v2803_v40, %s8109_s25  ;;  %v3278_v19 = vsel %vm847_vm3, %v3270_v50, %v5608_v63  ;;  %v2612_v63 = vld [vmem:[#allocation3 + $0x30] sm:$0xff]  ;;  %s478_s25 = scalar_lea.vmem %s8063_s14, %s4474_s18 }
 0xadc   : > { %5211 = vmatpush3.bf16.msra.mxu0 %v5208_v13  ;;  %v5619_v13 = vunpack.i.h.bf16 %v5617_v62  ;;  %v3613_v62 = vsel %vm847_vm3, %v3605_v17, %v5609_v0  ;;  %v3286_v36 = vsel %vm856_vm4, %v3278_v19, %v5618_v53 }
 0xadd   : > { %v3366_v2 = vsel %vm8120_vm6, %v3358_v26, %v5629_v51  ;;  %v3644_v55 = vsel %vm8121_vm12, %v3636_v37, %v5628_v44  ;;  %v5642_v20 = vpop.permute.xlu1 %5641  ;;  %v3294_v9 = vsel %vm865_vm5, %v3286_v36, %v5633_v32  ;;  %vm8130_vm6 = vmmov %vm8126_vm8 }
 0xade   : > { %v5637_v48 = vpop.permute.xlu0 %5636  ;;  %3804 = vmatprep.mubr.f32.mxu0 %v3366_v2  ;;  %3900 = vmatmul.mubr.f32.vlgmr.msra.gmra.mrb[16].mxu1 %v3644_v55  ;;  %v5644_v42 = vunpack.i.h.bf16 %v5642_v20  ;;  %v5643_v4 = vunpack.i.l.bf16 %v5642_v20  ;;  %v3621_v40 = vsel %vm856_vm4, %v3613_v62, %v5619_v13  ;;  %v5624_v20 = vunpack.i.h.bf16 %v7733_v43  ;;  %vm8131_vm12 = vmmov %vm8130_vm6 }
 0xadf   : > { %4504 = vmatprep.mubr.msk.f32.mxu1 %vm481_vm0, %v7422_v31  ;;  %v5634_v31 = vunpack.i.h.bf16 %v5632_v29  ;;  %v5639_v38 = vunpack.i.h.bf16 %v5637_v48  ;;  %v5638_v15 = vunpack.i.l.bf16 %v5637_v48 }
 0xae0   : > { %v3302_v33 = vsel %vm8122_vm13, %v3294_v9, %v5643_v4  ;;  %vm8132_vm13 = vmmov %vm8125_vm1 }
 0xae1   : > { %v7764_v1 = vpop.permute.xlu1 %5651  ;;  %v3629_v29 = vsel %vm865_vm5, %v3621_v40, %v5634_v31  ;;  %v3263_v31 = vsel %vm481_vm0, %v2612_v63, %v5624_v20 }
 0xae2   : > { %v5647_v35 = vpop.permute.xlu0 %5646  ;;  %v3637_v51 = vsel %vm8123_vm14, %v3629_v29, %v5644_v42  ;;  %v3271_v50 = vsel %vm838_vm2, %v3263_v31, %v5639_v38  ;;  %vm8133_vm14 = vmmov %vm8125_vm1 }
 0xae3   : > { %v5649_v18 = vunpack.i.h.bf16 %v5647_v35  ;;  %v5648_v0 = vunpack.i.l.bf16 %v5647_v35 }
 0xae5   : > { %v5662_v8 = vpop.permute.xlu1 %5661  ;;  %v3279_v35 = vsel %vm847_vm3, %v3271_v50, %v5649_v18 }
 0xae6   : > { %v5657_v34 = vpop.permute.xlu0 %5656  ;;  %v5664_v13 = vunpack.i.h.bf16 %v5662_v8  ;;  %v5663_v53 = vunpack.i.l.bf16 %v5662_v8 }
 0xae7   : > { %v5659_v46 = vunpack.i.h.bf16 %v5657_v34  ;;  %v5658_v24 = vunpack.i.l.bf16 %v5657_v34 }
 0xae8   : > { %v3287_v19 = vsel %vm856_vm4, %v3279_v35, %v5664_v13 }
 0xae9   : > { %v3310_v44 = vsel %vm8124_vm15, %v3302_v33, %v5658_v24  ;;  %v3645_v7 = vsel %vm8125_vm1, %v3637_v51, %v5659_v46  ;;  %v5672_v37 = vpop.permute.xlu1 %5671  ;;  %vm8134_vm15 = vmmov %vm8130_vm6 }
 0xaea   : > { %v5667_v26 = vpop.permute.xlu0 %5666  ;;  %3805 = vmatmul.mubr.f32.gmra.mrb[40].mxu0 %v3310_v44  ;;  %3905 = vmatmul.mubr.f32.gmra.mrb[18].mxu1 %v3645_v7  ;;  %v5674_v32 = vunpack.i.h.bf16 %v5672_v37  ;;  %v5673_v17 = vunpack.i.l.bf16 %v5672_v37  ;;  %v5654_v7 = vunpack.i.h.bf16 %v7764_v1  ;;  %v5653_v37 = vunpack.i.l.bf16 %v7764_v1  ;;  %vm8135_vm1 = vmmov %vm8130_vm6 }
 0xaeb   : > { %4505 = vmatprep.mubr.msk.f32.mxu1 %vm481_vm0, %v7465_v11  ;;  %v3319_v11 = vsel %vm481_vm0, %v7342_v49, %v5623_v3  ;;  %v5669_v20 = vunpack.i.h.bf16 %v5667_v26  ;;  %v5668_v3 = vunpack.i.l.bf16 %v5667_v26 }
 0xaec   : > { %v3327_v43 = vsel %vm838_vm2, %v3319_v11, %v5638_v15  ;;  %v3295_v46 = vsel %vm865_vm5, %v3287_v19, %v5674_v32 }
 0xaed   : > { %v7784_v55 = vpop.permute.xlu1 %5681  ;;  %v3335_v4 = vsel %vm847_vm3, %v3327_v43, %v5648_v0 }
 0xaee   : > { %v5677_v2 = vpop.permute.xlu0 %5676  ;;  %v3343_v62 = vsel %vm856_vm4, %v3335_v4, %v5663_v53  ;;  %v3320_v53 = vsel %vm481_vm0, %v7430_v25, %v5654_v7  ;;  %v2613_v7 = vld [vmem:[#allocation3 + $0x40] sm:$0xff] }
 0xaef   : > { %v3351_v8 = vsel %vm865_vm5, %v3343_v62, %v5673_v17  ;;  %v5679_v38 = vunpack.i.h.bf16 %v5677_v2  ;;  %v5678_v15 = vunpack.i.l.bf16 %v5677_v2  ;;  %v3328_v32 = vsel %vm838_vm2, %v3320_v53, %v5669_v20 }
 0xaf1   : > { %v5692_v39 = vpop.permute.xlu1 %5691  ;;  %v3336_v2 = vsel %vm847_vm3, %v3328_v32, %v5679_v38 }
 0xaf2   : > { %v5687_v30 = vpop.permute.xlu0 %5686  ;;  %v5694_v18 = vunpack.i.h.bf16 %v5692_v39  ;;  %v5693_v0 = vunpack.i.l.bf16 %v5692_v39 }
 0xaf3   : > { %v5689_v42 = vunpack.i.h.bf16 %v5687_v30  ;;  %v5688_v48 = vunpack.i.l.bf16 %v5687_v30  ;;  %v3598_v30 = vsel %vm481_vm0, %v7398_v58, %v5653_v37 }
 0xaf4   : > { %v3606_v1 = vsel %vm838_vm2, %v3598_v30, %v5668_v3  ;;  %v3344_v50 = vsel %vm856_vm4, %v3336_v2, %v5694_v18 }
 0xaf5   : > { %v5702_v40 = vpop.permute.xlu1 %5701  ;;  %v3359_v24 = vsel %vm8126_vm8, %v3351_v8, %v5688_v48  ;;  %v3303_v9 = vsel %vm8127_vm10, %v3295_v46, %v5689_v42  ;;  %v3614_v39 = vsel %vm847_vm3, %v3606_v1, %v5678_v15  ;;  %v5684_v46 = vunpack.i.h.bf16 %v7784_v55  ;;  %vm8136_vm8 = vmmov %vm8129_vm7 }
 0xaf6   : > { %v7797_v36 = vpop.permute.xlu0 %5696  ;;  %v5704_v49 = vunpack.i.h.bf16 %v5702_v40  ;;  %v5703_v34 = vunpack.i.l.bf16 %v5702_v40  ;;  %v3622_v43 = vsel %vm856_vm4, %v3614_v39, %v5693_v0  ;;  %vm8137_vm10 = vmmov %vm8129_vm7 }
 0xaf7   : > { %v3599_v15 = vsel %vm481_vm0, %v7445_v23, %v5684_v46 }
 0xaf8   : > { %v3367_v29 = vsel %vm8128_vm11, %v3359_v24, %v5703_v34  ;;  %v3311_v33 = vsel %vm8129_vm7, %v3303_v9, %v5704_v49  ;;  %v5683_v24 = vunpack.i.l.bf16 %v7784_v55  ;;  %v5699_v9 = vunpack.i.h.bf16 %v7797_v36  ;;  %vm8138_vm11 = vmmov %vm8135_vm1 }
 0xaf9   : > { %v5712_v44 = vpop.permute.xlu1 %5711  ;;  %3809 = vmatprep.mubr.f32.mxu0 %v3367_v29  ;;  %v5698_v29 = vunpack.i.l.bf16 %v7797_v36  ;;  %vm8139_vm7 = vmmov %vm8135_vm1 }
 0xafa   : > { %v5707_v51 = vpop.permute.xlu0 %5706  ;;  %3810 = vmatmul.mubr.f32.gmra.mrb[42].mxu0 %v3311_v33  ;;  %v5714_v33 = vunpack.i.h.bf16 %v5712_v44  ;;  %v3264_v18 = vsel %vm481_vm0, %v2613_v7, %v5683_v24 }
 0xafb   : > { %v5709_v31 = vunpack.i.h.bf16 %v5707_v51  ;;  %v5708_v11 = vunpack.i.l.bf16 %v5707_v51  ;;  %v5713_v51 = vunpack.i.l.bf16 %v5712_v44 }
 0xafd   : > { %v5722_v13 = vpop.permute.xlu1 %5721  ;;  %v3352_v35 = vsel %vm865_vm5, %v3344_v50, %v5709_v31  ;;  %v3630_v4 = vsel %vm865_vm5, %v3622_v43, %v5708_v11 }
 0xafe   : > { %v5717_v63 = vpop.permute.xlu0 %5716  ;;  %v5724_v37 = vunpack.i.h.bf16 %v5722_v13  ;;  %v5723_v20 = vunpack.i.l.bf16 %v5722_v13 }
 0xaff   : > { %v5719_v17 = vunpack.i.h.bf16 %v5717_v63  ;;  %v5718_v26 = vunpack.i.l.bf16 %v5717_v63  ;;  %v3607_v63 = vsel %vm838_vm2, %v3599_v15, %v5699_v9  ;;  %v2614_v9 = vld [vmem:[#allocation3 + $0x50] sm:$0xff] }
 0xb00   : > { %v3615_v30 = vsel %vm847_vm3, %v3607_v63, %v5714_v33 }
 0xb01   : > { %v5732_v42 = vpop.permute.xlu1 %5731  ;;  %v3360_v19 = vsel %vm8130_vm6, %v3352_v35, %v5719_v17  ;;  %v3638_v62 = vsel %vm8131_vm12, %v3630_v4, %v5718_v26  ;;  %v3623_v31 = vsel %vm856_vm4, %v3615_v30, %v5724_v37  ;;  %vm8140_vm6 = vmmov %vm8136_vm8 }
 0xb02   : > { %v7817_v25 = vpop.permute.xlu0 %5726  ;;  %v5734_v58 = vunpack.i.h.bf16 %v5732_v42  ;;  %v5733_v48 = vunpack.i.l.bf16 %v5732_v42  ;;  %vm8141_vm12 = vmmov %vm8140_vm6 }
 0xb04   : > { %v3368_v40 = vsel %vm8132_vm13, %v3360_v19, %v5734_v58  ;;  %v3646_v49 = vsel %vm8133_vm14, %v3638_v62, %v5733_v48  ;;  %v5729_v62 = vunpack.i.h.bf16 %v7817_v25  ;;  %vm8142_vm13 = vmmov %vm8135_vm1 }
 0xb05   : > { %v7825_v8 = vpop.permute.xlu1 %5741  ;;  %3814 = vmatprep.mubr.f32.mxu0 %v3368_v40  ;;  %3910 = vmatmul.mubr.f32.gmra.mrb[20].mxu1 %v3646_v49  ;;  %v5728_v40 = vunpack.i.l.bf16 %v7817_v25  ;;  %vm8143_vm14 = vmmov %vm8135_vm1 }
 0xb06   : > { %v5737_v34 = vpop.permute.xlu0 %5736  ;;  %4506 = vmatprep.mubr.msk.f32.mxu1 %vm481_vm0, %v7505_v28  ;;  %v3272_v28 = vsel %vm838_vm2, %v3264_v18, %v5698_v29  ;;  %v5744_v49 = vunpack.i.h.bf16 %v7825_v8  ;;  %v2679_v29 = vld [vmem:[#allocation3 + $0x63] sm:$0xff]  ;;  %v3265_v37 = vsel %vm481_vm0, %v2614_v9, %v5729_v62  ;;  %v2743_v62 = vld [vmem:[#allocation3 + $0x71] sm:$0xff] }
 0xb07   : > { %v5739_v55 = vunpack.i.h.bf16 %v5737_v34  ;;  %v5738_v0 = vunpack.i.l.bf16 %v5737_v34  ;;  %v3280_v44 = vsel %vm847_vm3, %v3272_v28, %v5713_v51  ;;  %v5743_v34 = vunpack.i.l.bf16 %v7825_v8 }
 0xb08   : > { %v3288_v13 = vsel %vm856_vm4, %v3280_v44, %v5723_v20  ;;  %v3321_v20 = vsel %vm481_vm0, %v2679_v29, %v5728_v40  ;;  %v3273_v25 = vsel %vm838_vm2, %v3265_v37, %v5744_v49 }
 0xb09   : > { %v5752_v38 = vpop.permute.xlu1 %5751  ;;  %v3296_v17 = vsel %vm865_vm5, %v3288_v13, %v5738_v0  ;;  %v3631_v26 = vsel %vm865_vm5, %v3623_v31, %v5739_v55  ;;  %v3329_v18 = vsel %vm838_vm2, %v3321_v20, %v5743_v34 }
 0xb0a   : > { %v5747_v3 = vpop.permute.xlu0 %5746  ;;  %v5754_v46 = vunpack.i.h.bf16 %v5752_v38  ;;  %v5753_v24 = vunpack.i.l.bf16 %v5752_v38 }
 0xb0b   : > { %v5749_v53 = vunpack.i.h.bf16 %v5747_v3  ;;  %v5748_v36 = vunpack.i.l.bf16 %v5747_v3 }
 0xb0c   : > { %v3281_v38 = vsel %vm847_vm3, %v3273_v25, %v5754_v46  ;;  %v3337_v0 = vsel %vm847_vm3, %v3329_v18, %v5753_v24 }
 0xb0d   : > { %v5762_v23 = vpop.permute.xlu1 %5761  ;;  %v3304_v2 = vsel %vm8134_vm15, %v3296_v17, %v5748_v36  ;;  %v3639_v39 = vsel %vm8135_vm1, %v3631_v26, %v5749_v53  ;;  %vm8144_vm15 = vmmov %vm8140_vm6 }
 0xb0e   : > { %v7842_v11 = vpop.permute.xlu0 %5756  ;;  %v5764_v32 = vunpack.i.h.bf16 %v5762_v23  ;;  %v5763_v1 = vunpack.i.l.bf16 %v5762_v23  ;;  %vm8145_vm1 = vmmov %vm8140_vm6 }
 0xb10   : > { %v3312_v50 = vsel %vm8136_vm8, %v3304_v2, %v5763_v1  ;;  %v3647_v43 = vsel %vm8137_vm10, %v3639_v39, %v5764_v32  ;;  %v5759_v39 = vunpack.i.h.bf16 %v7842_v11  ;;  %vm8146_vm8 = vmmov %vm8139_vm7 }
 0xb11   : > { %v7850_v58 = vpop.permute.xlu1 %5771  ;;  %3815 = vmatmul.mubr.f32.gmra.mrb[44].mxu0 %v3312_v50  ;;  %3915 = vmatmul.mubr.f32.gmra.mrb[22].mxu1 %v3647_v43  ;;  %v5758_v50 = vunpack.i.l.bf16 %v7842_v11  ;;  %vm8147_vm10 = vmmov %vm8139_vm7 }
 0xb12   : > { %v5767_v42 = vpop.permute.xlu0 %5766  ;;  %4507 = vmatprep.mubr.msk.f32.mxu1 %vm481_vm0, %v7552_v57  ;;  %v5774_v43 = vunpack.i.h.bf16 %v7850_v58  ;;  %v3322_v24 = vsel %vm481_vm0, %v7503_v52, %v5759_v39 }
 0xb13   : > { %v5769_v33 = vunpack.i.h.bf16 %v5767_v42  ;;  %v5768_v57 = vunpack.i.l.bf16 %v5767_v42  ;;  %v5773_v42 = vunpack.i.l.bf16 %v7850_v58  ;;  %v3600_v11 = vsel %vm481_vm0, %v2743_v62, %v5758_v50 }
 0xb15   : > { %v7854_v35 = vpop.permute.xlu1 %5781  ;;  %v3289_v28 = vsel %vm856_vm4, %v3281_v38, %v5769_v33  ;;  %v3345_v63 = vsel %vm856_vm4, %v3337_v0, %v5768_v57  ;;  %v3330_v33 = vsel %vm838_vm2, %v3322_v24, %v5774_v43  ;;  %v3608_v58 = vsel %vm838_vm2, %v3600_v11, %v5773_v42 }
 0xb16   : > { %v5777_v48 = vpop.permute.xlu0 %5776 }
 0xb17   : > { %v5779_v3 = vunpack.i.h.bf16 %v5777_v48  ;;  %v5778_v15 = vunpack.i.l.bf16 %v5777_v48  ;;  %v5784_v48 = vunpack.i.h.bf16 %v7854_v35 }
 0xb19   : > { %v5792_v19 = vpop.permute.xlu1 %5791  ;;  %v3353_v13 = vsel %vm865_vm5, %v3345_v63, %v5778_v15  ;;  %v3297_v31 = vsel %vm865_vm5, %v3289_v28, %v5779_v3 }
 0xb1a   : > { %v7856_v4 = vpop.permute.xlu0 %5786  ;;  %v5794_v8 = vunpack.i.h.bf16 %v5792_v19  ;;  %v5793_v55 = vunpack.i.l.bf16 %v5792_v19  ;;  %v5783_v19 = vunpack.i.l.bf16 %v7854_v35  ;;  %v3338_v35 = vsel %vm847_vm3, %v3330_v33, %v5784_v48 }
 0xb1c   : > { %v3361_v23 = vsel %vm8138_vm11, %v3353_v13, %v5793_v55  ;;  %v3305_v32 = vsel %vm8139_vm7, %v3297_v31, %v5794_v8  ;;  %vm8148_vm11 = vmmov %vm8145_vm1 }
 0xb1d   : > { %v7862_v7 = vpop.permute.xlu1 %5801  ;;  %vm8149_vm7 = vmmov %vm8145_vm1 }
 0xb1e   : > { %v5797_v51 = vpop.permute.xlu0 %5796  ;;  %v5804_v13 = vunpack.i.h.bf16 %v7862_v7  ;;  %v5803_v31 = vunpack.i.l.bf16 %v7862_v7 }
 0xb1f   : > { %v5799_v40 = vunpack.i.h.bf16 %v5797_v51  ;;  %v5798_v49 = vunpack.i.l.bf16 %v5797_v51  ;;  %v3616_v51 = vsel %vm847_vm3, %v3608_v58, %v5783_v19 }
 0xb21   : > { %v5812_v36 = vpop.permute.xlu1 %5811  ;;  %v3346_v20 = vsel %vm856_vm4, %v3338_v35, %v5799_v40  ;;  %v3624_v3 = vsel %vm856_vm4, %v3616_v51, %v5798_v49 }
 0xb22   : > { %v5807_v53 = vpop.permute.xlu0 %5806  ;;  %v5814_v9 = vunpack.i.h.bf16 %v5812_v36  ;;  %v5813_v29 = vunpack.i.l.bf16 %v5812_v36 }
 0xb23   : > { %v5809_v44 = vunpack.i.h.bf16 %v5807_v53  ;;  %v5808_v30 = vunpack.i.l.bf16 %v5807_v53 }
 0xb24   : > { %v3354_v8 = vsel %vm865_vm5, %v3346_v20, %v5814_v9  ;;  %v3632_v55 = vsel %vm865_vm5, %v3624_v3, %v5813_v29 }
 0xb25   : > { %v3369_v1 = vsel %vm8140_vm6, %v3361_v23, %v5808_v30  ;;  %v3313_v17 = vsel %vm8141_vm12, %v3305_v32, %v5809_v44  ;;  %v5822_v2 = vpop.permute.xlu1 %5821  ;;  %v5789_v44 = vunpack.i.h.bf16 %v7856_v4  ;;  %v5788_v30 = vunpack.i.l.bf16 %v7856_v4  ;;  %vm8151_vm6 = vmmov %vm8146_vm8 }
 0xb26   : > { %v7878_v26 = vpop.permute.xlu0 %5816  ;;  %3819 = vmatprep.mubr.f32.mxu0 %v3369_v1  ;;  %v5824_v57 = vunpack.i.h.bf16 %v5822_v2  ;;  %v5823_v37 = vunpack.i.l.bf16 %v5822_v2  ;;  %v2615_v1 = vld [vmem:[#allocation3 + $0x60] sm:$0xff]  ;;  %vm8152_vm12 = vmmov %vm8151_vm6 }
 0xb27   : > { %3820 = vmatmul.mubr.f32.gmra.mrb[46].mxu0 %v3313_v17  ;;  %v5819_v23 = vunpack.i.h.bf16 %v7878_v26  ;;  %v5818_v32 = vunpack.i.l.bf16 %v7878_v26  ;;  %v2744_v17 = vld [vmem:[#allocation3 + $0x81] sm:$0xff]  ;;  %v3266_v4 = vsel %vm481_vm0, %v2615_v1, %v5788_v30 }
 0xb28   : > { %v3362_v38 = vsel %vm8142_vm13, %v3354_v8, %v5824_v57  ;;  %v3640_v0 = vsel %vm8143_vm14, %v3632_v55, %v5823_v37  ;;  %v3601_v42 = vsel %vm481_vm0, %v2744_v17, %v5789_v44  ;;  %v3274_v7 = vsel %vm838_vm2, %v3266_v4, %v5803_v31  ;;  %v3965_v31 = vld [vmem:[%s8057_s8 + $0x8] sm:$0xff]  ;;  %vm8153_vm13 = vmmov %vm8151_vm6 }
 0xb29   : > { %v7886_v46 = vpop.permute.xlu1 %5831  ;;  %v3609_v19 = vsel %vm838_vm2, %v3601_v42, %v5804_v13  ;;  %v3282_v26 = vsel %vm847_vm3, %v3274_v7, %v5818_v32  ;;  %v3964_v13 = vld [vmem:[%s8057_s8] sm:$0xff]  ;;  %vm8154_vm14 = vmmov %vm8145_vm1 }
 0xb2a   : > { %v5827_v34 = vpop.permute.xlu0 %5826  ;;  %v3617_v49 = vsel %vm847_vm3, %v3609_v19, %v5819_v23  ;;  %v5834_v11 = vunpack.i.h.bf16 %v7886_v46  ;;  %v5833_v35 = vunpack.i.l.bf16 %v7886_v46  ;;  %v2746_v17 = vld [vmem:[#allocation3 + $0xa1] sm:$0xff] }
 0xb2b   : > { %v5829_v2 = vunpack.i.h.bf16 %v5827_v34  ;;  %v5828_v39 = vunpack.i.l.bf16 %v5827_v34 }
 0xb2d   : > { %v5842_v52 = vpop.permute.xlu1 %5841  ;;  %v3290_v34 = vsel %vm856_vm4, %v3282_v26, %v5828_v39  ;;  %v3625_v24 = vsel %vm856_vm4, %v3617_v49, %v5829_v2 }
 0xb2e   : > { %v5837_v15 = vpop.permute.xlu0 %5836  ;;  %v5843_v48 = vunpack.i.l.bf16 %v5842_v52 }
 0xb2f   : > { %v5839_v25 = vunpack.i.h.bf16 %v5837_v15  ;;  %v5838_v18 = vunpack.i.l.bf16 %v5837_v15 }
 0xb30   : > { %v3298_v57 = vsel %vm865_vm5, %v3290_v34, %v5843_v48 }
 0xb31   : > { %v3370_v28 = vsel %vm8144_vm15, %v3362_v38, %v5839_v25  ;;  %v3648_v63 = vsel %vm8145_vm1, %v3640_v0, %v5838_v18  ;;  %v5852_v36 = vpop.permute.xlu1 %5851  ;;  %v2616_v18 = vld [vmem:[#allocation3 + $0x70] sm:$0xff]  ;;  %v5503_v38 = vunpack.i.l.bf16 %v7049_v45  ;;  %v2681_v0 = vld [vmem:[#allocation3 + $0x83] sm:$0xff]  ;;  %vm8155_vm15 = vmmov %vm8145_vm1 }
 0xb32   : > { %v5847_v53 = vpop.permute.xlu0 %5846  ;;  %3824 = vmatprep.mubr.f32.mxu0 %v3370_v28  ;;  %3920 = vmatmul.mubr.f32.gmra.mrb[24].mxu1 %v3648_v63  ;;  %v5854_v62 = vunpack.i.h.bf16 %v5852_v36  ;;  %v5853_v40 = vunpack.i.l.bf16 %v5852_v36  ;;  %v3267_v46 = vsel %vm481_vm0, %v2616_v18, %v5834_v11 }
 0xb33   : > { %4508 = vmatprep.mubr.msk.f32.mxu1 %vm481_vm0, %v7669_v22  ;;  %v5844_v22 = vunpack.i.h.bf16 %v5842_v52  ;;  %v5849_v51 = vunpack.i.h.bf16 %v5847_v53  ;;  %v5848_v15 = vunpack.i.l.bf16 %v5847_v53  ;;  %v3323_v53 = vsel %vm481_vm0, %v2681_v0, %v5833_v35 }
 0xb34   : > { %v3306_v20 = vsel %vm8146_vm8, %v3298_v57, %v5853_v40  ;;  %v8150_v35 = vmov 0.0|0.0   ;;  %vm8157_vm8 = vmmov %vm8145_vm1 }
 0xb35   : > { %v7911_v43 = vpop.permute.xlu1 %5861  ;;  %v3633_v37 = vsel %vm865_vm5, %v3625_v24, %v5844_v22  ;;  %v3275_v36 = vsel %vm838_vm2, %v3267_v46, %v5849_v51  ;;  %v3331_v23 = vsel %vm838_vm2, %v3323_v53, %v5848_v15  ;;  %v5176_v22 = vpack.c.bf16 %v3965_v31, %v3964_v13 }
 0xb36   : > { %v5857_v50 = vpop.permute.xlu0 %5856  ;;  %v3641_v3 = vsel %vm8147_vm10, %v3633_v37, %v5854_v62  ;;  %v5863_v63 = vunpack.i.l.bf16 %v7911_v43  ;;  %v5864_v32 = vunpack.i.h.bf16 %v7911_v43 }
 0xb37   : > { %v5859_v28 = vunpack.i.h.bf16 %v5857_v50  ;;  %v5858_v44 = vunpack.i.l.bf16 %v5857_v50  ;;  %5177 = vmatprep.subr.bf16.mxu1 %v5176_v22 }
 0xb38   : > { %v3602_v19 = vsel %vm481_vm0, %v7585_v6, %v5863_v63  ;;  %v3603_v34 = vsel %vm481_vm0, %v2746_v17, %v5864_v32  ;;  %5179 = vmatpush3.bf16.msra.mxu1 %v5176_v22 }
 0xb39   : > { %v5872_v29 = vpop.permute.xlu1 %5871  ;;  %v3283_v48 = vsel %vm847_vm3, %v3275_v36, %v5859_v28  ;;  %v3339_v40 = vsel %vm847_vm3, %v3331_v23, %v5858_v44  ;;  %5212 = vmatprep.subr.bf16.mxu1 %v8150_v35  ;;  %v3704_v23 = vsub.s32 5, %v6445_v41 }
 0xb3a   : > { %v5867_v9 = vpop.permute.xlu0 %5866  ;;  %v5874_v1 = vunpack.i.h.bf16 %v5872_v29 }
 0xb3b   : > { %v5869_v33 = vunpack.i.h.bf16 %v5867_v9  ;;  %v5868_v58 = vunpack.i.l.bf16 %v5867_v9 }
 0xb3c   : > { %v3291_v24 = vsel %vm856_vm4, %v3283_v48, %v5874_v1 }
 0xb3d   : > { %v3314_v52 = vsel %vm8148_vm11, %v3306_v20, %v5868_v58  ;;  %v3649_v25 = vsel %vm8149_vm7, %v3641_v3, %v5869_v33  ;;  %v5882_v55 = vpop.permute.xlu1 %5881 }
 0xb3e   : > { %v5877_v8 = vpop.permute.xlu0 %5876  ;;  %3825 = vmatmul.mubr.f32.gmra.mrb[48].mxu0 %v3314_v52  ;;  %3925 = vmatmul.mubr.f32.gmra.mrb[26].mxu1 %v3649_v25  ;;  %v5884_v39 = vunpack.i.h.bf16 %v5882_v55  ;;  %v5883_v4 = vunpack.i.l.bf16 %v5882_v55  ;;  %v5504_v52 = vunpack.i.h.bf16 %v7049_v45  ;;  %v2811_v55 = vld [vmem:[#allocation3 + $0xb4] sm:$0xff] }
 0xb3f   : > { %4509 = vmatprep.mubr.msk.f32.mxu1 %vm481_vm0, %v7671_v56  ;;  %v5878_v30 = vunpack.i.l.bf16 %v5877_v8  ;;  %v5873_v56 = vunpack.i.l.bf16 %v5872_v29  ;;  %v5879_v2 = vunpack.i.h.bf16 %v5877_v8 }
 0xb40   : > { %v3299_v37 = vsel %vm865_vm5, %v3291_v24, %v5884_v39 }
 0xb41   : > { %v5892_v42 = vpop.permute.xlu1 %5891  ;;  %v3610_v43 = vsel %vm838_vm2, %v3602_v19, %v5878_v30  ;;  %v3347_v11 = vsel %vm856_vm4, %v3339_v40, %v5873_v56  ;;  %v3611_v6 = vsel %vm838_vm2, %v3603_v34, %v5879_v2 }
 0xb42   : > { %v5887_v50 = vpop.permute.xlu0 %5886  ;;  %v5894_v26 = vunpack.i.h.bf16 %v5892_v42  ;;  %v5893_v49 = vunpack.i.l.bf16 %v5892_v42  ;;  %v3355_v58 = vsel %vm865_vm5, %v3347_v11, %v5883_v4 }
 0xb43   : > { %v5889_v7 = vunpack.i.h.bf16 %v5887_v50  ;;  %v5888_v62 = vunpack.i.l.bf16 %v5887_v50 }
 0xb44   : > { %v3363_v25 = vsel %vm8151_vm6, %v3355_v58, %v5893_v49  ;;  %v3307_v8 = vsel %vm8153_vm13, %v3299_v37, %v5894_v26 }
 0xb45   : > { %v3618_v9 = vsel %vm847_vm3, %v3610_v43, %v5888_v62  ;;  %v5897_v29 = vpop.permute.xlu1 %5896  ;;  %v3619_v3 = vsel %vm847_vm3, %v3611_v6, %v5889_v7  ;;  %vm8156_vm3 = vmmov %vm8151_vm6  ;;  %v8158_v43 = vld [vmem:[#allocation7_spill] sm:$0xff] }
 0xb46   : > { %v3585_v33 = vpop.permute.xlu0 %3584  ;;  %v3626_v57 = vsel %vm856_vm4, %v3618_v9, %v5503_v38  ;;  %v5899_v51 = vunpack.i.h.bf16 %v5897_v29  ;;  %v5898_v20 = vunpack.i.l.bf16 %v5897_v29  ;;  %v3627_v63 = vsel %vm856_vm4, %v3619_v3, %v5504_v52  ;;  %v8159_v29 = vld [vmem:[#allocation6_spill] sm:$0xff]  ;;  %v8160_v52 = vld [vmem:[#allocation9_spill] sm:$0xff] }
 0xb47   : > { %v3634_v15 = vsel %vm865_vm5, %v3626_v57, %v7057_v54 }
 0xb48   : > { %v3642_v18 = vsel %vm8152_vm12, %v3634_v15, %v7059_v60  ;;  %v3371_v38 = vsel %vm8154_vm14, %v3363_v25, %v5898_v20  ;;  %v3315_v46 = vsel %vm8145_vm1, %v3307_v8, %v5899_v51 }
 0xb49   : > { %v3650_v0 = vsel %vm8155_vm15, %v3642_v18, %v3585_v33  ;;  %v3523_v28 = vpop.permute.xlu1 %3522  ;;  %3829 = vmatprep.mubr.f32.mxu0 %v3371_v38 }
 0xb4a   : > { %3930 = vmatmul.mubr.f32.gmra.mrb[28].mxu1 %v3650_v0  ;;  %v3635_v45 = vsel %vm865_vm5, %v3627_v63, %v3523_v28  ;;  %v3555_v54 = vpop.permute.xlu0 %3554  ;;  %3830 = vmatmul.mubr.f32.gmra.mrb[50].mxu0 %v3315_v46  ;;  %v8161_v63 = vld [vmem:[#allocation8_spill] sm:$0xff]  ;;  %vm4375_vm5 = vcmask 1041408  }
 0xb4b   : > { %4510 = vmatprep.mubr.msk.f32.mxu1 %vm481_vm0, %v2811_v55  ;;  %4925 = vmatprep.mubr.f32.mxu0 %v7000_v59  ;;  %v3643_v60 = vsel %vm8156_vm3, %v3635_v45, %v3555_v54 }
 0xb4d   : > { %v3587_v53 = vpop.permute.xlu1 %3586 }
 0xb4e   : > { %4926 = vmatmul.mubr.f32.vlgmr.msra.gmra.mrb[52].mxu0 %v6998_v47  ;;  %v3651_v36 = vsel %vm8157_vm8, %v3643_v60, %v3587_v53 }
 0xb4f   : > { %3935 = vmatmul.mubr.f32.gmra.mrb[30].mxu1 %v3651_v36  ;;  %4928 = vmatprep.mubr.f32.mxu0 %v7008_v16 }
 0xb52   : > { %4929 = vmatmul.mubr.f32.gmra.mrb[54].mxu0 %v7006_v10  ;;  %v7986_v10 = vld [vmem:[%s8061_s12] sm:$0xff] }
 0xb53   : > { %4931 = vmatprep.mubr.f32.mxu0 %v7018_v27  ;;  %v3705_v16 = vrot.slane %v7986_v10, %v3704_v23 }
 0xb56   : > { %4932 = vmatmul.mubr.f32.gmra.mrb[56].mxu0 %v7016_v21 }
 0xb57   : > { %4934 = vmatprep.mubr.f32.mxu0 %v7029_v14 }
 0xb5a   : > { %4935 = vmatmul.mubr.f32.gmra.mrb[58].mxu0 %v7027_v61 }
 0xb92   : > { %v4640_v59 = vpop.f32.mrb[36].mxu0 }
 0xb93   : > { %v4641_v44 = vpop.f32.mrb[37].mxu0 }
 0xb94   : > { %v4642_v30 = vadd.f32 %v4641_v44, %v4640_v59 }
 0xb96   : > { %v3797_v21 = vadd.f32 %v4642_v30, %v3705_v16  ;;  %v8162_v30 = vld [vmem:[#allocation11_spill] sm:$0xff] }
 0xba6   : > { %v4643_v13 = vpop.f32.mrb[38].mxu0 }
 0xba7   : > { %v4644_v47 = vpop.f32.mrb[39].mxu0 }
 0xba8   : > { %v4645_v31 = vadd.f32 %v4644_v47, %v4643_v13 }
 0xbaa   : > { %v3802_v1 = vadd.f32 %v4645_v31, %v3705_v16 }
 0xbb1   : > { %v3901_v27 = vpop.f32.mrb[16].mxu1 }
 0xbb2   : > { %v3902_v14 = vadd.f32 %v3901_v27, %v3797_v21  ;;  %v3903_v32 = vpop.f32.mrb[17].mxu1 }
 0xbb4   : > { %v3940_v61 = vadd.f32 %v3902_v14, %v7151_v12 }
 0xbb6   : > { %4881 = vmatprep.mubr.msk.f32.mxu1 %vm481_vm0, %v3940_v61  ;;  %v8163_v61 = vld [vmem:[#allocation10_spill] sm:$0xff] }
 0xbbd   : > { %v4646_v56 = vpop.f32.mrb[40].mxu0  ;;  %v3906_v17 = vpop.f32.mrb[18].mxu1 }
 0xbbe   : > { %v3907_v2 = vadd.f32 %v3906_v17, %v3802_v1  ;;  %v4647_v39 = vpop.f32.mrb[41].mxu0  ;;  %v3908_v4 = vpop.f32.mrb[19].mxu1 }
 0xbbf   : > { %v4648_v50 = vadd.f32 %v4647_v39, %v4646_v56 }
 0xbc0   : > { %v3941_v42 = vadd.f32 %v3907_v2, %v7149_v5  ;;  %v8164_v2 = vmov 0.0  }
 0xbc1   : > { %v3807_v7 = vadd.f32 %v4648_v50, %v3705_v16 }
 0xbc2   : > { %4882 = vmatmul.mubr.msk.f32.vlgmr.msra.gmra.mrb[32].mxu1 %vm481_vm0, %v3941_v42 }
 0xbcd   : > { %v4649_v22 = vpop.f32.mrb[42].mxu0 }
 0xbce   : > { %v4650_v48 = vpop.f32.mrb[43].mxu0 }
 0xbcf   : > { %v4651_v19 = vadd.f32 %v4650_v48, %v4649_v22 }
 0xbd1   : > { %v3812_v49 = vadd.f32 %v4651_v19, %v3705_v16 }
 0xbd8   : > { %v3911_v62 = vpop.f32.mrb[20].mxu1 }
 0xbd9   : > { %v3912_v40 = vadd.f32 %v3911_v62, %v3807_v7  ;;  %v3913_v12 = vpop.f32.mrb[21].mxu1 }
 0xbdb   : > { %v3942_v26 = vadd.f32 %v3912_v40, %v8158_v43  ;;  %v4202_v43 = vsub.s32 6, %v6445_v41 }
 0xbdd   : > { %4884 = vmatprep.mubr.msk.f32.mxu1 %vm481_vm0, %v3942_v26  ;;  %v4203_v26 = vrot.slane %v7986_v10, %v4202_v43 }
 0xbe4   : > { %v4652_v34 = vpop.f32.mrb[44].mxu0  ;;  %v3916_v24 = vpop.f32.mrb[22].mxu1 }
 0xbe5   : > { %v3917_v11 = vadd.f32 %v3916_v24, %v3812_v49  ;;  %v4653_v9 = vpop.f32.mrb[45].mxu0  ;;  %v3918_v6 = vpop.f32.mrb[23].mxu1 }
 0xbe6   : > { %v4654_v5 = vadd.f32 %v4653_v9, %v4652_v34 }
 0xbe7   : > { %v3943_v33 = vadd.f32 %v3917_v11, %v8159_v29 }
 0xbe8   : > { %v3817_v51 = vadd.f32 %v4654_v5, %v3705_v16 }
 0xbe9   : > { %4885 = vmatmul.mubr.msk.f32.gmra.mrb[34].mxu1 %vm481_vm0, %v3943_v33 }
 0xbfa   : > { %v4655_v58 = vpop.f32.mrb[46].mxu0 }
 0xbfb   : > { %v4656_v57 = vpop.f32.mrb[47].mxu0 }
 0xbfc   : > { %v4657_v37 = vadd.f32 %v4656_v57, %v4655_v58 }
 0xbfe   : > { %v3822_v18 = vadd.f32 %v4657_v37, %v3705_v16 }
 0xc05   : > { %v3921_v20 = vpop.f32.mrb[24].mxu1 }
 0xc06   : > { %v3922_v3 = vadd.f32 %v3921_v20, %v3817_v51  ;;  %v3923_v15 = vpop.f32.mrb[25].mxu1 }
 0xc08   : > { %v3944_v25 = vadd.f32 %v3922_v3, %v8160_v52 }
 0xc0a   : > { %4887 = vmatprep.mubr.msk.f32.mxu1 %vm481_vm0, %v3944_v25 }
 0xc11   : > { %v4658_v8 = vpop.f32.mrb[48].mxu0  ;;  %v3926_v55 = vpop.f32.mrb[26].mxu1 }
 0xc12   : > { %v3927_v38 = vadd.f32 %v3926_v55, %v3822_v18  ;;  %v4659_v0 = vpop.f32.mrb[49].mxu0  ;;  %v3928_v46 = vpop.f32.mrb[27].mxu1 }
 0xc13   : > { %v4660_v28 = vadd.f32 %v4659_v0, %v4658_v8 }
 0xc14   : > { %v3945_v45 = vadd.f32 %v3927_v38, %v8161_v63 }
 0xc15   : > { %v3827_v54 = vadd.f32 %v4660_v28, %v3705_v16 }
 0xc16   : > { %4888 = vmatmul.mubr.msk.f32.gmra.mrb[36].mxu1 %vm481_vm0, %v3945_v45 }
 0xc1d   : > { %v3931_v60 = vpop.f32.mrb[28].mxu1  ;;  %v4661_v36 = vpop.f32.mrb[50].mxu0 }
 0xc1e   : > { %v3932_v53 = vadd.f32 %v3931_v60, %v3827_v54  ;;  %v3933_v59 = vpop.f32.mrb[29].mxu1  ;;  %v4662_v44 = vpop.f32.mrb[51].mxu0 }
 0xc1f   : > { %v4663_v47 = vadd.f32 %v4662_v44, %v4661_v36 }
 0xc20   : > { %v3946_v13 = vadd.f32 %v3932_v53, %v8162_v30 }
 0xc21   : > { %v4927_v31 = vpop.f32.mrb[52].mxu0  ;;  %v3832_v23 = vadd.f32 %v4663_v47, %v3705_v16 }
 0xc22   : > { %4890 = vmatprep.mubr.msk.f32.mxu1 %vm481_vm0, %v3946_v13  ;;  %v3936_v21 = vpop.f32.mrb[30].mxu1  ;;  %v4161_v27 = vpop.f32.mrb[53].mxu0 }
 0xc23   : > { %v3937_v14 = vadd.f32 %v3936_v21, %v3832_v23  ;;  %v3938_v32 = vpop.f32.mrb[31].mxu1 }
 0xc25   : > { %v3947_v1 = vadd.f32 %v3937_v14, %v8163_v61  ;;  %v4930_v56 = vpop.f32.mrb[54].mxu0 }
 0xc26   : > { %v4171_v17 = vpop.f32.mrb[55].mxu0 }
 0xc27   : > { %4891 = vmatmul.mubr.msk.f32.gmra.mrb[38].mxu1 %vm481_vm0, %v3947_v1  ;;  %vm4362_vm0 = vcmask 31744  }
 0xc28   : > { %4953 = vmatprep.mubr.msk.f32.mxu1 %vm5987_vm9, %v8164_v2  ;;  %vm4377_vm9 = vcmask 256000  }
 0xc29   : > { %v4933_v39 = vpop.f32.mrb[56].mxu0 }
 0xc2a   : > { %v4181_v4 = vpop.f32.mrb[57].mxu0 }
 0xc2d   : > { %v4936_v50 = vpop.f32.mrb[58].mxu0 }
 0xc2e   : > { %v4191_v42 = vpop.f32.mrb[59].mxu0 }
 0xc95   : > { %v4883_v22 = vpop.f32.mrb[32].mxu1 }
 0xc96   : > { %v4167_v48 = vadd.f32 %v4927_v31, %v4883_v22  ;;  %v4056_v16 = vpop.f32.mrb[33].mxu1 }
 0xc97   : > { %v4162_v19 = vadd.f32 %v4161_v27, %v4056_v16 }
 0xc98   : > { %v4205_v34 = vadd.f32 %v4203_v26, %v4167_v48 }
 0xc99   : > { %v4204_v9 = vadd.f32 %v4203_v26, %v4162_v19 }
 0xc9a   : > { %v4213_v33 = vsel %vm838_vm2, %v4205_v34, -inf }
 0xc9b   : > { %v4212_v57 = vsel %vm838_vm2, %v4204_v9, -inf }
 0xcbc   : > { %v4886_v7 = vpop.f32.mrb[34].mxu1 }
 0xcbd   : > { %v4177_v62 = vadd.f32 %v4930_v56, %v4886_v7  ;;  %v4066_v40 = vpop.f32.mrb[35].mxu1 }
 0xcbe   : > { %v4172_v12 = vadd.f32 %v4171_v17, %v4066_v40 }
 0xcbf   : > { %v4207_v3 = vadd.f32 %v4203_v26, %v4177_v62 }
 0xcc0   : > { %v4206_v25 = vadd.f32 %v4203_v26, %v4172_v12 }
 0xcc1   : > { %v4215_v38 = vsel %vm838_vm2, %v4207_v3, -inf }
 0xcc2   : > { %v4214_v46 = vsel %vm838_vm2, %v4206_v25, -inf }
 0xce9   : > { %v4889_v49 = vpop.f32.mrb[36].mxu1 }
 0xcea   : > { %v4187_v24 = vadd.f32 %v4933_v39, %v4889_v49  ;;  %v4076_v11 = vpop.f32.mrb[37].mxu1 }
 0xceb   : > { %v4182_v6 = vadd.f32 %v4181_v4, %v4076_v11  ;;  %v480_v11 = vld [vmem:[%s8061_s12 + $0x8] sm:$0x1] }
 0xcec   : > { %v4209_v5 = vadd.f32 %v4203_v26, %v4187_v24  ;;  %v4257_v24 = vld [vmem:[%s8058_s9] sm:$0x7] }
 0xced   : > { %v4208_v29 = vadd.f32 %v4203_v26, %v4182_v6 }
 0xcee   : > { %v4218_v58 = vsel %vm838_vm2, %v4209_v5, -inf }
 0xcef   : > { %v4219_v37 = vmax.f32 %v4213_v33, %v4218_v58  ;;  %v4216_v51 = vsel %vm838_vm2, %v4208_v29, -inf }
 0xcf0   : > { %v4217_v41 = vmax.f32 %v4212_v57, %v4216_v51 }
 0xcf2   : > { %v4224_v20 = vmax.f32 %v4217_v41, %v4219_v37 }
 0xcfa   : > { %v4892_v10 = vpop.f32.mrb[38].mxu1 }
 0xcfb   : > { %v4197_v15 = vadd.f32 %v4936_v50, %v4892_v10  ;;  %v4086_v52 = vpop.f32.mrb[39].mxu1 }
 0xcfc   : > { %v4192_v18 = vadd.f32 %v4191_v42, %v4086_v52 }
 0xcfd   : > { %v4211_v8 = vadd.f32 %v4203_v26, %v4197_v15 }
 0xcfe   : > { %v4210_v55 = vadd.f32 %v4203_v26, %v4192_v18 }
 0xcff   : > { %v4222_v0 = vsel %vm838_vm2, %v4211_v8, -inf }
 0xd00   : > { %v4223_v28 = vmax.f32 %v4215_v38, %v4222_v0  ;;  %v4220_v63 = vsel %vm838_vm2, %v4210_v55, -inf }
 0xd01   : > { %v4221_v45 = vmax.f32 %v4214_v46, %v4220_v63 }
 0xd03   : > { %v4225_v54 = vmax.f32 %v4221_v45, %v4223_v28 }
 0xd05   : > { %v4226_v60 = vmax.f32 %v4224_v20, %v4225_v54  ;;  %v8166_v20 = vld [vmem:[#allocation4_spill] sm:$0xff] }
 0xd07   : > { %v4227_v53 = vrot.slane %v4226_v60, 4 }
 0xd09   : > { %v4228_v36 = vmax.f32 %v4226_v60, %v4227_v53 }
 0xd0b   : > { %v4229_v59 = vrot.slane %v4228_v36, 2 }
 0xd0d   : > { %v4230_v44 = vmax.f32 %v4228_v36, %v4229_v59 }
 0xd0f   : > { %v4231_v30 = vrot.slane %v4230_v44, 1 }
 0xd11   : > { %v4232_v13 = vmax.f32 %v4230_v44, %v4231_v30 }
 0xd13   : > { %v4239_v47 = vsub.f32 %v4210_v55, %v4232_v13  ;;  %v4233_v31 = vsub.f32 %v4204_v9, %v4232_v13  ;;  %v4234_v23 = vsub.f32 %v4205_v34, %v4232_v13  ;;  %v4235_v21 = vsub.f32 %v4206_v25, %v4232_v13  ;;  %v8165_v9 = vld [vmem:[#allocation5_spill] sm:$0xff] }
 0xd14   : > { %v4236_v27 = vsub.f32 %v4207_v3, %v4232_v13  ;;  %v4237_v14 = vsub.f32 %v4208_v29, %v4232_v13  ;;  %v4238_v32 = vsub.f32 %v4209_v5, %v4232_v13  ;;  %v4240_v61 = vsub.f32 %v4211_v8, %v4232_v13 }
 0xd15   : > { %v4241_v1 = vmul.f32 1.442695, %v4233_v31  ;;  %v4243_v56 = vmul.f32 1.442695, %v4234_v23  ;;  %v4245_v17 = vmul.f32 1.442695, %v4235_v21  ;;  %v1581_v6 = vadd.f32 %v8165_v9, %v480_v11 }
 0xd16   : > { %v4247_v2 = vmul.f32 1.442695, %v4236_v27  ;;  %v4249_v39 = vmul.f32 1.442695, %v4237_v14  ;;  %v4251_v4 = vmul.f32 1.442695, %v4238_v32 }
 0xd17   : > { %5934 = vpow2.f32 %v4241_v1  ;;  %v4253_v50 = vmul.f32 1.442695, %v4239_v47  ;;  %v4255_v42 = vmul.f32 1.442695, %v4240_v61  ;;  %v4492_v5 = vmul.f32 -1.442695, %v1581_v6 }
 0xd18   : > { %5936 = vpow2.f32 %v4243_v56 }
 0xd19   : > { %5938 = vpow2.f32 %v4245_v17 }
 0xd1a   : > { %5940 = vpow2.f32 %v4247_v2 }
 0xd1b   : > { %5942 = vpow2.f32 %v4249_v39 }
 0xd1c   : > { %5944 = vpow2.f32 %v4251_v4 }
 0xd1d   : > { %5946 = vpow2.f32 %v4253_v50 }
 0xd1e   : > { %5948 = vpow2.f32 %v4255_v42 }
 0xd1f   : > { %5950 = vpow2.f32 %v4492_v5 }
 0xd21   : > { %v5935_v22 = vpop.eup %5934 }
 0xd22   : > { %v5937_v48 = vpop.eup %5936 }
 0xd23   : > { %v5939_v16 = vpop.eup %5938  ;;  %v5213_v19 = vpack.c.bf16 %v5937_v48, %v5935_v22 }
 0xd24   : > { %v5941_v7 = vpop.eup %5940 }
 0xd25   : > { %5214 = vmatpush3.bf16.msra.mxu1 %v5213_v19  ;;  %v5943_v62 = vpop.eup %5942  ;;  %v5216_v40 = vpack.c.bf16 %v5941_v7, %v5939_v16 }
 0xd26   : > { %5215 = vmatprep.subr.bf16.mxu1 %v8150_v35  ;;  %v5945_v12 = vpop.eup %5944 }
 0xd27   : > { %v5947_v43 = vpop.eup %5946  ;;  %v5219_v26 = vpack.c.bf16 %v5945_v12, %v5943_v62 }
 0xd28   : > { %v5949_v49 = vpop.eup %5948 }
 0xd29   : > { %5217 = vmatpush3.bf16.msra.mxu1 %v5216_v40  ;;  %v5222_v34 = vpack.c.bf16 %v5949_v49, %v5947_v43  ;;  %v5951_v33 = vpop.eup %5950 }
 0xd2a   : > { %5218 = vmatprep.subr.bf16.mxu1 %v8150_v35  ;;  %v1587_v58 = vadd.f32 1.0, %v5951_v33 }
 0xd2d   : > { %5220 = vmatpush3.bf16.msra.mxu1 %v5219_v26 }
 0xd2e   : > { %5221 = vmatprep.subr.bf16.mxu1 %v8150_v35 }
 0xd31   : > { %5223 = vmatpush3.bf16.msra.mxu1 %v5222_v34 }
 0xd34   : > { %4954 = vmatmul.mubr.msk.f32.vlgmr.msra.gmra.mrb[40].mxu1 %vm856_vm4, %v4257_v24  ;;  %vm4373_vm4 = vcmask 1040384  }
 0xe07   : > { %v4327_v29 = vpop.f32.mrb[40].mxu1 }
 0xe08   : > { %5952 = vrcp.f32 %v4327_v29  ;;  %v4955_v35 = vpop.f32.mrb[41].mxu1 }
 0xe09   : > { %5954 = vrcp.f32 %v1587_v58 }
 0xe12   : > { %v5953_v57 = vpop.eup %5952 }
 0xe13   : > { %v4332_v37 = vmul.f32 %v5953_v57, %v4327_v29  ;;  %v5955_v52 = vpop.eup %5954 }
 0xe14   : > { %v4363_v63 = vsel %vm4362_vm0, %v5955_v52, 0.0 }
 0xe15   : > { %v4333_v51 = vsub.f32 2.0, %v4332_v37  ;;  %v4371_v36 = vrot.slane %v4363_v63, 6 }
 0xe17   : > { %v4334_v41 = vmul.f32 %v5953_v57, %v4333_v51 }
 0xe19   : > { %v4338_v10 = vrot.slane %v4334_v41, %v8166_v20  ;;  %v4356_v3 = vrot.slane %v4334_v41, 7  ;;  %v4359_v15 = vrot.slane %v4334_v41, 6 }
 0xe1b   : > { %v4339_v25 = vmul.f32 %v5935_v22, %v4338_v10  ;;  %v4340_v18 = vmul.f32 %v5937_v48, %v4338_v10  ;;  %v4341_v8 = vmul.f32 %v5939_v16, %v4338_v10  ;;  %v4342_v55 = vmul.f32 %v5941_v7, %v4338_v10 }
 0xe1c   : > { %v4343_v38 = vmul.f32 %v5943_v62, %v4338_v10  ;;  %v4344_v0 = vmul.f32 %v5945_v12, %v4338_v10  ;;  %v4345_v46 = vmul.f32 %v5947_v43, %v4338_v10  ;;  %v4346_v28 = vmul.f32 %v5949_v49, %v4338_v10 }
 0xe1d   : > { %4347 = vst.msk [vmem:[%s474_s27] sm:$0xff] %vm838_vm2, %v4339_v25  ;;  %4348 = vst.msk [vmem:[%s474_s27 + $0x8] sm:$0xff] %vm838_vm2, %v4340_v18  ;;  %v4358_v45 = vmul.f32 %v4356_v3, %v4327_v29  ;;  %v4361_v54 = vmul.f32 %v4359_v15, %v4327_v29 }
 0xe1e   : > { %4349 = vst.msk [vmem:[%s474_s27 + $0x10] sm:$0xff] %vm838_vm2, %v4341_v8  ;;  %4350 = vst.msk [vmem:[%s474_s27 + $0x18] sm:$0xff] %vm838_vm2, %v4342_v55 }
 0xe1f   : > { %4351 = vst.msk [vmem:[%s474_s27 + $0x20] sm:$0xff] %vm838_vm2, %v4343_v38  ;;  %4352 = vst.msk [vmem:[%s474_s27 + $0x28] sm:$0xff] %vm838_vm2, %v4344_v0  ;;  %v4365_v60 = vrot.slane %v4358_v45, 1  ;;  %v4368_v53 = vrot.slane %v4361_v54, 1 }
 0xe20   : > { %4353 = vst.msk [vmem:[%s474_s27 + $0x30] sm:$0xff] %vm838_vm2, %v4345_v46  ;;  %4354 = vst.msk [vmem:[%s474_s27 + $0x38] sm:$0xff] %vm838_vm2, %v4346_v28 }
 0xe21   : > { %v4374_v59 = vsel %vm4373_vm4, %v4365_v60, %v4368_v53 }
 0xe22   : > { %v4376_v44 = vsel %vm4375_vm5, %v4374_v59, %v4371_v36 }
 0xe23   : > { %4378 = vst.msk [vmem:[%s478_s25] sm:$0x7] %vm4377_vm9, %v4376_v44 }
 0xe24 PF: > { %s25_s29 = sadd.s32 1, %s5964_s29  }
 0xe25   : > { %p22_p4 = scmp.ge.s32.totalorder %s25_s29, 4  }
 0xe27   :  { %24 = sbr.rel (!%p22_p4) target bundleno = 1 (0x1), region = 124 }

</bundles_post_ra>
